<compile_context>
chip_gen: v6e
topology: v6e:2x2x1
jax: 0.10.0
libtpu: 0.0.40
codegen_flags: <defaults>
</compile_context>

<pallas_src>
import functools

import jax
import jax.numpy as jnp
from jax.experimental import pallas as pl
from jax.experimental.pallas import tpu as pltpu

BN_EPS = 1e-5                     # PyTorch BatchNorm2d default (train-mode stats)
VMEM_LIMIT_BYTES = 32 * 1024 * 1024   # fine up to TM=2048 here; keep <=~48MiB on v7x
                                       # (64 MiB physical); v5e/v6e have 128 MiB.


# ----------------------------------------------------------------------------
# small helpers
# ----------------------------------------------------------------------------
def _round_up(x, m):
    return ((x + m - 1) // m) * m


def _plan_m(m, cap):
    """Tile plan for the lane (N*H*W) axis.

    Returns (tm, m_pad, grid): tm is a multiple of 128 and <= cap, m_pad is a
    multiple of tm (>= m), grid = m_pad // tm.  Padding waste is bounded by the
    tile size, never forces a fallback to 128-wide tiles.
    """
    m128 = _round_up(max(m, 1), 128)
    if m128 <= cap:
        return m128, m128, 1
    m_pad = _round_up(m128, cap)
    return cap, m_pad, m_pad // cap


def _pad_cols(x, m_pad):
    m = x.shape[1]
    return x if m == m_pad else jnp.pad(x, ((0, 0), (0, m_pad - m)))


def _crop(x, m):
    return x if x.shape[1] == m else x[:, :m]


# ----------------------------------------------------------------------------
# Pallas kernels
# ----------------------------------------------------------------------------
def _conv_kernel(*refs, n_in, relu, softmax, emit_stats, m_valid, m_pad, tm):
    """Fused conv-as-matmul (channel-major, transposed):
         acc(Cout, tm) = sum_j  W_j(Cout,Kj) @ A_j(Kj,tm)    [bf16 -> f32 MXU]
       + bias, optional per-tile BN partial stats, optional ReLU / channel softmax.
    """
    pos = 0
    acc = None
    for _ in range(n_in):
        a_ref, w_ref = refs[pos], refs[pos + 1]
        pos += 2
        part = jnp.dot(w_ref[...], a_ref[...], preferred_element_type=jnp.float32)
        acc = part if acc is None else acc + part
    b_ref = refs[pos]
    o_ref = refs[pos + 1]
    pos += 2

    acc = acc + b_ref[...]                            # (Cout, tm) + (Cout, 1)

    if emit_stats:
        # Training-mode BatchNorm statistics over the valid columns only,
        # emitted as per-tile partials -> the grid axis stays "parallel"
        # (megacore-friendly); a tiny XLA sum reduces them afterwards.
        sum_ref, ssq_ref = refs[pos], refs[pos + 1]
        if m_valid == m_pad:                          # static: no lane padding
            sum_ref[...] = jnp.sum(acc, axis=1, keepdims=True)[None]
            ssq_ref[...] = jnp.sum(acc * acc, axis=1, keepdims=True)[None]
        else:
            i = pl.program_id(0)
            last = pl.num_programs(0) - 1

            @pl.when(i != last)                       # tile fully valid: no mask
            def _full():
                sum_ref[...] = jnp.sum(acc, axis=1, keepdims=True)[None]
                ssq_ref[...] = jnp.sum(acc * acc, axis=1, keepdims=True)[None]

            @pl.when(i == last)                       # only the last tile is padded
            def _masked():
                col = i * tm + jax.lax.broadcasted_iota(jnp.int32, acc.shape, 1)
                mask = (col < m_valid).astype(jnp.float32)
                am = acc * mask
                sum_ref[...] = jnp.sum(am, axis=1, keepdims=True)[None]
                ssq_ref[...] = jnp.sum(am * acc, axis=1, keepdims=True)[None]

    if relu:
        acc = jnp.maximum(acc, 0.0)
    if softmax:
        # softmax over channels == over the (small) sublane axis.
        z = acc - jnp.max(acc, axis=0, keepdims=True)
        e = jnp.exp(z)
        inv = pl.reciprocal(jnp.sum(e, axis=0, keepdims=True), approx=True)
        acc = e * inv

    o_ref[...] = acc.astype(o_ref.dtype)


def _bn_apply_kernel(*refs, nq, inv_m):
    """BatchNorm apply (from reduced sum / sumsq) fused with an nq-way elementwise
    max (2x2 MaxPool when nq=4) and ReLU.  Channel-major tiles; math in f32."""
    q_refs = refs[:nq]
    sum_ref, ssq_ref, g_ref, b_ref, o_ref = refs[nq:nq + 5]

    mean = sum_ref[...] * inv_m                       # (C, 1)
    var = ssq_ref[...] * inv_m - mean * mean          # biased variance (train mode)
    scale = g_ref[...] * jax.lax.rsqrt(var + BN_EPS)
    shift = b_ref[...] - mean * scale

    y = q_refs[0][...] * scale + shift
    for j in range(1, nq):
        y = jnp.maximum(y, q_refs[j][...] * scale + shift)
    o_ref[...] = jnp.maximum(y, 0.0).astype(o_ref.dtype)


# ----------------------------------------------------------------------------
# Op wrappers (pallas_call plumbing)
# ----------------------------------------------------------------------------
def conv_mm(a_list, w_list, bias, *, relu=False, softmax=False, stats=False,
            out_dtype=jnp.bfloat16):
    """Channel-major conv-as-matmul.

    a_list[j]: (Kj, M) bf16   (im2col^T, lanes = N*Ho*Wo)
    w_list[j]: (Cout, Kj) f32
    Returns padded slab (Cout, m_pad) [, sum (Cout,1) f32, sumsq (Cout,1) f32].
    Padded lanes hold finite junk (bias-only); callers crop at reshape boundaries.
    """
    cout = w_list[0].shape[0]
    m = a_list[0].shape[1]
    cap = 2048 if cout <= 8 else 1024      # bound f32 acc vreg pressure for big Cout
    tm, m_pad, grid_m = _plan_m(m, cap)

    args, in_specs = [], []
    flops = 0
    bytes_acc = cout * m_pad * jnp.dtype(out_dtype).itemsize + cout * 4
    for a, w in zip(a_list, w_list):
        k = a.shape[0]
        a_p = _pad_cols(a.astype(jnp.bfloat16), m_pad)      # im2col already bf16
        w_b = w.astype(jnp.bfloat16)
        args += [a_p, w_b]
        in_specs += [pl.BlockSpec((k, tm), lambda i: (0, i)),       # tiled A^T
                     pl.BlockSpec((cout, k), lambda i: (0, 0))]     # resident W^T
        flops += 2 * k * cout * m_pad
        bytes_acc += a_p.size * 2 + w_b.size * 2

    b2 = bias.reshape(cout, 1).astype(jnp.float32)
    args.append(b2)
    in_specs.append(pl.BlockSpec((cout, 1), lambda i: (0, 0)))      # resident bias

    out_shapes = [jax.ShapeDtypeStruct((cout, m_pad), out_dtype)]
    out_specs = [pl.BlockSpec((cout, tm), lambda i: (0, i))]        # lane-dense
    if stats:
        out_shapes += [jax.ShapeDtypeStruct((grid_m, cout, 1), jnp.float32)] * 2
        out_specs += [pl.BlockSpec((1, cout, 1), lambda i: (i, 0, 0))] * 2
        bytes_acc += 2 * grid_m * cout * 4

    kern = functools.partial(_conv_kernel, n_in=len(a_list), relu=relu,
                             softmax=softmax, emit_stats=stats,
                             m_valid=m, m_pad=m_pad, tm=tm)

    outs = pl.pallas_call(
        kern,
        out_shape=tuple(out_shapes),
        grid=(grid_m,),
        in_specs=in_specs,
        out_specs=tuple(out_specs),
        compiler_params=pltpu.CompilerParams(
            dimension_semantics=("parallel",),        # partial stats -> always parallel
            vmem_limit_bytes=VMEM_LIMIT_BYTES),
        cost_estimate=pl.CostEstimate(
            flops=int(flops),
            transcendentals=int(cout * m_pad) if softmax else 0,
            bytes_accessed=int(bytes_acc)),
    )(*args)

    if stats:
        slab, psum, pssq = outs
        return slab, jnp.sum(psum, axis=0), jnp.sum(pssq, axis=0)
    return outs[0]


def bn_apply(slabs, ssum, ssq, gamma, beta, *, m_count, out_dtype=jnp.bfloat16):
    """Apply BN (stats reduced over m_count conv outputs / channel), fused with the
    max over the provided slabs (4 pool quadrants or 1 slab) and ReLU.
    Accepts already-padded slabs; output keeps the padded width."""
    c, mq = slabs[0].shape
    tm, m_pad, grid_m = _plan_m(mq, 1024)

    args = [_pad_cols(q, m_pad) for q in slabs]
    in_specs = [pl.BlockSpec((c, tm), lambda i: (0, i)) for _ in slabs]
    for v in (ssum, ssq, gamma.reshape(c, 1), beta.reshape(c, 1)):
        args.append(v.astype(jnp.float32))
        in_specs.append(pl.BlockSpec((c, 1), lambda i: (0, 0)))     # resident

    out = pl.pallas_call(
        functools.partial(_bn_apply_kernel, nq=len(slabs), inv_m=1.0 / m_count),
        out_shape=jax.ShapeDtypeStruct((c, m_pad), out_dtype),
        grid=(grid_m,),
        in_specs=in_specs,
        out_specs=pl.BlockSpec((c, tm), lambda i: (0, i)),
        compiler_params=pltpu.CompilerParams(
            dimension_semantics=("parallel",),
            vmem_limit_bytes=VMEM_LIMIT_BYTES),
        cost_estimate=pl.CostEstimate(
            flops=int((3 * len(slabs) + 4) * c * m_pad),
            transcendentals=int(c),
            bytes_accessed=int((len(slabs) + 1) * c * m_pad * 2 + 4 * c * 4)),
    )(*args)
    return out


# ----------------------------------------------------------------------------
# JAX glue: patch gather (im2col^T, upsample fused), pooling quadrants
# TODO(synk): replace with in-kernel shifted-window tap accumulation to avoid the
#             K*K im2col HBM blowup at production resolutions.
# ----------------------------------------------------------------------------
def im2col_T(x, kh, kw, pad, upsample=False):
    """x: (C, N, H, W) channel-major (bf16).  Returns (A^T of shape
    (kh*kw*C, N*Ho*Wo), (Ho, Wo)).  Row order = (ky, kx, c) to match the prepared
    weight layout.  When upsample=True a nearest-2x upsample is fused into the
    gather (source index // 2)."""
    c, n, h, w = x.shape
    s = 2 if upsample else 1
    hin, win = h * s, w * s
    ho = hin + 2 * pad - kh + 1
    wo = win + 2 * pad - kw + 1
    taps = []
    for ky in range(kh):
        ys = jnp.arange(ho) + ky - pad
        yv = (ys >= 0) & (ys < hin)
        ysrc = jnp.clip(ys, 0, hin - 1) // s
        for kx in range(kw):
            xs = jnp.arange(wo) + kx - pad
            xv = (xs >= 0) & (xs < win)
            xsrc = jnp.clip(xs, 0, win - 1) // s
            t = jnp.take(x, ysrc, axis=2)
            t = jnp.take(t, xsrc, axis=3)                    # (C, N, Ho, Wo)
            mask = (yv[:, None] & xv[None, :]).astype(x.dtype)
            taps.append(t * mask)
    a = jnp.stack(taps, axis=0).reshape(kh * kw * c, n * ho * wo)
    return a, (ho, wo)


def pool_quads(x):
    """x: (C, N, H, W) -> four (C, N*(H//2)*(W//2)) quadrant slabs of a 2x2 pool."""
    c, n, h, w = x.shape
    return [x[:, :, dy::2, dx::2].reshape(c, n * (h // 2) * (w // 2))
            for dy in (0, 1) for dx in (0, 1)]


# ----------------------------------------------------------------------------
# Parameters: synthetic init (PyTorch layouts) + one-time preprocessing
# ----------------------------------------------------------------------------
def init_params(key, in_channels, out_channels, base):
    def conv_p(k, cout, cin, ks):
        k1, k2 = jax.random.split(k)
        return (0.1 * jax.random.normal(k1, (cout, cin, ks, ks), jnp.float32),
                0.1 * jax.random.normal(k2, (cout,), jnp.float32))

    def convT_p(k, cin, cout, ks):
        k1, k2 = jax.random.split(k)
        return (0.1 * jax.random.normal(k1, (cin, cout, ks, ks), jnp.float32),
                0.1 * jax.random.normal(k2, (cout,), jnp.float32))

    def bn_p(k, c):
        k1, k2 = jax.random.split(k)
        return (1.0 + 0.1 * jax.random.normal(k1, (c,), jnp.float32),
                0.1 * jax.random.normal(k2, (c,), jnp.float32))

    ks = jax.random.split(key, 12)
    return {
        "conv1": conv_p(ks[0], base, in_channels, 5),
        "bn1": bn_p(ks[1], base),
        "conv2": conv_p(ks[2], 2 * base, base, 3),
        "bn2": bn_p(ks[3], 2 * base),
        "conv0": conv_p(ks[4], 4 * base, 2 * base, 3),
        "upconv0": convT_p(ks[5], 4 * base, 2 * base, 3),
        "upconv1": convT_p(ks[6], 4 * base, base, 3),
        "bn3": bn_p(ks[7], base),
        "upconv2": convT_p(ks[8], 2 * base, base // 2, 5),
        "conv3": conv_p(ks[9], out_channels, base // 2, 1),
        "skip_conv1": conv_p(ks[10], base, base, 1),
        "skip_conv2": conv_p(ks[11], 2 * base, 2 * base, 1),
    }


def prepare_params(p):
    """Hoisted (once-per-model) weight preprocessing: ConvTranspose flip / channel
    swap, (Cout, K*K*Cin) matmul layout, and concat-splits."""
    def wt(w):                       # (Cout,Cin,KH,KW) -> (Cout, KH*KW*Cin)
        co, ci, kh, kw = w.shape
        return jnp.transpose(w, (0, 2, 3, 1)).reshape(co, kh * kw * ci)

    def tconv(w):                    # ConvTranspose (Cin,Cout,K,K) -> Conv (Cout,Cin,K,K)
        return jnp.transpose(w[:, :, ::-1, ::-1], (1, 0, 2, 3))

    def split_wt(w_conv, c0):        # split contraction over input channels
        return wt(w_conv[:, :c0]), wt(w_conv[:, c0:])

    base = p["conv1"][0].shape[0]
    prep = {
        "conv1": (wt(p["conv1"][0]), p["conv1"][1]),
        "bn1": p["bn1"],
        "conv2": (wt(p["conv2"][0]), p["conv2"][1]),
        "bn2": p["bn2"],
        "conv0": (wt(p["conv0"][0]), p["conv0"][1]),
        "upconv0": (wt(tconv(p["upconv0"][0])), p["upconv0"][1]),
        "bn3": p["bn3"],
        "conv3": (wt(p["conv3"][0]), p["conv3"][1]),
        "skip_conv1": (wt(p["skip_conv1"][0]), p["skip_conv1"][1]),
        "skip_conv2": (wt(p["skip_conv2"][0]), p["skip_conv2"][1]),
    }
    wu, ws = split_wt(tconv(p["upconv1"][0]), 2 * base)   # cat(upconv0_out, skip2)
    prep["upconv1"] = (wu, ws, p["upconv1"][1])
    wu, ws = split_wt(tconv(p["upconv2"][0]), base)       # cat(bn3_out, skip1)
    prep["upconv2"] = (wu, ws, p["upconv2"][1])
    return prep


# ----------------------------------------------------------------------------
# Forward pass (channel-major, bf16 activations internally)
# ----------------------------------------------------------------------------
def segmentation_model_forward(prep, x_nchw):
    n = x_nchw.shape[0]
    x = jnp.transpose(x_nchw, (1, 0, 2, 3)).astype(jnp.bfloat16)   # (C, N, H, W)

    # ---- x1 = relu(pool(bn1(conv1(x)))) : conv(5x5,p2) + parallel partial BN
    #      stats, then fused BN-apply + 2x2 maxpool + relu ----------------------
    w, b = prep["conv1"]; g, be = prep["bn1"]
    a, (ho, wo) = im2col_T(x, 5, 5, 2)
    m = n * ho * wo
    raw, ss, sq = conv_mm([a], [w], b, stats=True)
    raw = _crop(raw, m).reshape(-1, n, ho, wo)
    x1 = bn_apply(pool_quads(raw), ss, sq, g, be, m_count=m)
    m1 = n * (ho // 2) * (wo // 2)
    x1 = _crop(x1, m1).reshape(-1, n, ho // 2, wo // 2)

    # ---- x2 = relu(pool(bn2(conv2(x1)))) : conv(3x3,p2) -----------------------
    w, b = prep["conv2"]; g, be = prep["bn2"]
    a, (ho, wo) = im2col_T(x1, 3, 3, 2)
    m = n * ho * wo
    raw, ss, sq = conv_mm([a], [w], b, stats=True)
    raw = _crop(raw, m).reshape(-1, n, ho, wo)
    x2 = bn_apply(pool_quads(raw), ss, sq, g, be, m_count=m)
    m2 = n * (ho // 2) * (wo // 2)
    x2 = _crop(x2, m2).reshape(-1, n, ho // 2, wo // 2)

    # ---- bottleneck: relu(conv0(3x3,p2)); relu(upconv0 == conv(3x3, eff p0)) --
    w, b = prep["conv0"]
    a, (ho, wo) = im2col_T(x2, 3, 3, 2)
    u = _crop(conv_mm([a], [w], b, relu=True), n * ho * wo).reshape(-1, n, ho, wo)
    w, b = prep["upconv0"]
    a, (ho, wo) = im2col_T(u, 3, 3, 0)
    u = _crop(conv_mm([a], [w], b, relu=True), n * ho * wo).reshape(-1, n, ho, wo)

    # ---- skip_conv2 (1x1 conv on x2) ------------------------------------------
    w, b = prep["skip_conv2"]
    c2, _, h2, w2_ = x2.shape
    s2 = _crop(conv_mm([x2.reshape(c2, n * h2 * w2_)], [w], b),
               n * h2 * w2_).reshape(-1, n, h2, w2_)

    # ---- relu(bn3(upconv1(upsample(cat(u, s2))))) : concat folded into two
    #      accumulating matmuls; nearest-2x upsample fused into the gather;
    #      padded slab flows straight into bn_apply (no slice / re-pad) ---------
    wu, ws, b = prep["upconv1"]; g, be = prep["bn3"]
    au, (ho, wo) = im2col_T(u, 3, 3, 0, upsample=True)
    asid, _ = im2col_T(s2, 3, 3, 0, upsample=True)
    m = n * ho * wo
    raw, ss, sq = conv_mm([au, asid], [wu, ws], b, stats=True)
    d = bn_apply([raw], ss, sq, g, be, m_count=m)
    d = _crop(d, m).reshape(-1, n, ho, wo)

    # ---- skip_conv1 (1x1 conv on x1) ------------------------------------------
    w, b = prep["skip_conv1"]
    c1, _, h1, w1_ = x1.shape
    s1 = _crop(conv_mm([x1.reshape(c1, n * h1 * w1_)], [w], b),
               n * h1 * w1_).reshape(-1, n, h1, w1_)

    # ---- relu(upconv2(upsample(cat(d, s1)))) : conv(5x5, eff p2), two matmuls -
    wu, ws, b = prep["upconv2"]
    au, (ho, wo) = im2col_T(d, 5, 5, 2, upsample=True)
    asid, _ = im2col_T(s1, 5, 5, 2, upsample=True)
    dm = n * ho * wo
    d_slab = conv_mm([au, asid], [wu, ws], b, relu=True)       # padded (C, m_pad)

    # ---- softmax(conv3(1x1), dim=channel) : fused into the final matmul kernel;
    #      consumes the padded slab directly (1x1 conv, same M) -----------------
    w, b = prep["conv3"]
    y = conv_mm([d_slab], [w], b, softmax=True, out_dtype=jnp.float32)
    y = _crop(y, dm).reshape(-1, n, ho, wo)
    return jnp.transpose(y, (1, 0, 2, 3))                      # CNHW -> NCHW


if __name__ == "__main__":
    key = jax.random.PRNGKey(0)
    pkey, xkey = jax.random.split(key)

    in_channels, out_channels, base = 4, 3, 8
    params = init_params(pkey, in_channels, out_channels, base)
    prep = prepare_params(params)      # hoisted weight preprocessing (once)
    x = jax.random.normal(xkey, (2, in_channels, 16, 16), jnp.float32)

    fwd = jax.jit(segmentation_model_forward)
    y = fwd(prep, x)
    jax.block_until_ready(y)

    assert y.shape == (2, out_channels, 16, 16), y.shape
    # channel softmax sums to 1 (tolerance covers bf16 path + approx reciprocal)
    assert jnp.allclose(jnp.sum(y, axis=1), 1.0, atol=5e-3)
    assert bool(jnp.all(jnp.isfinite(y)))
    print("KERNEL_OK")
</pallas_src>

<mosaic_0001>
module attributes {stable_mosaic.version = 11 : i64} {
  func.func @_conv_kernel(%arg0: i32, %arg1: memref<100x512xbf16, #tpu.memory_space<vmem>>, %arg2: memref<8x100xbf16, #tpu.memory_space<vmem>>, %arg3: memref<8x1xf32, #tpu.memory_space<vmem>>, %arg4: memref<8x512xbf16, #tpu.memory_space<vmem>>, %arg5: memref<1x8x1xf32, #tpu.memory_space<vmem>>, %arg6: memref<1x8x1xf32, #tpu.memory_space<vmem>>) attributes {dimension_semantics = [#tpu.dimension_semantics<parallel>], iteration_bounds = array<i64: 1>, scalar_prefetch = 0 : i64, scratch_operands = 0 : i64, tpu.core_type = #tpu.core_type<tc>, window_params = [{transform_indices = @transform_0, window_bounds = array<i64: 100, 512>}, {pipeline_mode = #tpu.pipeline_mode<synchronous>, transform_indices = @transform_1, window_bounds = array<i64: 8, 100>}, {pipeline_mode = #tpu.pipeline_mode<synchronous>, transform_indices = @transform_2, window_bounds = array<i64: 8, 1>}, {transform_indices = @transform_3, window_bounds = array<i64: 8, 512>}, {transform_indices = @transform_4, window_bounds = array<i64: 1, 8, 1>}, {transform_indices = @transform_5, window_bounds = array<i64: 1, 8, 1>}]} {
    %c0 = arith.constant 0 : index
    %c0_0 = arith.constant 0 : index
    %0 = vector.load %arg2[%c0, %c0_0] : memref<8x100xbf16, #tpu.memory_space<vmem>>, vector<8x100xbf16>
    %c0_1 = arith.constant 0 : index
    %c0_2 = arith.constant 0 : index
    %1 = vector.load %arg1[%c0_1, %c0_2] : memref<100x512xbf16, #tpu.memory_space<vmem>>, vector<100x512xbf16>
    %cst = arith.constant dense<0.000000e+00> : vector<8x512xf32>
    %2 = tpu.matmul %0, %1, %cst {dimension_numbers = #tpu.dot_dimension_numbers<[1], [0], [0], [1], [0, 0, 1, 1], [], []>} : vector<8x100xbf16>, vector<100x512xbf16>, vector<8x512xf32> -> vector<8x512xf32>
    %c0_3 = arith.constant 0 : index
    %c0_4 = arith.constant 0 : index
    %3 = vector.load %arg3[%c0_3, %c0_4] : memref<8x1xf32, #tpu.memory_space<vmem>>, vector<8x1xf32>
    %4 = vector.broadcast %3 : vector<8x1xf32> to vector<8x512xf32>
    %5 = arith.addf %2, %4 : vector<8x512xf32>
    %cst_5 = arith.constant dense<0.000000e+00> : vector<8xf32>
    %6 = vector.multi_reduction <add>, %5, %cst_5 [1] : vector<8x512xf32> to vector<8xf32>
    %7 = vector.shape_cast %6 : vector<8xf32> to vector<8x1xf32>
    %8 = vector.shape_cast %7 : vector<8x1xf32> to vector<1x8x1xf32>
    %c0_6 = arith.constant 0 : index
    %c0_7 = arith.constant 0 : index
    %c0_8 = arith.constant 0 : index
    %9 = vector.load %arg5[%c0_6, %c0_7, %c0_8] : memref<1x8x1xf32, #tpu.memory_space<vmem>>, vector<1x8x1xf32>
    tpu.vector_store %arg5[%c0_6, %c0_7, %c0_8], %8 {strides = array<i32>} : memref<1x8x1xf32, #tpu.memory_space<vmem>>, vector<1x8x1xf32>,
    %10 = arith.mulf %5, %5 : vector<8x512xf32>
    %cst_9 = arith.constant dense<0.000000e+00> : vector<8xf32>
    %11 = vector.multi_reduction <add>, %10, %cst_9 [1] : vector<8x512xf32> to vector<8xf32>
    %12 = vector.shape_cast %11 : vector<8xf32> to vector<8x1xf32>
    %13 = vector.shape_cast %12 : vector<8x1xf32> to vector<1x8x1xf32>
    %c0_10 = arith.constant 0 : index
    %c0_11 = arith.constant 0 : index
    %c0_12 = arith.constant 0 : index
    %14 = vector.load %arg6[%c0_10, %c0_11, %c0_12] : memref<1x8x1xf32, #tpu.memory_space<vmem>>, vector<1x8x1xf32>
    tpu.vector_store %arg6[%c0_10, %c0_11, %c0_12], %13 {strides = array<i32>} : memref<1x8x1xf32, #tpu.memory_space<vmem>>, vector<1x8x1xf32>,
    %15 = arith.truncf %5 : vector<8x512xf32> to vector<8x512xbf16>
    %c0_13 = arith.constant 0 : index
    %c0_14 = arith.constant 0 : index
    %16 = vector.load %arg4[%c0_13, %c0_14] : memref<8x512xbf16, #tpu.memory_space<vmem>>, vector<8x512xbf16>
    tpu.vector_store %arg4[%c0_13, %c0_14], %15 {strides = array<i32>} : memref<8x512xbf16, #tpu.memory_space<vmem>>, vector<8x512xbf16>,
    return
  }
  func.func @transform_0(%arg0: i32) -> (i32, i32) {
    %c0_i32 = arith.constant 0 : i32
    %c0_i32_0 = arith.constant 0 : i32
    return %c0_i32, %arg0 : i32, i32
  }
  func.func @transform_1(%arg0: i32) -> (i32, i32) {
    %c0_i32 = arith.constant 0 : i32
    %c0_i32_0 = arith.constant 0 : i32
    %c0_i32_1 = arith.constant 0 : i32
    return %c0_i32, %c0_i32_0 : i32, i32
  }
  func.func @transform_2(%arg0: i32) -> (i32, i32) {
    %c0_i32 = arith.constant 0 : i32
    %c0_i32_0 = arith.constant 0 : i32
    %c0_i32_1 = arith.constant 0 : i32
    return %c0_i32, %c0_i32_0 : i32, i32
  }
  func.func @transform_3(%arg0: i32) -> (i32, i32) {
    %c0_i32 = arith.constant 0 : i32
    %c0_i32_0 = arith.constant 0 : i32
    return %c0_i32, %arg0 : i32, i32
  }
  func.func @transform_4(%arg0: i32) -> (i32, i32, i32) {
    %c0_i32 = arith.constant 0 : i32
    %c0_i32_0 = arith.constant 0 : i32
    %c0_i32_1 = arith.constant 0 : i32
    return %arg0, %c0_i32, %c0_i32_0 : i32, i32, i32
  }
  func.func @transform_5(%arg0: i32) -> (i32, i32, i32) {
    %c0_i32 = arith.constant 0 : i32
    %c0_i32_0 = arith.constant 0 : i32
    %c0_i32_1 = arith.constant 0 : i32
    return %arg0, %c0_i32, %c0_i32_0 : i32, i32, i32
  }
}

module attributes {stable_mosaic.version = 11 : i64} {
  func.func @_bn_apply_kernel(%arg0: i32, %arg1: memref<8x128xbf16, #tpu.memory_space<vmem>>, %arg2: memref<8x128xbf16, #tpu.memory_space<vmem>>, %arg3: memref<8x128xbf16, #tpu.memory_space<vmem>>, %arg4: memref<8x128xbf16, #tpu.memory_space<vmem>>, %arg5: memref<8x1xf32, #tpu.memory_space<vmem>>, %arg6: memref<8x1xf32, #tpu.memory_space<vmem>>, %arg7: memref<8x1xf32, #tpu.memory_space<vmem>>, %arg8: memref<8x1xf32, #tpu.memory_space<vmem>>, %arg9: memref<8x128xbf16, #tpu.memory_space<vmem>>) attributes {dimension_semantics = [#tpu.dimension_semantics<parallel>], iteration_bounds = array<i64: 1>, scalar_prefetch = 0 : i64, scratch_operands = 0 : i64, tpu.core_type = #tpu.core_type<tc>, window_params = [{transform_indices = @transform_0, window_bounds = array<i64: 8, 128>}, {transform_indices = @transform_1, window_bounds = array<i64: 8, 128>}, {transform_indices = @transform_2, window_bounds = array<i64: 8, 128>}, {transform_indices = @transform_3, window_bounds = array<i64: 8, 128>}, {pipeline_mode = #tpu.pipeline_mode<synchronous>, transform_indices = @transform_4, window_bounds = array<i64: 8, 1>}, {pipeline_mode = #tpu.pipeline_mode<synchronous>, transform_indices = @transform_5, window_bounds = array<i64: 8, 1>}, {pipeline_mode = #tpu.pipeline_mode<synchronous>, transform_indices = @transform_6, window_bounds = array<i64: 8, 1>}, {pipeline_mode = #tpu.pipeline_mode<synchronous>, transform_indices = @transform_7, window_bounds = array<i64: 8, 1>}, {transform_indices = @transform_8, window_bounds = array<i64: 8, 128>}]} {
    %c0 = arith.constant 0 : index
    %c0_0 = arith.constant 0 : index
    %0 = vector.load %arg5[%c0, %c0_0] : memref<8x1xf32, #tpu.memory_space<vmem>>, vector<8x1xf32>
    %cst = arith.constant 0.001953125 : f32
    %1 = vector.broadcast %cst : f32 to vector<8x1xf32>
    %2 = arith.mulf %0, %1 : vector<8x1xf32>
    %c0_1 = arith.constant 0 : index
    %c0_2 = arith.constant 0 : index
    %3 = vector.load %arg6[%c0_1, %c0_2] : memref<8x1xf32, #tpu.memory_space<vmem>>, vector<8x1xf32>
    %cst_3 = arith.constant 0.001953125 : f32
    %4 = vector.broadcast %cst_3 : f32 to vector<8x1xf32>
    %5 = arith.mulf %3, %4 : vector<8x1xf32>
    %6 = arith.mulf %2, %2 : vector<8x1xf32>
    %7 = arith.subf %5, %6 : vector<8x1xf32>
    %c0_4 = arith.constant 0 : index
    %c0_5 = arith.constant 0 : index
    %8 = vector.load %arg7[%c0_4, %c0_5] : memref<8x1xf32, #tpu.memory_space<vmem>>, vector<8x1xf32>
    %cst_6 = arith.constant 9.99999974E-6 : f32
    %9 = vector.broadcast %cst_6 : f32 to vector<8x1xf32>
    %10 = arith.addf %7, %9 : vector<8x1xf32>
    %11 = math.rsqrt %10 : vector<8x1xf32>
    %12 = arith.mulf %8, %11 : vector<8x1xf32>
    %c0_7 = arith.constant 0 : index
    %c0_8 = arith.constant 0 : index
    %13 = vector.load %arg8[%c0_7, %c0_8] : memref<8x1xf32, #tpu.memory_space<vmem>>, vector<8x1xf32>
    %14 = arith.mulf %2, %12 : vector<8x1xf32>
    %15 = arith.subf %13, %14 : vector<8x1xf32>
    %c0_9 = arith.constant 0 : index
    %c0_10 = arith.constant 0 : index
    %16 = vector.load %arg1[%c0_9, %c0_10] : memref<8x128xbf16, #tpu.memory_space<vmem>>, vector<8x128xbf16>
    %17 = arith.extf %16 : vector<8x128xbf16> to vector<8x128xf32>
    %18 = vector.broadcast %12 : vector<8x1xf32> to vector<8x128xf32>
    %19 = arith.mulf %17, %18 : vector<8x128xf32>
    %20 = vector.broadcast %15 : vector<8x1xf32> to vector<8x128xf32>
    %21 = arith.addf %19, %20 : vector<8x128xf32>
    %c0_11 = arith.constant 0 : index
    %c0_12 = arith.constant 0 : index
    %22 = vector.load %arg2[%c0_11, %c0_12] : memref<8x128xbf16, #tpu.memory_space<vmem>>, vector<8x128xbf16>
    %23 = arith.extf %22 : vector<8x128xbf16> to vector<8x128xf32>
    %24 = vector.broadcast %12 : vector<8x1xf32> to vector<8x128xf32>
    %25 = arith.mulf %23, %24 : vector<8x128xf32>
    %26 = vector.broadcast %15 : vector<8x1xf32> to vector<8x128xf32>
    %27 = arith.addf %25, %26 : vector<8x128xf32>
    %28 = arith.maximumf %21, %27 : vector<8x128xf32>
    %c0_13 = arith.constant 0 : index
    %c0_14 = arith.constant 0 : index
    %29 = vector.load %arg3[%c0_13, %c0_14] : memref<8x128xbf16, #tpu.memory_space<vmem>>, vector<8x128xbf16>
    %30 = arith.extf %29 : vector<8x128xbf16> to vector<8x128xf32>
    %31 = vector.broadcast %12 : vector<8x1xf32> to vector<8x128xf32>
    %32 = arith.mulf %30, %31 : vector<8x128xf32>
    %33 = vector.broadcast %15 : vector<8x1xf32> to vector<8x128xf32>
    %34 = arith.addf %32, %33 : vector<8x128xf32>
    %35 = arith.maximumf %28, %34 : vector<8x128xf32>
    %c0_15 = arith.constant 0 : index
    %c0_16 = arith.constant 0 : index
    %36 = vector.load %arg4[%c0_15, %c0_16] : memref<8x128xbf16, #tpu.memory_space<vmem>>, vector<8x128xbf16>
    %37 = arith.extf %36 : vector<8x128xbf16> to vector<8x128xf32>
    %38 = vector.broadcast %12 : vector<8x1xf32> to vector<8x128xf32>
    %39 = arith.mulf %37, %38 : vector<8x128xf32>
    %40 = vector.broadcast %15 : vector<8x1xf32> to vector<8x128xf32>
    %41 = arith.addf %39, %40 : vector<8x128xf32>
    %42 = arith.maximumf %35, %41 : vector<8x128xf32>
    %cst_17 = arith.constant 0.000000e+00 : f32
    %43 = vector.broadcast %cst_17 : f32 to vector<8x128xf32>
    %44 = arith.maximumf %42, %43 : vector<8x128xf32>
    %45 = arith.truncf %44 : vector<8x128xf32> to vector<8x128xbf16>
    %c0_18 = arith.constant 0 : index
    %c0_19 = arith.constant 0 : index
    %46 = vector.load %arg9[%c0_18, %c0_19] : memref<8x128xbf16, #tpu.memory_space<vmem>>, vector<8x128xbf16>
    tpu.vector_store %arg9[%c0_18, %c0_19], %45 {strides = array<i32>} : memref<8x128xbf16, #tpu.memory_space<vmem>>, vector<8x128xbf16>,
    return
  }
  func.func @transform_0(%arg0: i32) -> (i32, i32) {
    %c0_i32 = arith.constant 0 : i32
    %c0_i32_0 = arith.constant 0 : i32
    return %c0_i32, %arg0 : i32, i32
  }
  func.func @transform_1(%arg0: i32) -> (i32, i32) {
    %c0_i32 = arith.constant 0 : i32
    %c0_i32_0 = arith.constant 0 : i32
    return %c0_i32, %arg0 : i32, i32
  }
  func.func @transform_2(%arg0: i32) -> (i32, i32) {
    %c0_i32 = arith.constant 0 : i32
    %c0_i32_0 = arith.constant 0 : i32
    return %c0_i32, %arg0 : i32, i32
  }
  func.func @transform_3(%arg0: i32) -> (i32, i32) {
    %c0_i32 = arith.constant 0 : i32
    %c0_i32_0 = arith.constant 0 : i32
    return %c0_i32, %arg0 : i32, i32
  }
  func.func @transform_4(%arg0: i32) -> (i32, i32) {
    %c0_i32 = arith.constant 0 : i32
    %c0_i32_0 = arith.constant 0 : i32
    %c0_i32_1 = arith.constant 0 : i32
    return %c0_i32, %c0_i32_0 : i32, i32
  }
  func.func @transform_5(%arg0: i32) -> (i32, i32) {
    %c0_i32 = arith.constant 0 : i32
    %c0_i32_0 = arith.constant 0 : i32
    %c0_i32_1 = arith.constant 0 : i32
    return %c0_i32, %c0_i32_0 : i32, i32
  }
  func.func @transform_6(%arg0: i32) -> (i32, i32) {
    %c0_i32 = arith.constant 0 : i32
    %c0_i32_0 = arith.constant 0 : i32
    %c0_i32_1 = arith.constant 0 : i32
    return %c0_i32, %c0_i32_0 : i32, i32
  }
  func.func @transform_7(%arg0: i32) -> (i32, i32) {
    %c0_i32 = arith.constant 0 : i32
    %c0_i32_0 = arith.constant 0 : i32
    %c0_i32_1 = arith.constant 0 : i32
    return %c0_i32, %c0_i32_0 : i32, i32
  }
  func.func @transform_8(%arg0: i32) -> (i32, i32) {
    %c0_i32 = arith.constant 0 : i32
    %c0_i32_0 = arith.constant 0 : i32
    return %c0_i32, %arg0 : i32, i32
  }
}

module attributes {stable_mosaic.version = 11 : i64} {
  func.func @_conv_kernel(%arg0: i32, %arg1: memref<8x128xbf16, #tpu.memory_space<vmem>>, %arg2: memref<8x8xbf16, #tpu.memory_space<vmem>>, %arg3: memref<8x1xf32, #tpu.memory_space<vmem>>, %arg4: memref<8x128xbf16, #tpu.memory_space<vmem>>) attributes {dimension_semantics = [#tpu.dimension_semantics<parallel>], iteration_bounds = array<i64: 1>, scalar_prefetch = 0 : i64, scratch_operands = 0 : i64, tpu.core_type = #tpu.core_type<tc>, window_params = [{transform_indices = @transform_0, window_bounds = array<i64: 8, 128>}, {pipeline_mode = #tpu.pipeline_mode<synchronous>, transform_indices = @transform_1, window_bounds = array<i64: 8, 8>}, {pipeline_mode = #tpu.pipeline_mode<synchronous>, transform_indices = @transform_2, window_bounds = array<i64: 8, 1>}, {transform_indices = @transform_3, window_bounds = array<i64: 8, 128>}]} {
    %c0 = arith.constant 0 : index
    %c0_0 = arith.constant 0 : index
    %0 = vector.load %arg2[%c0, %c0_0] : memref<8x8xbf16, #tpu.memory_space<vmem>>, vector<8x8xbf16>
    %c0_1 = arith.constant 0 : index
    %c0_2 = arith.constant 0 : index
    %1 = vector.load %arg1[%c0_1, %c0_2] : memref<8x128xbf16, #tpu.memory_space<vmem>>, vector<8x128xbf16>
    %cst = arith.constant dense<0.000000e+00> : vector<8x128xf32>
    %2 = tpu.matmul %0, %1, %cst {dimension_numbers = #tpu.dot_dimension_numbers<[1], [0], [0], [1], [0, 0, 1, 1], [], []>} : vector<8x8xbf16>, vector<8x128xbf16>, vector<8x128xf32> -> vector<8x128xf32>
    %c0_3 = arith.constant 0 : index
    %c0_4 = arith.constant 0 : index
    %3 = vector.load %arg3[%c0_3, %c0_4] : memref<8x1xf32, #tpu.memory_space<vmem>>, vector<8x1xf32>
    %4 = vector.broadcast %3 : vector<8x1xf32> to vector<8x128xf32>
    %5 = arith.addf %2, %4 : vector<8x128xf32>
    %6 = arith.truncf %5 : vector<8x128xf32> to vector<8x128xbf16>
    %c0_5 = arith.constant 0 : index
    %c0_6 = arith.constant 0 : index
    %7 = vector.load %arg4[%c0_5, %c0_6] : memref<8x128xbf16, #tpu.memory_space<vmem>>, vector<8x128xbf16>
    tpu.vector_store %arg4[%c0_5, %c0_6], %6 {strides = array<i32>} : memref<8x128xbf16, #tpu.memory_space<vmem>>, vector<8x128xbf16>,
    return
  }
  func.func @transform_0(%arg0: i32) -> (i32, i32) {
    %c0_i32 = arith.constant 0 : i32
    %c0_i32_0 = arith.constant 0 : i32
    return %c0_i32, %arg0 : i32, i32
  }
  func.func @transform_1(%arg0: i32) -> (i32, i32) {
    %c0_i32 = arith.constant 0 : i32
    %c0_i32_0 = arith.constant 0 : i32
    %c0_i32_1 = arith.constant 0 : i32
    return %c0_i32, %c0_i32_0 : i32, i32
  }
  func.func @transform_2(%arg0: i32) -> (i32, i32) {
    %c0_i32 = arith.constant 0 : i32
    %c0_i32_0 = arith.constant 0 : i32
    %c0_i32_1 = arith.constant 0 : i32
    return %c0_i32, %c0_i32_0 : i32, i32
  }
  func.func @transform_3(%arg0: i32) -> (i32, i32) {
    %c0_i32 = arith.constant 0 : i32
    %c0_i32_0 = arith.constant 0 : i32
    return %c0_i32, %arg0 : i32, i32
  }
}

module attributes {stable_mosaic.version = 11 : i64} {
  func.func @_conv_kernel(%arg0: i32, %arg1: memref<72x256xbf16, #tpu.memory_space<vmem>>, %arg2: memref<16x72xbf16, #tpu.memory_space<vmem>>, %arg3: memref<16x1xf32, #tpu.memory_space<vmem>>, %arg4: memref<16x256xbf16, #tpu.memory_space<vmem>>, %arg5: memref<1x16x1xf32, #tpu.memory_space<vmem>>, %arg6: memref<1x16x1xf32, #tpu.memory_space<vmem>>) attributes {dimension_semantics = [#tpu.dimension_semantics<parallel>], iteration_bounds = array<i64: 1>, scalar_prefetch = 0 : i64, scratch_operands = 0 : i64, tpu.core_type = #tpu.core_type<tc>, window_params = [{transform_indices = @transform_0, window_bounds = array<i64: 72, 256>}, {pipeline_mode = #tpu.pipeline_mode<synchronous>, transform_indices = @transform_1, window_bounds = array<i64: 16, 72>}, {pipeline_mode = #tpu.pipeline_mode<synchronous>, transform_indices = @transform_2, window_bounds = array<i64: 16, 1>}, {transform_indices = @transform_3, window_bounds = array<i64: 16, 256>}, {transform_indices = @transform_4, window_bounds = array<i64: 1, 16, 1>}, {transform_indices = @transform_5, window_bounds = array<i64: 1, 16, 1>}]} {
    %c0 = arith.constant 0 : index
    %c0_0 = arith.constant 0 : index
    %0 = vector.load %arg2[%c0, %c0_0] : memref<16x72xbf16, #tpu.memory_space<vmem>>, vector<16x72xbf16>
    %c0_1 = arith.constant 0 : index
    %c0_2 = arith.constant 0 : index
    %1 = vector.load %arg1[%c0_1, %c0_2] : memref<72x256xbf16, #tpu.memory_space<vmem>>, vector<72x256xbf16>
    %cst = arith.constant dense<0.000000e+00> : vector<16x256xf32>
    %2 = tpu.matmul %0, %1, %cst {dimension_numbers = #tpu.dot_dimension_numbers<[1], [0], [0], [1], [0, 0, 1, 1], [], []>} : vector<16x72xbf16>, vector<72x256xbf16>, vector<16x256xf32> -> vector<16x256xf32>
    %c0_3 = arith.constant 0 : index
    %c0_4 = arith.constant 0 : index
    %3 = vector.load %arg3[%c0_3, %c0_4] : memref<16x1xf32, #tpu.memory_space<vmem>>, vector<16x1xf32>
    %4 = vector.broadcast %3 : vector<16x1xf32> to vector<16x256xf32>
    %5 = arith.addf %2, %4 : vector<16x256xf32>
    %c0_i32 = arith.constant 0 : i32
    %6 = arith.cmpi ne, %arg0, %c0_i32 : i32
    %7 = arith.extui %6 : i1 to i32
    %c0_i32_5 = arith.constant 0 : i32
    %8 = arith.cmpi ne, %7, %c0_i32_5 : i32
    scf.if %8 {
      %cst_10 = arith.constant dense<0.000000e+00> : vector<16xf32>
      %14 = vector.multi_reduction <add>, %5, %cst_10 [1] : vector<16x256xf32> to vector<16xf32>
      %15 = vector.shape_cast %14 : vector<16xf32> to vector<16x1xf32>
      %16 = vector.shape_cast %15 : vector<16x1xf32> to vector<1x16x1xf32>
      %c0_11 = arith.constant 0 : index
      %c0_12 = arith.constant 0 : index
      %c0_13 = arith.constant 0 : index
      %17 = vector.load %arg5[%c0_11, %c0_12, %c0_13] : memref<1x16x1xf32, #tpu.memory_space<vmem>>, vector<1x16x1xf32>
      tpu.vector_store %arg5[%c0_11, %c0_12, %c0_13], %16 {strides = array<i32>} : memref<1x16x1xf32, #tpu.memory_space<vmem>>, vector<1x16x1xf32>,
      %18 = arith.mulf %5, %5 : vector<16x256xf32>
      %cst_14 = arith.constant dense<0.000000e+00> : vector<16xf32>
      %19 = vector.multi_reduction <add>, %18, %cst_14 [1] : vector<16x256xf32> to vector<16xf32>
      %20 = vector.shape_cast %19 : vector<16xf32> to vector<16x1xf32>
      %21 = vector.shape_cast %20 : vector<16x1xf32> to vector<1x16x1xf32>
      %c0_15 = arith.constant 0 : index
      %c0_16 = arith.constant 0 : index
      %c0_17 = arith.constant 0 : index
      %22 = vector.load %arg6[%c0_15, %c0_16, %c0_17] : memref<1x16x1xf32, #tpu.memory_space<vmem>>, vector<1x16x1xf32>
      tpu.vector_store %arg6[%c0_15, %c0_16, %c0_17], %21 {strides = array<i32>} : memref<1x16x1xf32, #tpu.memory_space<vmem>>, vector<1x16x1xf32>,
    } else {
    }
    %c0_i32_6 = arith.constant 0 : i32
    %9 = arith.cmpi eq, %arg0, %c0_i32_6 : i32
    %10 = arith.extui %9 : i1 to i32
    %c0_i32_7 = arith.constant 0 : i32
    %11 = arith.cmpi ne, %10, %c0_i32_7 : i32
    scf.if %11 {
      %c256_i32 = arith.constant 256 : i32
      %14 = arith.muli %arg0, %c256_i32 : i32
      %15 = tpu.iota {dimensions = array<i32: 1>} : vector<16x256xi32>
      %16 = vector.broadcast %14 : i32 to vector<16x256xi32>
      %17 = arith.addi %16, %15 : vector<16x256xi32>
      %c200_i32 = arith.constant 200 : i32
      %18 = vector.broadcast %c200_i32 : i32 to vector<16x256xi32>
      %19 = arith.cmpi slt, %17, %18 : vector<16x256xi32>
      %20 = arith.extui %19 : vector<16x256xi1> to vector<16x256xi32>
      %21 = arith.sitofp %20 : vector<16x256xi32> to vector<16x256xf32>
      %22 = arith.mulf %5, %21 : vector<16x256xf32>
      %cst_10 = arith.constant dense<0.000000e+00> : vector<16xf32>
      %23 = vector.multi_reduction <add>, %22, %cst_10 [1] : vector<16x256xf32> to vector<16xf32>
      %24 = vector.shape_cast %23 : vector<16xf32> to vector<16x1xf32>
      %25 = vector.shape_cast %24 : vector<16x1xf32> to vector<1x16x1xf32>
      %c0_11 = arith.constant 0 : index
      %c0_12 = arith.constant 0 : index
      %c0_13 = arith.constant 0 : index
      %26 = vector.load %arg5[%c0_11, %c0_12, %c0_13] : memref<1x16x1xf32, #tpu.memory_space<vmem>>, vector<1x16x1xf32>
      tpu.vector_store %arg5[%c0_11, %c0_12, %c0_13], %25 {strides = array<i32>} : memref<1x16x1xf32, #tpu.memory_space<vmem>>, vector<1x16x1xf32>,
      %27 = arith.mulf %22, %5 : vector<16x256xf32>
      %cst_14 = arith.constant dense<0.000000e+00> : vector<16xf32>
      %28 = vector.multi_reduction <add>, %27, %cst_14 [1] : vector<16x256xf32> to vector<16xf32>
      %29 = vector.shape_cast %28 : vector<16xf32> to vector<16x1xf32>
      %30 = vector.shape_cast %29 : vector<16x1xf32> to vector<1x16x1xf32>
      %c0_15 = arith.constant 0 : index
      %c0_16 = arith.constant 0 : index
      %c0_17 = arith.constant 0 : index
      %31 = vector.load %arg6[%c0_15, %c0_16, %c0_17] : memref<1x16x1xf32, #tpu.memory_space<vmem>>, vector<1x16x1xf32>
      tpu.vector_store %arg6[%c0_15, %c0_16, %c0_17], %30 {strides = array<i32>} : memref<1x16x1xf32, #tpu.memory_space<vmem>>, vector<1x16x1xf32>,
    } else {
    }
    %12 = arith.truncf %5 : vector<16x256xf32> to vector<16x256xbf16>
    %c0_8 = arith.constant 0 : index
    %c0_9 = arith.constant 0 : index
    %13 = vector.load %arg4[%c0_8, %c0_9] : memref<16x256xbf16, #tpu.memory_space<vmem>>, vector<16x256xbf16>
    tpu.vector_store %arg4[%c0_8, %c0_9], %12 {strides = array<i32>} : memref<16x256xbf16, #tpu.memory_space<vmem>>, vector<16x256xbf16>,
    return
  }
  func.func @transform_0(%arg0: i32) -> (i32, i32) {
    %c0_i32 = arith.constant 0 : i32
    %c0_i32_0 = arith.constant 0 : i32
    return %c0_i32, %arg0 : i32, i32
  }
  func.func @transform_1(%arg0: i32) -> (i32, i32) {
    %c0_i32 = arith.constant 0 : i32
    %c0_i32_0 = arith.constant 0 : i32
    %c0_i32_1 = arith.constant 0 : i32
    return %c0_i32, %c0_i32_0 : i32, i32
  }
  func.func @transform_2(%arg0: i32) -> (i32, i32) {
    %c0_i32 = arith.constant 0 : i32
    %c0_i32_0 = arith.constant 0 : i32
    %c0_i32_1 = arith.constant 0 : i32
    return %c0_i32, %c0_i32_0 : i32, i32
  }
  func.func @transform_3(%arg0: i32) -> (i32, i32) {
    %c0_i32 = arith.constant 0 : i32
    %c0_i32_0 = arith.constant 0 : i32
    return %c0_i32, %arg0 : i32, i32
  }
  func.func @transform_4(%arg0: i32) -> (i32, i32, i32) {
    %c0_i32 = arith.constant 0 : i32
    %c0_i32_0 = arith.constant 0 : i32
    %c0_i32_1 = arith.constant 0 : i32
    return %arg0, %c0_i32, %c0_i32_0 : i32, i32, i32
  }
  func.func @transform_5(%arg0: i32) -> (i32, i32, i32) {
    %c0_i32 = arith.constant 0 : i32
    %c0_i32_0 = arith.constant 0 : i32
    %c0_i32_1 = arith.constant 0 : i32
    return %arg0, %c0_i32, %c0_i32_0 : i32, i32, i32
  }
}

module attributes {stable_mosaic.version = 11 : i64} {
  func.func @_bn_apply_kernel(%arg0: i32, %arg1: memref<16x128xbf16, #tpu.memory_space<vmem>>, %arg2: memref<16x128xbf16, #tpu.memory_space<vmem>>, %arg3: memref<16x128xbf16, #tpu.memory_space<vmem>>, %arg4: memref<16x128xbf16, #tpu.memory_space<vmem>>, %arg5: memref<16x1xf32, #tpu.memory_space<vmem>>, %arg6: memref<16x1xf32, #tpu.memory_space<vmem>>, %arg7: memref<16x1xf32, #tpu.memory_space<vmem>>, %arg8: memref<16x1xf32, #tpu.memory_space<vmem>>, %arg9: memref<16x128xbf16, #tpu.memory_space<vmem>>) attributes {dimension_semantics = [#tpu.dimension_semantics<parallel>], iteration_bounds = array<i64: 1>, scalar_prefetch = 0 : i64, scratch_operands = 0 : i64, tpu.core_type = #tpu.core_type<tc>, window_params = [{transform_indices = @transform_0, window_bounds = array<i64: 16, 128>}, {transform_indices = @transform_1, window_bounds = array<i64: 16, 128>}, {transform_indices = @transform_2, window_bounds = array<i64: 16, 128>}, {transform_indices = @transform_3, window_bounds = array<i64: 16, 128>}, {pipeline_mode = #tpu.pipeline_mode<synchronous>, transform_indices = @transform_4, window_bounds = array<i64: 16, 1>}, {pipeline_mode = #tpu.pipeline_mode<synchronous>, transform_indices = @transform_5, window_bounds = array<i64: 16, 1>}, {pipeline_mode = #tpu.pipeline_mode<synchronous>, transform_indices = @transform_6, window_bounds = array<i64: 16, 1>}, {pipeline_mode = #tpu.pipeline_mode<synchronous>, transform_indices = @transform_7, window_bounds = array<i64: 16, 1>}, {transform_indices = @transform_8, window_bounds = array<i64: 16, 128>}]} {
    %c0 = arith.constant 0 : index
    %c0_0 = arith.constant 0 : index
    %0 = vector.load %arg5[%c0, %c0_0] : memref<16x1xf32, #tpu.memory_space<vmem>>, vector<16x1xf32>
    %cst = arith.constant 5.000000e-03 : f32
    %1 = vector.broadcast %cst : f32 to vector<16x1xf32>
    %2 = arith.mulf %0, %1 : vector<16x1xf32>
    %c0_1 = arith.constant 0 : index
    %c0_2 = arith.constant 0 : index
    %3 = vector.load %arg6[%c0_1, %c0_2] : memref<16x1xf32, #tpu.memory_space<vmem>>, vector<16x1xf32>
    %cst_3 = arith.constant 5.000000e-03 : f32
    %4 = vector.broadcast %cst_3 : f32 to vector<16x1xf32>
    %5 = arith.mulf %3, %4 : vector<16x1xf32>
    %6 = arith.mulf %2, %2 : vector<16x1xf32>
    %7 = arith.subf %5, %6 : vector<16x1xf32>
    %c0_4 = arith.constant 0 : index
    %c0_5 = arith.constant 0 : index
    %8 = vector.load %arg7[%c0_4, %c0_5] : memref<16x1xf32, #tpu.memory_space<vmem>>, vector<16x1xf32>
    %cst_6 = arith.constant 9.99999974E-6 : f32
    %9 = vector.broadcast %cst_6 : f32 to vector<16x1xf32>
    %10 = arith.addf %7, %9 : vector<16x1xf32>
    %11 = math.rsqrt %10 : vector<16x1xf32>
    %12 = arith.mulf %8, %11 : vector<16x1xf32>
    %c0_7 = arith.constant 0 : index
    %c0_8 = arith.constant 0 : index
    %13 = vector.load %arg8[%c0_7, %c0_8] : memref<16x1xf32, #tpu.memory_space<vmem>>, vector<16x1xf32>
    %14 = arith.mulf %2, %12 : vector<16x1xf32>
    %15 = arith.subf %13, %14 : vector<16x1xf32>
    %c0_9 = arith.constant 0 : index
    %c0_10 = arith.constant 0 : index
    %16 = vector.load %arg1[%c0_9, %c0_10] : memref<16x128xbf16, #tpu.memory_space<vmem>>, vector<16x128xbf16>
    %17 = arith.extf %16 : vector<16x128xbf16> to vector<16x128xf32>
    %18 = vector.broadcast %12 : vector<16x1xf32> to vector<16x128xf32>
    %19 = arith.mulf %17, %18 : vector<16x128xf32>
    %20 = vector.broadcast %15 : vector<16x1xf32> to vector<16x128xf32>
    %21 = arith.addf %19, %20 : vector<16x128xf32>
    %c0_11 = arith.constant 0 : index
    %c0_12 = arith.constant 0 : index
    %22 = vector.load %arg2[%c0_11, %c0_12] : memref<16x128xbf16, #tpu.memory_space<vmem>>, vector<16x128xbf16>
    %23 = arith.extf %22 : vector<16x128xbf16> to vector<16x128xf32>
    %24 = vector.broadcast %12 : vector<16x1xf32> to vector<16x128xf32>
    %25 = arith.mulf %23, %24 : vector<16x128xf32>
    %26 = vector.broadcast %15 : vector<16x1xf32> to vector<16x128xf32>
    %27 = arith.addf %25, %26 : vector<16x128xf32>
    %28 = arith.maximumf %21, %27 : vector<16x128xf32>
    %c0_13 = arith.constant 0 : index
    %c0_14 = arith.constant 0 : index
    %29 = vector.load %arg3[%c0_13, %c0_14] : memref<16x128xbf16, #tpu.memory_space<vmem>>, vector<16x128xbf16>
    %30 = arith.extf %29 : vector<16x128xbf16> to vector<16x128xf32>
    %31 = vector.broadcast %12 : vector<16x1xf32> to vector<16x128xf32>
    %32 = arith.mulf %30, %31 : vector<16x128xf32>
    %33 = vector.broadcast %15 : vector<16x1xf32> to vector<16x128xf32>
    %34 = arith.addf %32, %33 : vector<16x128xf32>
    %35 = arith.maximumf %28, %34 : vector<16x128xf32>
    %c0_15 = arith.constant 0 : index
    %c0_16 = arith.constant 0 : index
    %36 = vector.load %arg4[%c0_15, %c0_16] : memref<16x128xbf16, #tpu.memory_space<vmem>>, vector<16x128xbf16>
    %37 = arith.extf %36 : vector<16x128xbf16> to vector<16x128xf32>
    %38 = vector.broadcast %12 : vector<16x1xf32> to vector<16x128xf32>
    %39 = arith.mulf %37, %38 : vector<16x128xf32>
    %40 = vector.broadcast %15 : vector<16x1xf32> to vector<16x128xf32>
    %41 = arith.addf %39, %40 : vector<16x128xf32>
    %42 = arith.maximumf %35, %41 : vector<16x128xf32>
    %cst_17 = arith.constant 0.000000e+00 : f32
    %43 = vector.broadcast %cst_17 : f32 to vector<16x128xf32>
    %44 = arith.maximumf %42, %43 : vector<16x128xf32>
    %45 = arith.truncf %44 : vector<16x128xf32> to vector<16x128xbf16>
    %c0_18 = arith.constant 0 : index
    %c0_19 = arith.constant 0 : index
    %46 = vector.load %arg9[%c0_18, %c0_19] : memref<16x128xbf16, #tpu.memory_space<vmem>>, vector<16x128xbf16>
    tpu.vector_store %arg9[%c0_18, %c0_19], %45 {strides = array<i32>} : memref<16x128xbf16, #tpu.memory_space<vmem>>, vector<16x128xbf16>,
    return
  }
  func.func @transform_0(%arg0: i32) -> (i32, i32) {
    %c0_i32 = arith.constant 0 : i32
    %c0_i32_0 = arith.constant 0 : i32
    return %c0_i32, %arg0 : i32, i32
  }
  func.func @transform_1(%arg0: i32) -> (i32, i32) {
    %c0_i32 = arith.constant 0 : i32
    %c0_i32_0 = arith.constant 0 : i32
    return %c0_i32, %arg0 : i32, i32
  }
  func.func @transform_2(%arg0: i32) -> (i32, i32) {
    %c0_i32 = arith.constant 0 : i32
    %c0_i32_0 = arith.constant 0 : i32
    return %c0_i32, %arg0 : i32, i32
  }
  func.func @transform_3(%arg0: i32) -> (i32, i32) {
    %c0_i32 = arith.constant 0 : i32
    %c0_i32_0 = arith.constant 0 : i32
    return %c0_i32, %arg0 : i32, i32
  }
  func.func @transform_4(%arg0: i32) -> (i32, i32) {
    %c0_i32 = arith.constant 0 : i32
    %c0_i32_0 = arith.constant 0 : i32
    %c0_i32_1 = arith.constant 0 : i32
    return %c0_i32, %c0_i32_0 : i32, i32
  }
  func.func @transform_5(%arg0: i32) -> (i32, i32) {
    %c0_i32 = arith.constant 0 : i32
    %c0_i32_0 = arith.constant 0 : i32
    %c0_i32_1 = arith.constant 0 : i32
    return %c0_i32, %c0_i32_0 : i32, i32
  }
  func.func @transform_6(%arg0: i32) -> (i32, i32) {
    %c0_i32 = arith.constant 0 : i32
    %c0_i32_0 = arith.constant 0 : i32
    %c0_i32_1 = arith.constant 0 : i32
    return %c0_i32, %c0_i32_0 : i32, i32
  }
  func.func @transform_7(%arg0: i32) -> (i32, i32) {
    %c0_i32 = arith.constant 0 : i32
    %c0_i32_0 = arith.constant 0 : i32
    %c0_i32_1 = arith.constant 0 : i32
    return %c0_i32, %c0_i32_0 : i32, i32
  }
  func.func @transform_8(%arg0: i32) -> (i32, i32) {
    %c0_i32 = arith.constant 0 : i32
    %c0_i32_0 = arith.constant 0 : i32
    return %c0_i32, %arg0 : i32, i32
  }
}

module attributes {stable_mosaic.version = 11 : i64} {
  func.func @_conv_kernel(%arg0: i32, %arg1: memref<16x128xbf16, #tpu.memory_space<vmem>>, %arg2: memref<16x16xbf16, #tpu.memory_space<vmem>>, %arg3: memref<16x1xf32, #tpu.memory_space<vmem>>, %arg4: memref<16x128xbf16, #tpu.memory_space<vmem>>) attributes {dimension_semantics = [#tpu.dimension_semantics<parallel>], iteration_bounds = array<i64: 1>, scalar_prefetch = 0 : i64, scratch_operands = 0 : i64, tpu.core_type = #tpu.core_type<tc>, window_params = [{transform_indices = @transform_0, window_bounds = array<i64: 16, 128>}, {pipeline_mode = #tpu.pipeline_mode<synchronous>, transform_indices = @transform_1, window_bounds = array<i64: 16, 16>}, {pipeline_mode = #tpu.pipeline_mode<synchronous>, transform_indices = @transform_2, window_bounds = array<i64: 16, 1>}, {transform_indices = @transform_3, window_bounds = array<i64: 16, 128>}]} {
    %c0 = arith.constant 0 : index
    %c0_0 = arith.constant 0 : index
    %0 = vector.load %arg2[%c0, %c0_0] : memref<16x16xbf16, #tpu.memory_space<vmem>>, vector<16x16xbf16>
    %c0_1 = arith.constant 0 : index
    %c0_2 = arith.constant 0 : index
    %1 = vector.load %arg1[%c0_1, %c0_2] : memref<16x128xbf16, #tpu.memory_space<vmem>>, vector<16x128xbf16>
    %cst = arith.constant dense<0.000000e+00> : vector<16x128xf32>
    %2 = tpu.matmul %0, %1, %cst {dimension_numbers = #tpu.dot_dimension_numbers<[1], [0], [0], [1], [0, 0, 1, 1], [], []>} : vector<16x16xbf16>, vector<16x128xbf16>, vector<16x128xf32> -> vector<16x128xf32>
    %c0_3 = arith.constant 0 : index
    %c0_4 = arith.constant 0 : index
    %3 = vector.load %arg3[%c0_3, %c0_4] : memref<16x1xf32, #tpu.memory_space<vmem>>, vector<16x1xf32>
    %4 = vector.broadcast %3 : vector<16x1xf32> to vector<16x128xf32>
    %5 = arith.addf %2, %4 : vector<16x128xf32>
    %6 = arith.truncf %5 : vector<16x128xf32> to vector<16x128xbf16>
    %c0_5 = arith.constant 0 : index
    %c0_6 = arith.constant 0 : index
    %7 = vector.load %arg4[%c0_5, %c0_6] : memref<16x128xbf16, #tpu.memory_space<vmem>>, vector<16x128xbf16>
    tpu.vector_store %arg4[%c0_5, %c0_6], %6 {strides = array<i32>} : memref<16x128xbf16, #tpu.memory_space<vmem>>, vector<16x128xbf16>,
    return
  }
  func.func @transform_0(%arg0: i32) -> (i32, i32) {
    %c0_i32 = arith.constant 0 : i32
    %c0_i32_0 = arith.constant 0 : i32
    return %c0_i32, %arg0 : i32, i32
  }
  func.func @transform_1(%arg0: i32) -> (i32, i32) {
    %c0_i32 = arith.constant 0 : i32
    %c0_i32_0 = arith.constant 0 : i32
    %c0_i32_1 = arith.constant 0 : i32
    return %c0_i32, %c0_i32_0 : i32, i32
  }
  func.func @transform_2(%arg0: i32) -> (i32, i32) {
    %c0_i32 = arith.constant 0 : i32
    %c0_i32_0 = arith.constant 0 : i32
    %c0_i32_1 = arith.constant 0 : i32
    return %c0_i32, %c0_i32_0 : i32, i32
  }
  func.func @transform_3(%arg0: i32) -> (i32, i32) {
    %c0_i32 = arith.constant 0 : i32
    %c0_i32_0 = arith.constant 0 : i32
    return %c0_i32, %arg0 : i32, i32
  }
}

module attributes {stable_mosaic.version = 11 : i64} {
  func.func @_conv_kernel(%arg0: i32, %arg1: memref<144x128xbf16, #tpu.memory_space<vmem>>, %arg2: memref<32x144xbf16, #tpu.memory_space<vmem>>, %arg3: memref<32x1xf32, #tpu.memory_space<vmem>>, %arg4: memref<32x128xbf16, #tpu.memory_space<vmem>>) attributes {dimension_semantics = [#tpu.dimension_semantics<parallel>], iteration_bounds = array<i64: 1>, scalar_prefetch = 0 : i64, scratch_operands = 0 : i64, tpu.core_type = #tpu.core_type<tc>, window_params = [{transform_indices = @transform_0, window_bounds = array<i64: 144, 128>}, {pipeline_mode = #tpu.pipeline_mode<synchronous>, transform_indices = @transform_1, window_bounds = array<i64: 32, 144>}, {pipeline_mode = #tpu.pipeline_mode<synchronous>, transform_indices = @transform_2, window_bounds = array<i64: 32, 1>}, {transform_indices = @transform_3, window_bounds = array<i64: 32, 128>}]} {
    %c0 = arith.constant 0 : index
    %c0_0 = arith.constant 0 : index
    %0 = vector.load %arg2[%c0, %c0_0] : memref<32x144xbf16, #tpu.memory_space<vmem>>, vector<32x144xbf16>
    %c0_1 = arith.constant 0 : index
    %c0_2 = arith.constant 0 : index
    %1 = vector.load %arg1[%c0_1, %c0_2] : memref<144x128xbf16, #tpu.memory_space<vmem>>, vector<144x128xbf16>
    %cst = arith.constant dense<0.000000e+00> : vector<32x128xf32>
    %2 = tpu.matmul %0, %1, %cst {dimension_numbers = #tpu.dot_dimension_numbers<[1], [0], [0], [1], [0, 0, 1, 1], [], []>} : vector<32x144xbf16>, vector<144x128xbf16>, vector<32x128xf32> -> vector<32x128xf32>
    %c0_3 = arith.constant 0 : index
    %c0_4 = arith.constant 0 : index
    %3 = vector.load %arg3[%c0_3, %c0_4] : memref<32x1xf32, #tpu.memory_space<vmem>>, vector<32x1xf32>
    %4 = vector.broadcast %3 : vector<32x1xf32> to vector<32x128xf32>
    %5 = arith.addf %2, %4 : vector<32x128xf32>
    %cst_5 = arith.constant 0.000000e+00 : f32
    %6 = vector.broadcast %cst_5 : f32 to vector<32x128xf32>
    %7 = arith.maximumf %5, %6 : vector<32x128xf32>
    %8 = arith.truncf %7 : vector<32x128xf32> to vector<32x128xbf16>
    %c0_6 = arith.constant 0 : index
    %c0_7 = arith.constant 0 : index
    %9 = vector.load %arg4[%c0_6, %c0_7] : memref<32x128xbf16, #tpu.memory_space<vmem>>, vector<32x128xbf16>
    tpu.vector_store %arg4[%c0_6, %c0_7], %8 {strides = array<i32>} : memref<32x128xbf16, #tpu.memory_space<vmem>>, vector<32x128xbf16>,
    return
  }
  func.func @transform_0(%arg0: i32) -> (i32, i32) {
    %c0_i32 = arith.constant 0 : i32
    %c0_i32_0 = arith.constant 0 : i32
    return %c0_i32, %arg0 : i32, i32
  }
  func.func @transform_1(%arg0: i32) -> (i32, i32) {
    %c0_i32 = arith.constant 0 : i32
    %c0_i32_0 = arith.constant 0 : i32
    %c0_i32_1 = arith.constant 0 : i32
    return %c0_i32, %c0_i32_0 : i32, i32
  }
  func.func @transform_2(%arg0: i32) -> (i32, i32) {
    %c0_i32 = arith.constant 0 : i32
    %c0_i32_0 = arith.constant 0 : i32
    %c0_i32_1 = arith.constant 0 : i32
    return %c0_i32, %c0_i32_0 : i32, i32
  }
  func.func @transform_3(%arg0: i32) -> (i32, i32) {
    %c0_i32 = arith.constant 0 : i32
    %c0_i32_0 = arith.constant 0 : i32
    return %c0_i32, %arg0 : i32, i32
  }
}

module attributes {stable_mosaic.version = 11 : i64} {
  func.func @_conv_kernel(%arg0: i32, %arg1: memref<288x128xbf16, #tpu.memory_space<vmem>>, %arg2: memref<16x288xbf16, #tpu.memory_space<vmem>>, %arg3: memref<16x1xf32, #tpu.memory_space<vmem>>, %arg4: memref<16x128xbf16, #tpu.memory_space<vmem>>) attributes {dimension_semantics = [#tpu.dimension_semantics<parallel>], iteration_bounds = array<i64: 1>, scalar_prefetch = 0 : i64, scratch_operands = 0 : i64, tpu.core_type = #tpu.core_type<tc>, window_params = [{transform_indices = @transform_0, window_bounds = array<i64: 288, 128>}, {pipeline_mode = #tpu.pipeline_mode<synchronous>, transform_indices = @transform_1, window_bounds = array<i64: 16, 288>}, {pipeline_mode = #tpu.pipeline_mode<synchronous>, transform_indices = @transform_2, window_bounds = array<i64: 16, 1>}, {transform_indices = @transform_3, window_bounds = array<i64: 16, 128>}]} {
    %c0 = arith.constant 0 : index
    %c0_0 = arith.constant 0 : index
    %0 = vector.load %arg2[%c0, %c0_0] : memref<16x288xbf16, #tpu.memory_space<vmem>>, vector<16x288xbf16>
    %c0_1 = arith.constant 0 : index
    %c0_2 = arith.constant 0 : index
    %1 = vector.load %arg1[%c0_1, %c0_2] : memref<288x128xbf16, #tpu.memory_space<vmem>>, vector<288x128xbf16>
    %cst = arith.constant dense<0.000000e+00> : vector<16x128xf32>
    %2 = tpu.matmul %0, %1, %cst {dimension_numbers = #tpu.dot_dimension_numbers<[1], [0], [0], [1], [0, 0, 1, 1], [], []>} : vector<16x288xbf16>, vector<288x128xbf16>, vector<16x128xf32> -> vector<16x128xf32>
    %c0_3 = arith.constant 0 : index
    %c0_4 = arith.constant 0 : index
    %3 = vector.load %arg3[%c0_3, %c0_4] : memref<16x1xf32, #tpu.memory_space<vmem>>, vector<16x1xf32>
    %4 = vector.broadcast %3 : vector<16x1xf32> to vector<16x128xf32>
    %5 = arith.addf %2, %4 : vector<16x128xf32>
    %cst_5 = arith.constant 0.000000e+00 : f32
    %6 = vector.broadcast %cst_5 : f32 to vector<16x128xf32>
    %7 = arith.maximumf %5, %6 : vector<16x128xf32>
    %8 = arith.truncf %7 : vector<16x128xf32> to vector<16x128xbf16>
    %c0_6 = arith.constant 0 : index
    %c0_7 = arith.constant 0 : index
    %9 = vector.load %arg4[%c0_6, %c0_7] : memref<16x128xbf16, #tpu.memory_space<vmem>>, vector<16x128xbf16>
    tpu.vector_store %arg4[%c0_6, %c0_7], %8 {strides = array<i32>} : memref<16x128xbf16, #tpu.memory_space<vmem>>, vector<16x128xbf16>,
    return
  }
  func.func @transform_0(%arg0: i32) -> (i32, i32) {
    %c0_i32 = arith.constant 0 : i32
    %c0_i32_0 = arith.constant 0 : i32
    return %c0_i32, %arg0 : i32, i32
  }
  func.func @transform_1(%arg0: i32) -> (i32, i32) {
    %c0_i32 = arith.constant 0 : i32
    %c0_i32_0 = arith.constant 0 : i32
    %c0_i32_1 = arith.constant 0 : i32
    return %c0_i32, %c0_i32_0 : i32, i32
  }
  func.func @transform_2(%arg0: i32) -> (i32, i32) {
    %c0_i32 = arith.constant 0 : i32
    %c0_i32_0 = arith.constant 0 : i32
    %c0_i32_1 = arith.constant 0 : i32
    return %c0_i32, %c0_i32_0 : i32, i32
  }
  func.func @transform_3(%arg0: i32) -> (i32, i32) {
    %c0_i32 = arith.constant 0 : i32
    %c0_i32_0 = arith.constant 0 : i32
    return %c0_i32, %arg0 : i32, i32
  }
}

module attributes {stable_mosaic.version = 11 : i64} {
  func.func @_conv_kernel(%arg0: i32, %arg1: memref<144x128xbf16, #tpu.memory_space<vmem>>, %arg2: memref<8x144xbf16, #tpu.memory_space<vmem>>, %arg3: memref<144x128xbf16, #tpu.memory_space<vmem>>, %arg4: memref<8x144xbf16, #tpu.memory_space<vmem>>, %arg5: memref<8x1xf32, #tpu.memory_space<vmem>>, %arg6: memref<8x128xbf16, #tpu.memory_space<vmem>>, %arg7: memref<1x8x1xf32, #tpu.memory_space<vmem>>, %arg8: memref<1x8x1xf32, #tpu.memory_space<vmem>>) attributes {dimension_semantics = [#tpu.dimension_semantics<parallel>], iteration_bounds = array<i64: 1>, scalar_prefetch = 0 : i64, scratch_operands = 0 : i64, tpu.core_type = #tpu.core_type<tc>, window_params = [{transform_indices = @transform_0, window_bounds = array<i64: 144, 128>}, {pipeline_mode = #tpu.pipeline_mode<synchronous>, transform_indices = @transform_1, window_bounds = array<i64: 8, 144>}, {transform_indices = @transform_2, window_bounds = array<i64: 144, 128>}, {pipeline_mode = #tpu.pipeline_mode<synchronous>, transform_indices = @transform_3, window_bounds = array<i64: 8, 144>}, {pipeline_mode = #tpu.pipeline_mode<synchronous>, transform_indices = @transform_4, window_bounds = array<i64: 8, 1>}, {transform_indices = @transform_5, window_bounds = array<i64: 8, 128>}, {transform_indices = @transform_6, window_bounds = array<i64: 1, 8, 1>}, {transform_indices = @transform_7, window_bounds = array<i64: 1, 8, 1>}]} {
    %c0 = arith.constant 0 : index
    %c0_0 = arith.constant 0 : index
    %0 = vector.load %arg2[%c0, %c0_0] : memref<8x144xbf16, #tpu.memory_space<vmem>>, vector<8x144xbf16>
    %c0_1 = arith.constant 0 : index
    %c0_2 = arith.constant 0 : index
    %1 = vector.load %arg1[%c0_1, %c0_2] : memref<144x128xbf16, #tpu.memory_space<vmem>>, vector<144x128xbf16>
    %cst = arith.constant dense<0.000000e+00> : vector<8x128xf32>
    %2 = tpu.matmul %0, %1, %cst {dimension_numbers = #tpu.dot_dimension_numbers<[1], [0], [0], [1], [0, 0, 1, 1], [], []>} : vector<8x144xbf16>, vector<144x128xbf16>, vector<8x128xf32> -> vector<8x128xf32>
    %c0_3 = arith.constant 0 : index
    %c0_4 = arith.constant 0 : index
    %3 = vector.load %arg4[%c0_3, %c0_4] : memref<8x144xbf16, #tpu.memory_space<vmem>>, vector<8x144xbf16>
    %c0_5 = arith.constant 0 : index
    %c0_6 = arith.constant 0 : index
    %4 = vector.load %arg3[%c0_5, %c0_6] : memref<144x128xbf16, #tpu.memory_space<vmem>>, vector<144x128xbf16>
    %cst_7 = arith.constant dense<0.000000e+00> : vector<8x128xf32>
    %5 = tpu.matmul %3, %4, %cst_7 {dimension_numbers = #tpu.dot_dimension_numbers<[1], [0], [0], [1], [0, 0, 1, 1], [], []>} : vector<8x144xbf16>, vector<144x128xbf16>, vector<8x128xf32> -> vector<8x128xf32>
    %6 = arith.addf %2, %5 : vector<8x128xf32>
    %c0_8 = arith.constant 0 : index
    %c0_9 = arith.constant 0 : index
    %7 = vector.load %arg5[%c0_8, %c0_9] : memref<8x1xf32, #tpu.memory_space<vmem>>, vector<8x1xf32>
    %8 = vector.broadcast %7 : vector<8x1xf32> to vector<8x128xf32>
    %9 = arith.addf %6, %8 : vector<8x128xf32>
    %cst_10 = arith.constant dense<0.000000e+00> : vector<8xf32>
    %10 = vector.multi_reduction <add>, %9, %cst_10 [1] : vector<8x128xf32> to vector<8xf32>
    %11 = vector.shape_cast %10 : vector<8xf32> to vector<8x1xf32>
    %12 = vector.shape_cast %11 : vector<8x1xf32> to vector<1x8x1xf32>
    %c0_11 = arith.constant 0 : index
    %c0_12 = arith.constant 0 : index
    %c0_13 = arith.constant 0 : index
    %13 = vector.load %arg7[%c0_11, %c0_12, %c0_13] : memref<1x8x1xf32, #tpu.memory_space<vmem>>, vector<1x8x1xf32>
    tpu.vector_store %arg7[%c0_11, %c0_12, %c0_13], %12 {strides = array<i32>} : memref<1x8x1xf32, #tpu.memory_space<vmem>>, vector<1x8x1xf32>,
    %14 = arith.mulf %9, %9 : vector<8x128xf32>
    %cst_14 = arith.constant dense<0.000000e+00> : vector<8xf32>
    %15 = vector.multi_reduction <add>, %14, %cst_14 [1] : vector<8x128xf32> to vector<8xf32>
    %16 = vector.shape_cast %15 : vector<8xf32> to vector<8x1xf32>
    %17 = vector.shape_cast %16 : vector<8x1xf32> to vector<1x8x1xf32>
    %c0_15 = arith.constant 0 : index
    %c0_16 = arith.constant 0 : index
    %c0_17 = arith.constant 0 : index
    %18 = vector.load %arg8[%c0_15, %c0_16, %c0_17] : memref<1x8x1xf32, #tpu.memory_space<vmem>>, vector<1x8x1xf32>
    tpu.vector_store %arg8[%c0_15, %c0_16, %c0_17], %17 {strides = array<i32>} : memref<1x8x1xf32, #tpu.memory_space<vmem>>, vector<1x8x1xf32>,
    %19 = arith.truncf %9 : vector<8x128xf32> to vector<8x128xbf16>
    %c0_18 = arith.constant 0 : index
    %c0_19 = arith.constant 0 : index
    %20 = vector.load %arg6[%c0_18, %c0_19] : memref<8x128xbf16, #tpu.memory_space<vmem>>, vector<8x128xbf16>
    tpu.vector_store %arg6[%c0_18, %c0_19], %19 {strides = array<i32>} : memref<8x128xbf16, #tpu.memory_space<vmem>>, vector<8x128xbf16>,
    return
  }
  func.func @transform_0(%arg0: i32) -> (i32, i32) {
    %c0_i32 = arith.constant 0 : i32
    %c0_i32_0 = arith.constant 0 : i32
    return %c0_i32, %arg0 : i32, i32
  }
  func.func @transform_1(%arg0: i32) -> (i32, i32) {
    %c0_i32 = arith.constant 0 : i32
    %c0_i32_0 = arith.constant 0 : i32
    %c0_i32_1 = arith.constant 0 : i32
    return %c0_i32, %c0_i32_0 : i32, i32
  }
  func.func @transform_2(%arg0: i32) -> (i32, i32) {
    %c0_i32 = arith.constant 0 : i32
    %c0_i32_0 = arith.constant 0 : i32
    return %c0_i32, %arg0 : i32, i32
  }
  func.func @transform_3(%arg0: i32) -> (i32, i32) {
    %c0_i32 = arith.constant 0 : i32
    %c0_i32_0 = arith.constant 0 : i32
    %c0_i32_1 = arith.constant 0 : i32
    return %c0_i32, %c0_i32_0 : i32, i32
  }
  func.func @transform_4(%arg0: i32) -> (i32, i32) {
    %c0_i32 = arith.constant 0 : i32
    %c0_i32_0 = arith.constant 0 : i32
    %c0_i32_1 = arith.constant 0 : i32
    return %c0_i32, %c0_i32_0 : i32, i32
  }
  func.func @transform_5(%arg0: i32) -> (i32, i32) {
    %c0_i32 = arith.constant 0 : i32
    %c0_i32_0 = arith.constant 0 : i32
    return %c0_i32, %arg0 : i32, i32
  }
  func.func @transform_6(%arg0: i32) -> (i32, i32, i32) {
    %c0_i32 = arith.constant 0 : i32
    %c0_i32_0 = arith.constant 0 : i32
    %c0_i32_1 = arith.constant 0 : i32
    return %arg0, %c0_i32, %c0_i32_0 : i32, i32, i32
  }
  func.func @transform_7(%arg0: i32) -> (i32, i32, i32) {
    %c0_i32 = arith.constant 0 : i32
    %c0_i32_0 = arith.constant 0 : i32
    %c0_i32_1 = arith.constant 0 : i32
    return %arg0, %c0_i32, %c0_i32_0 : i32, i32, i32
  }
}

module attributes {stable_mosaic.version = 11 : i64} {
  func.func @_bn_apply_kernel(%arg0: i32, %arg1: memref<8x128xbf16, #tpu.memory_space<vmem>>, %arg2: memref<8x1xf32, #tpu.memory_space<vmem>>, %arg3: memref<8x1xf32, #tpu.memory_space<vmem>>, %arg4: memref<8x1xf32, #tpu.memory_space<vmem>>, %arg5: memref<8x1xf32, #tpu.memory_space<vmem>>, %arg6: memref<8x128xbf16, #tpu.memory_space<vmem>>) attributes {dimension_semantics = [#tpu.dimension_semantics<parallel>], iteration_bounds = array<i64: 1>, scalar_prefetch = 0 : i64, scratch_operands = 0 : i64, tpu.core_type = #tpu.core_type<tc>, window_params = [{transform_indices = @transform_0, window_bounds = array<i64: 8, 128>}, {pipeline_mode = #tpu.pipeline_mode<synchronous>, transform_indices = @transform_1, window_bounds = array<i64: 8, 1>}, {pipeline_mode = #tpu.pipeline_mode<synchronous>, transform_indices = @transform_2, window_bounds = array<i64: 8, 1>}, {pipeline_mode = #tpu.pipeline_mode<synchronous>, transform_indices = @transform_3, window_bounds = array<i64: 8, 1>}, {pipeline_mode = #tpu.pipeline_mode<synchronous>, transform_indices = @transform_4, window_bounds = array<i64: 8, 1>}, {transform_indices = @transform_5, window_bounds = array<i64: 8, 128>}]} {
    %c0 = arith.constant 0 : index
    %c0_0 = arith.constant 0 : index
    %0 = vector.load %arg2[%c0, %c0_0] : memref<8x1xf32, #tpu.memory_space<vmem>>, vector<8x1xf32>
    %cst = arith.constant 7.812500e-03 : f32
    %1 = vector.broadcast %cst : f32 to vector<8x1xf32>
    %2 = arith.mulf %0, %1 : vector<8x1xf32>
    %c0_1 = arith.constant 0 : index
    %c0_2 = arith.constant 0 : index
    %3 = vector.load %arg3[%c0_1, %c0_2] : memref<8x1xf32, #tpu.memory_space<vmem>>, vector<8x1xf32>
    %cst_3 = arith.constant 7.812500e-03 : f32
    %4 = vector.broadcast %cst_3 : f32 to vector<8x1xf32>
    %5 = arith.mulf %3, %4 : vector<8x1xf32>
    %6 = arith.mulf %2, %2 : vector<8x1xf32>
    %7 = arith.subf %5, %6 : vector<8x1xf32>
    %c0_4 = arith.constant 0 : index
    %c0_5 = arith.constant 0 : index
    %8 = vector.load %arg4[%c0_4, %c0_5] : memref<8x1xf32, #tpu.memory_space<vmem>>, vector<8x1xf32>
    %cst_6 = arith.constant 9.99999974E-6 : f32
    %9 = vector.broadcast %cst_6 : f32 to vector<8x1xf32>
    %10 = arith.addf %7, %9 : vector<8x1xf32>
    %11 = math.rsqrt %10 : vector<8x1xf32>
    %12 = arith.mulf %8, %11 : vector<8x1xf32>
    %c0_7 = arith.constant 0 : index
    %c0_8 = arith.constant 0 : index
    %13 = vector.load %arg5[%c0_7, %c0_8] : memref<8x1xf32, #tpu.memory_space<vmem>>, vector<8x1xf32>
    %14 = arith.mulf %2, %12 : vector<8x1xf32>
    %15 = arith.subf %13, %14 : vector<8x1xf32>
    %c0_9 = arith.constant 0 : index
    %c0_10 = arith.constant 0 : index
    %16 = vector.load %arg1[%c0_9, %c0_10] : memref<8x128xbf16, #tpu.memory_space<vmem>>, vector<8x128xbf16>
    %17 = arith.extf %16 : vector<8x128xbf16> to vector<8x128xf32>
    %18 = vector.broadcast %12 : vector<8x1xf32> to vector<8x128xf32>
    %19 = arith.mulf %17, %18 : vector<8x128xf32>
    %20 = vector.broadcast %15 : vector<8x1xf32> to vector<8x128xf32>
    %21 = arith.addf %19, %20 : vector<8x128xf32>
    %cst_11 = arith.constant 0.000000e+00 : f32
    %22 = vector.broadcast %cst_11 : f32 to vector<8x128xf32>
    %23 = arith.maximumf %21, %22 : vector<8x128xf32>
    %24 = arith.truncf %23 : vector<8x128xf32> to vector<8x128xbf16>
    %c0_12 = arith.constant 0 : index
    %c0_13 = arith.constant 0 : index
    %25 = vector.load %arg6[%c0_12, %c0_13] : memref<8x128xbf16, #tpu.memory_space<vmem>>, vector<8x128xbf16>
    tpu.vector_store %arg6[%c0_12, %c0_13], %24 {strides = array<i32>} : memref<8x128xbf16, #tpu.memory_space<vmem>>, vector<8x128xbf16>,
    return
  }
  func.func @transform_0(%arg0: i32) -> (i32, i32) {
    %c0_i32 = arith.constant 0 : i32
    %c0_i32_0 = arith.constant 0 : i32
    return %c0_i32, %arg0 : i32, i32
  }
  func.func @transform_1(%arg0: i32) -> (i32, i32) {
    %c0_i32 = arith.constant 0 : i32
    %c0_i32_0 = arith.constant 0 : i32
    %c0_i32_1 = arith.constant 0 : i32
    return %c0_i32, %c0_i32_0 : i32, i32
  }
  func.func @transform_2(%arg0: i32) -> (i32, i32) {
    %c0_i32 = arith.constant 0 : i32
    %c0_i32_0 = arith.constant 0 : i32
    %c0_i32_1 = arith.constant 0 : i32
    return %c0_i32, %c0_i32_0 : i32, i32
  }
  func.func @transform_3(%arg0: i32) -> (i32, i32) {
    %c0_i32 = arith.constant 0 : i32
    %c0_i32_0 = arith.constant 0 : i32
    %c0_i32_1 = arith.constant 0 : i32
    return %c0_i32, %c0_i32_0 : i32, i32
  }
  func.func @transform_4(%arg0: i32) -> (i32, i32) {
    %c0_i32 = arith.constant 0 : i32
    %c0_i32_0 = arith.constant 0 : i32
    %c0_i32_1 = arith.constant 0 : i32
    return %c0_i32, %c0_i32_0 : i32, i32
  }
  func.func @transform_5(%arg0: i32) -> (i32, i32) {
    %c0_i32 = arith.constant 0 : i32
    %c0_i32_0 = arith.constant 0 : i32
    return %c0_i32, %arg0 : i32, i32
  }
}

module attributes {stable_mosaic.version = 11 : i64} {
  func.func @_conv_kernel(%arg0: i32, %arg1: memref<200x512xbf16, #tpu.memory_space<vmem>>, %arg2: memref<4x200xbf16, #tpu.memory_space<vmem>>, %arg3: memref<200x512xbf16, #tpu.memory_space<vmem>>, %arg4: memref<4x200xbf16, #tpu.memory_space<vmem>>, %arg5: memref<4x1xf32, #tpu.memory_space<vmem>>, %arg6: memref<4x512xbf16, #tpu.memory_space<vmem>>) attributes {dimension_semantics = [#tpu.dimension_semantics<parallel>], iteration_bounds = array<i64: 1>, scalar_prefetch = 0 : i64, scratch_operands = 0 : i64, tpu.core_type = #tpu.core_type<tc>, window_params = [{transform_indices = @transform_0, window_bounds = array<i64: 200, 512>}, {pipeline_mode = #tpu.pipeline_mode<synchronous>, transform_indices = @transform_1, window_bounds = array<i64: 4, 200>}, {transform_indices = @transform_2, window_bounds = array<i64: 200, 512>}, {pipeline_mode = #tpu.pipeline_mode<synchronous>, transform_indices = @transform_3, window_bounds = array<i64: 4, 200>}, {pipeline_mode = #tpu.pipeline_mode<synchronous>, transform_indices = @transform_4, window_bounds = array<i64: 4, 1>}, {transform_indices = @transform_5, window_bounds = array<i64: 4, 512>}]} {
    %c0 = arith.constant 0 : index
    %c0_0 = arith.constant 0 : index
    %0 = vector.load %arg2[%c0, %c0_0] : memref<4x200xbf16, #tpu.memory_space<vmem>>, vector<4x200xbf16>
    %c0_1 = arith.constant 0 : index
    %c0_2 = arith.constant 0 : index
    %1 = vector.load %arg1[%c0_1, %c0_2] : memref<200x512xbf16, #tpu.memory_space<vmem>>, vector<200x512xbf16>
    %cst = arith.constant dense<0.000000e+00> : vector<4x512xf32>
    %2 = tpu.matmul %0, %1, %cst {dimension_numbers = #tpu.dot_dimension_numbers<[1], [0], [0], [1], [0, 0, 1, 1], [], []>} : vector<4x200xbf16>, vector<200x512xbf16>, vector<4x512xf32> -> vector<4x512xf32>
    %c0_3 = arith.constant 0 : index
    %c0_4 = arith.constant 0 : index
    %3 = vector.load %arg4[%c0_3, %c0_4] : memref<4x200xbf16, #tpu.memory_space<vmem>>, vector<4x200xbf16>
    %c0_5 = arith.constant 0 : index
    %c0_6 = arith.constant 0 : index
    %4 = vector.load %arg3[%c0_5, %c0_6] : memref<200x512xbf16, #tpu.memory_space<vmem>>, vector<200x512xbf16>
    %cst_7 = arith.constant dense<0.000000e+00> : vector<4x512xf32>
    %5 = tpu.matmul %3, %4, %cst_7 {dimension_numbers = #tpu.dot_dimension_numbers<[1], [0], [0], [1], [0, 0, 1, 1], [], []>} : vector<4x200xbf16>, vector<200x512xbf16>, vector<4x512xf32> -> vector<4x512xf32>
    %6 = arith.addf %2, %5 : vector<4x512xf32>
    %c0_8 = arith.constant 0 : index
    %c0_9 = arith.constant 0 : index
    %7 = vector.load %arg5[%c0_8, %c0_9] : memref<4x1xf32, #tpu.memory_space<vmem>>, vector<4x1xf32>
    %8 = vector.broadcast %7 : vector<4x1xf32> to vector<4x512xf32>
    %9 = arith.addf %6, %8 : vector<4x512xf32>
    %cst_10 = arith.constant 0.000000e+00 : f32
    %10 = vector.broadcast %cst_10 : f32 to vector<4x512xf32>
    %11 = arith.maximumf %9, %10 : vector<4x512xf32>
    %12 = arith.truncf %11 : vector<4x512xf32> to vector<4x512xbf16>
    %c0_11 = arith.constant 0 : index
    %c0_12 = arith.constant 0 : index
    %13 = vector.load %arg6[%c0_11, %c0_12] : memref<4x512xbf16, #tpu.memory_space<vmem>>, vector<4x512xbf16>
    tpu.vector_store %arg6[%c0_11, %c0_12], %12 {strides = array<i32>} : memref<4x512xbf16, #tpu.memory_space<vmem>>, vector<4x512xbf16>,
    return
  }
  func.func @transform_0(%arg0: i32) -> (i32, i32) {
    %c0_i32 = arith.constant 0 : i32
    %c0_i32_0 = arith.constant 0 : i32
    return %c0_i32, %arg0 : i32, i32
  }
  func.func @transform_1(%arg0: i32) -> (i32, i32) {
    %c0_i32 = arith.constant 0 : i32
    %c0_i32_0 = arith.constant 0 : i32
    %c0_i32_1 = arith.constant 0 : i32
    return %c0_i32, %c0_i32_0 : i32, i32
  }
  func.func @transform_2(%arg0: i32) -> (i32, i32) {
    %c0_i32 = arith.constant 0 : i32
    %c0_i32_0 = arith.constant 0 : i32
    return %c0_i32, %arg0 : i32, i32
  }
  func.func @transform_3(%arg0: i32) -> (i32, i32) {
    %c0_i32 = arith.constant 0 : i32
    %c0_i32_0 = arith.constant 0 : i32
    %c0_i32_1 = arith.constant 0 : i32
    return %c0_i32, %c0_i32_0 : i32, i32
  }
  func.func @transform_4(%arg0: i32) -> (i32, i32) {
    %c0_i32 = arith.constant 0 : i32
    %c0_i32_0 = arith.constant 0 : i32
    %c0_i32_1 = arith.constant 0 : i32
    return %c0_i32, %c0_i32_0 : i32, i32
  }
  func.func @transform_5(%arg0: i32) -> (i32, i32) {
    %c0_i32 = arith.constant 0 : i32
    %c0_i32_0 = arith.constant 0 : i32
    return %c0_i32, %arg0 : i32, i32
  }
}

module attributes {stable_mosaic.version = 11 : i64} {
  func.func @_conv_kernel(%arg0: i32, %arg1: memref<4x512xbf16, #tpu.memory_space<vmem>>, %arg2: memref<3x4xbf16, #tpu.memory_space<vmem>>, %arg3: memref<3x1xf32, #tpu.memory_space<vmem>>, %arg4: memref<3x512xf32, #tpu.memory_space<vmem>>) attributes {dimension_semantics = [#tpu.dimension_semantics<parallel>], iteration_bounds = array<i64: 1>, scalar_prefetch = 0 : i64, scratch_operands = 0 : i64, tpu.core_type = #tpu.core_type<tc>, window_params = [{transform_indices = @transform_0, window_bounds = array<i64: 4, 512>}, {pipeline_mode = #tpu.pipeline_mode<synchronous>, transform_indices = @transform_1, window_bounds = array<i64: 3, 4>}, {pipeline_mode = #tpu.pipeline_mode<synchronous>, transform_indices = @transform_2, window_bounds = array<i64: 3, 1>}, {transform_indices = @transform_3, window_bounds = array<i64: 3, 512>}]} {
    %c0 = arith.constant 0 : index
    %c0_0 = arith.constant 0 : index
    %0 = vector.load %arg2[%c0, %c0_0] : memref<3x4xbf16, #tpu.memory_space<vmem>>, vector<3x4xbf16>
    %c0_1 = arith.constant 0 : index
    %c0_2 = arith.constant 0 : index
    %1 = vector.load %arg1[%c0_1, %c0_2] : memref<4x512xbf16, #tpu.memory_space<vmem>>, vector<4x512xbf16>
    %cst = arith.constant dense<0.000000e+00> : vector<3x512xf32>
    %2 = tpu.matmul %0, %1, %cst {dimension_numbers = #tpu.dot_dimension_numbers<[1], [0], [0], [1], [0, 0, 1, 1], [], []>} : vector<3x4xbf16>, vector<4x512xbf16>, vector<3x512xf32> -> vector<3x512xf32>
    %c0_3 = arith.constant 0 : index
    %c0_4 = arith.constant 0 : index
    %3 = vector.load %arg3[%c0_3, %c0_4] : memref<3x1xf32, #tpu.memory_space<vmem>>, vector<3x1xf32>
    %4 = vector.broadcast %3 : vector<3x1xf32> to vector<3x512xf32>
    %5 = arith.addf %2, %4 : vector<3x512xf32>
    %cst_5 = arith.constant dense<0xFF800000> : vector<512xf32>
    %6 = vector.multi_reduction <maximumf>, %5, %cst_5 [0] : vector<3x512xf32> to vector<512xf32>
    %7 = vector.shape_cast %6 : vector<512xf32> to vector<1x512xf32>
    %8 = vector.broadcast %7 : vector<1x512xf32> to vector<3x512xf32>
    %9 = arith.subf %5, %8 : vector<3x512xf32>
    %10 = math.exp %9 : vector<3x512xf32>
    %cst_6 = arith.constant dense<0.000000e+00> : vector<512xf32>
    %11 = vector.multi_reduction <add>, %10, %cst_6 [0] : vector<3x512xf32> to vector<512xf32>
    %12 = vector.shape_cast %11 : vector<512xf32> to vector<1x512xf32>
    %13 = tpu.reciprocal %12 {approx = true} : vector<1x512xf32> -> vector<1x512xf32>
    %14 = vector.broadcast %13 : vector<1x512xf32> to vector<3x512xf32>
    %15 = arith.mulf %10, %14 : vector<3x512xf32>
    %c0_7 = arith.constant 0 : index
    %c0_8 = arith.constant 0 : index
    %16 = vector.load %arg4[%c0_7, %c0_8] : memref<3x512xf32, #tpu.memory_space<vmem>>, vector<3x512xf32>
    tpu.vector_store %arg4[%c0_7, %c0_8], %15 {strides = array<i32>} : memref<3x512xf32, #tpu.memory_space<vmem>>, vector<3x512xf32>,
    return
  }
  func.func @transform_0(%arg0: i32) -> (i32, i32) {
    %c0_i32 = arith.constant 0 : i32
    %c0_i32_0 = arith.constant 0 : i32
    return %c0_i32, %arg0 : i32, i32
  }
  func.func @transform_1(%arg0: i32) -> (i32, i32) {
    %c0_i32 = arith.constant 0 : i32
    %c0_i32_0 = arith.constant 0 : i32
    %c0_i32_1 = arith.constant 0 : i32
    return %c0_i32, %c0_i32_0 : i32, i32
  }
  func.func @transform_2(%arg0: i32) -> (i32, i32) {
    %c0_i32 = arith.constant 0 : i32
    %c0_i32_0 = arith.constant 0 : i32
    %c0_i32_1 = arith.constant 0 : i32
    return %c0_i32, %c0_i32_0 : i32, i32
  }
  func.func @transform_3(%arg0: i32) -> (i32, i32) {
    %c0_i32 = arith.constant 0 : i32
    %c0_i32_0 = arith.constant 0 : i32
    return %c0_i32, %arg0 : i32, i32
  }
}

</mosaic_0001>

<bundles_post_ra>
// kernel: segmentation_model_forward.12
= control target key start
LH: loop header
LB: loop body
LE: loop exit
PB: predicated region body
PF: predicated region fallthrough
CT: control target
= control target key end

     0   :  { %vm185_vm0 = vcmask 1041408   ;;  %v405_v2 = vmov 0   ;;  %vm181_vm1 = vcmask 818176   ;;  %vm285_vm2 = vcmask 7168   ;;  %s532_s0 = inlined_call_operand.vmem [shape: bf16[100,512], index: 0, kind: input, shape index: {}]   ;;  %s533_s2 = inlined_call_operand.vmem [shape: f32[8,1], index: 2, kind: input, shape index: {}]   ;;  %s534_s1 = inlined_call_operand.vmem [shape: bf16[8,100], index: 1, kind: input, shape index: {}]   ;;  %s535_s3 = inlined_call_operand.vmem [shape: bf16[8,512], index: 3, kind: output, shape index: {0}]   ;;  %s536_s4 = inlined_call_operand.vmem [shape: f32[1,8,1], index: 4, kind: output, shape index: {1}]   ;;  %s537_s5 = inlined_call_operand.vmem [shape: f32[1,8,1], index: 5, kind: output, shape index: {2}]  }
   0x1   :  { %v43_v0 = vld [vmem:[%s532_s0 + $0xc0] sm:$0x33]  ;;  %v44_v1 = vld [vmem:[%s532_s0 + $0xc8] sm:$0x33]  ;;  %230 = vmatprep.mubr.bf16.mxu0 %v405_v2  ;;  %271 = vmatprep.mubr.bf16.mxu1 %v405_v2 }
   0x2   :  { %v352_v3 = vcombine.high %v43_v0, %v43_v0  ;;  %v354_v4 = vcombine.high %v44_v1, %v44_v1  ;;  %v351_v5 = vcombine.low %v43_v0, %v43_v0  ;;  %v353_v6 = vcombine.low %v44_v1, %v44_v1  ;;  %v369_v7 = vld [vmem:[%s532_s0 + $0xa4] ss:$16 sps:$4 sm:$0xff]   ;;  %364 = vset.pattern.permute.xlu0 %v405_v2  ;;  %v371_v8 = vld [vmem:[%s532_s0 + $0xac] ss:$16 sps:$4 sm:$0xff]   ;;  %v373_v11 = vld [vmem:[%s532_s0 + $0xa0] ss:$16 sps:$4 sm:$0xff]  }
   0x3   :  { %v374_v12 = vld [vmem:[%s532_s0 + $0xa8] ss:$16 sps:$4 sm:$0xff]   ;;  %v375_v13 = vld [vmem:[%s532_s0 + $0x84] ss:$16 sps:$4 sm:$0xff]   ;;  %v377_v14 = vld [vmem:[%s532_s0 + $0x8c] ss:$16 sps:$4 sm:$0xff]  }
   0x4   :  { %355 = vmatprep.subr.msk.bf16.mxu0 %vm185_vm0, %v352_v3  ;;  %357 = vmatprep.subr.msk.bf16.mxu1 %vm185_vm0, %v354_v4  ;;  %v187_v9 = vsel %vm185_vm0, %v351_v5, 0  ;;  %v193_v10 = vsel %vm185_vm0, %v353_v6, 0  ;;  %v379_v15 = vld [vmem:[%s532_s0 + $0x80] ss:$16 sps:$4 sm:$0xff]   ;;  %v380_v16 = vld [vmem:[%s532_s0 + $0x88] ss:$16 sps:$4 sm:$0xff]  }
   0x5   :  { %201 = vmatpush1.bf16.msra.mxu0 %v187_v9  ;;  %242 = vmatpush1.bf16.msra.mxu1 %v193_v10  ;;  %v381_v17 = vld [vmem:[%s532_s0 + $0x64] ss:$16 sps:$4 sm:$0xff]   ;;  %v383_v18 = vld [vmem:[%s532_s0 + $0x6c] ss:$16 sps:$4 sm:$0xff]   ;;  %v385_v19 = vld [vmem:[%s532_s0 + $0x60] ss:$16 sps:$4 sm:$0xff]  }
   0x6   :  { %202 = vmatprep.subr.bf16.mxu0 %v369_v7  ;;  %243 = vmatprep.subr.bf16.mxu1 %v371_v8  ;;  %v386_v20 = vld [vmem:[%s532_s0 + $0x68] ss:$16 sps:$4 sm:$0xff]   ;;  %v387_v21 = vld [vmem:[%s532_s0 + $0x44] ss:$16 sps:$4 sm:$0xff]   ;;  %v389_v22 = vld [vmem:[%s532_s0 + $0x4c] ss:$16 sps:$4 sm:$0xff]  }
   0x7   :  { %v391_v23 = vld [vmem:[%s532_s0 + $0x40] ss:$16 sps:$4 sm:$0xff]   ;;  %v392_v24 = vld [vmem:[%s532_s0 + $0x48] ss:$16 sps:$4 sm:$0xff]   ;;  %v393_v25 = vld [vmem:[%s532_s0 + $0x24] ss:$16 sps:$4 sm:$0xff]  }
   0x8   :  { %v395_v26 = vld [vmem:[%s532_s0 + $0x2c] ss:$16 sps:$4 sm:$0xff]   ;;  %v45_v27 = vld [vmem:[%s533_s2] sm:$0xff]  ;;  %v398_v29 = vld [vmem:[%s532_s0 + $0x28] ss:$16 sps:$4 sm:$0xff]  }
   0x9   :  { %203 = vmatpush1.bf16.msra.mxu0 %v373_v11  ;;  %244 = vmatpush1.bf16.msra.mxu1 %v374_v12  ;;  %v397_v28 = vld [vmem:[%s532_s0 + $0x20] ss:$16 sps:$4 sm:$0xff]   ;;  %v399_v30 = vld [vmem:[%s532_s0 + $0x4] ss:$16 sps:$4 sm:$0xff]   ;;  %v401_v31 = vld [vmem:[%s532_s0 + $0xc] ss:$16 sps:$4 sm:$0xff]  }
   0xa   :  { %204 = vmatprep.subr.bf16.mxu0 %v375_v13  ;;  %245 = vmatprep.subr.bf16.mxu1 %v377_v14  ;;  %v403_v32 = vld [vmem:[%s532_s0] ss:$16 sps:$4 sm:$0xff]   ;;  %v404_v33 = vld [vmem:[%s532_s0 + $0x8] ss:$16 sps:$4 sm:$0xff]  }
   0xb   :  { %48 = vperm.xlu0 %364, %v45_v27   ;;  %v18_v34 = vld [vmem:[%s534_s1] sm:$0xf] }
   0xd   :  { %205 = vmatpush1.bf16.msra.mxu0 %v379_v15  ;;  %246 = vmatpush1.bf16.msra.mxu1 %v380_v16 }
   0xe   :  { %206 = vmatprep.subr.bf16.mxu0 %v381_v17  ;;  %247 = vmatprep.subr.bf16.mxu1 %v383_v18 }
  0x11   :  { %207 = vmatpush1.bf16.msra.mxu0 %v385_v19  ;;  %248 = vmatpush1.bf16.msra.mxu1 %v386_v20 }
  0x12   :  { %208 = vmatprep.subr.bf16.mxu0 %v387_v21  ;;  %249 = vmatprep.subr.bf16.mxu1 %v389_v22 }
  0x15   :  { %209 = vmatpush1.bf16.msra.mxu0 %v391_v23  ;;  %250 = vmatpush1.bf16.msra.mxu1 %v392_v24 }
  0x16   :  { %210 = vmatprep.subr.bf16.mxu0 %v393_v25  ;;  %251 = vmatprep.subr.bf16.mxu1 %v395_v26 }
  0x19   :  { %211 = vmatpush1.bf16.msra.mxu0 %v397_v28  ;;  %252 = vmatpush1.bf16.msra.mxu1 %v398_v29 }
  0x1a   :  { %212 = vmatprep.subr.bf16.mxu0 %v399_v30  ;;  %253 = vmatprep.subr.bf16.mxu1 %v401_v31 }
  0x1d   :  { %213 = vmatpush1.bf16.msra.mxu0 %v403_v32  ;;  %254 = vmatpush1.bf16.msra.mxu1 %v404_v33 }
  0x20   :  { %356 = vmatmul.mubr.msk.bf16.vlgmr.msra.gmra.mxu0 %vm181_vm1, %v18_v34  ;;  %358 = vmatmul.mubr.msk.bf16.vlgmr.msra.gmra.mxu1 %vm181_vm1, %v18_v34 }
  0x86   :  { %v49_v35 = vpop.permute.xlu0 %48 }
  0xe0   :  { %v232_v36 = vpop.f32.mrf.mxu0  ;;  %v273_v37 = vpop.f32.mrf.mxu1 }
  0xe1   :  { %v233_v38 = vadd.f32 %v232_v36, %v49_v35  ;;  %v274_v39 = vadd.f32 %v273_v37, %v49_v35 }
  0xe2   :  { %v234_v40 = vpop.f32.mrf.mxu0  ;;  %v275_v41 = vpop.f32.mrf.mxu1 }
  0xe3   :  { %v235_v42 = vadd.f32 %v234_v40, %v49_v35  ;;  %v276_v43 = vadd.f32 %v275_v41, %v49_v35  ;;  %v287_v44 = vmul.f32 %v233_v38, %v233_v38  ;;  %v289_v54 = vmul.f32 %v274_v39, %v274_v39 }
  0xe4   :  { %v236_v45 = vpop.f32.mrf.mxu0  ;;  %v277_v46 = vpop.f32.mrf.mxu1 }
  0xe5   :  { %v280_v47 = vadd.f32 %v235_v42, %v233_v38  ;;  %v288_v48 = vmul.f32 %v235_v42, %v235_v42  ;;  %v361_v49 = vpack.c.bf16 %v235_v42, %v233_v38  ;;  %v362_v50 = vpack.c.bf16 %v276_v43, %v274_v39 }
  0xe6   :  { %v237_v51 = vpop.f32.mrf.mxu0  ;;  %v278_v52 = vpop.f32.mrf.mxu1  ;;  %v290_v57 = vmul.f32 %v276_v43, %v276_v43 }
  0xe7   :  { %313 = vst [vmem:[%s535_s3] sm:$0xff] %v361_v49  ;;  %314 = vst [vmem:[%s535_s3 + $0x8] sm:$0xff] %v362_v50  ;;  %v281_v53 = vadd.f32 %v280_v47, %v274_v39  ;;  %v291_v55 = vadd.f32 %v288_v48, %v287_v44 }
  0xe9   :  { %v282_v56 = vadd.f32 %v281_v53, %v276_v43  ;;  %v292_v58 = vadd.f32 %v291_v55, %v289_v54 }
  0xeb   :  { %283 = vadd.xlane.f32.xlu0 %v282_v56  ;;  %v293_v59 = vadd.f32 %v292_v58, %v290_v57 }
  0xed   :  { %294 = vadd.xlane.f32.xlu1 %v293_v59 }
 0x174   :  { %v284_v60 = vpop.xlane.xlu0 %283 }
 0x175   :  { %286 = vst.msk [vmem:[%s536_s4] sm:$0xff] %vm285_vm2, %v284_v60 }
 0x176   :  { %v295_v61 = vpop.xlane.xlu1 %294 }
 0x177   :  { %296 = vst.msk [vmem:[%s537_s5] sm:$0xff] %vm285_vm2, %v295_v61 }

// kernel: segmentation_model_forward.13
= control target key start
LH: loop header
LB: loop body
LE: loop exit
PB: predicated region body
PF: predicated region fallthrough
CT: control target
= control target key end

     0   :  { %v82_v0 = vmov 0   ;;  %s155_s4 = inlined_call_operand.vmem [shape: f32[8,1], index: 4, kind: input, shape index: {}]   ;;  %s156_s5 = inlined_call_operand.vmem [shape: f32[8,1], index: 5, kind: input, shape index: {}]   ;;  %s157_s6 = inlined_call_operand.vmem [shape: f32[8,1], index: 6, kind: input, shape index: {}]   ;;  %s158_s7 = inlined_call_operand.vmem [shape: f32[8,1], index: 7, kind: input, shape index: {}]   ;;  %s159_s0 = inlined_call_operand.vmem [shape: bf16[8,128], index: 0, kind: input, shape index: {}]   ;;  %s160_s1 = inlined_call_operand.vmem [shape: bf16[8,128], index: 1, kind: input, shape index: {}]   ;;  %s161_s2 = inlined_call_operand.vmem [shape: bf16[8,128], index: 2, kind: input, shape index: {}]   ;;  %s162_s3 = inlined_call_operand.vmem [shape: bf16[8,128], index: 3, kind: input, shape index: {}]   ;;  %s163_s8 = inlined_call_operand.vmem [shape: bf16[8,128], index: 8, kind: output, shape index: {}]  }
   0x1   :  { %79 = vset.pattern.permute.xlu0 %v82_v0  ;;  %v29_v1 = vld [vmem:[%s155_s4] sm:$0xff] }
   0x2   :  { %v31_v2 = vld [vmem:[%s156_s5] sm:$0xff]  ;;  %v30_v3 = vmul.f32 0.001953125, %v29_v1 }
   0x3   :  { %v32_v4 = vmul.f32 0.001953125, %v31_v2  ;;  %v35_v8 = vld [vmem:[%s157_s6] sm:$0xff] }
   0x4   :  { %v33_v5 = vmul.f32 %v30_v3, %v30_v3  ;;  %v39_v11 = vld [vmem:[%s158_s7] sm:$0xff] }
   0x5   :  { %v42_v14 = vld [vmem:[%s159_s0] sm:$0xf] }
   0x6   :  { %v34_v6 = vsub.f32 %v32_v4, %v33_v5  ;;  %v56_v15 = vld [vmem:[%s160_s1] sm:$0xf]  ;;  %v43_v17 = vunpack.c.l.bf16 %v42_v14 }
   0x7   :  { %v61_v16 = vld [vmem:[%s161_s2] sm:$0xf]  ;;  %v57_v18 = vunpack.c.l.bf16 %v56_v15 }
   0x8   :  { %v36_v7 = vadd.f32 1e-05, %v34_v6  ;;  %v66_v20 = vld [vmem:[%s162_s3] sm:$0xf]  ;;  %v62_v21 = vunpack.c.l.bf16 %v61_v16 }
   0x9   :  { %v67_v24 = vunpack.c.l.bf16 %v66_v20 }
   0xa   :  { %80 = vrsqrt.f32 %v36_v7 }
  0x17   :  { %v81_v9 = vpop.eup %80 }
  0x18   :  { %v38_v10 = vmul.f32 %v81_v9, %v35_v8 }
  0x1a   :  { %46 = vperm.xlu0 %79, %v38_v10   ;;  %v40_v12 = vmul.f32 %v38_v10, %v30_v3 }
  0x1c   :  { %v41_v13 = vsub.f32 %v39_v11, %v40_v12 }
  0x1e   :  { %52 = vperm.xlu0 %79, %v41_v13  }
  0x95   :  { %v47_v19 = vpop.permute.xlu0 %46 }
  0x96   :  { %v49_v22 = vmul.f32 %v47_v19, %v43_v17  ;;  %v58_v23 = vmul.f32 %v57_v18, %v47_v19  ;;  %v63_v28 = vmul.f32 %v62_v21, %v47_v19  ;;  %v68_v31 = vmul.f32 %v67_v24, %v47_v19 }
  0x99   :  { %v53_v25 = vpop.permute.xlu0 %52 }
  0x9a   :  { %v55_v26 = vadd.f32 %v53_v25, %v49_v22  ;;  %v59_v27 = vadd.f32 %v58_v23, %v53_v25  ;;  %v64_v30 = vadd.f32 %v63_v28, %v53_v25  ;;  %v69_v33 = vadd.f32 %v68_v31, %v53_v25 }
  0x9c   :  { %v60_v29 = vmax.f32 %v55_v26, %v59_v27 }
  0x9e   :  { %v65_v32 = vmax.f32 %v60_v29, %v64_v30 }
  0xa0   :  { %v70_v34 = vmax.f32 %v65_v32, %v69_v33 }
  0xa2   :  { %v71_v35 = vmax.f32 %v70_v34, 0.0 }
  0xa4   :  { %v72_v36 = vpack.c.bf16 %v71_v35, %v71_v35 }
  0xa6   :  { %73 = vst [vmem:[%s163_s8] sm:$0xf] %v72_v36 }

// kernel: segmentation_model_forward.21
= control target key start
LH: loop header
LB: loop body
LE: loop exit
PB: predicated region body
PF: predicated region fallthrough
CT: control target
= control target key end

     0   :  { %vm27_vm0 = vcmask 1043456   ;;  %v90_v0 = vmov 0.0   ;;  %vm91_vm1 = vmmov 0   ;;  %v92_v4 = vmov 0   ;;  %s125_s0 = inlined_call_operand.vmem [shape: bf16[8,128], index: 0, kind: input, shape index: {}]   ;;  %s126_s1 = inlined_call_operand.vmem [shape: bf16[8,8], index: 1, kind: input, shape index: {}]   ;;  %s127_s2 = inlined_call_operand.vmem [shape: f32[8,1], index: 2, kind: input, shape index: {}]   ;;  %s128_s3 = inlined_call_operand.vmem [shape: bf16[8,128], index: 3, kind: output, shape index: {}]  }
   0x1   :  { %80 = vmatprep.subr.bf16.mxu0 %v90_v0  ;;  %v16_v1 = vld [vmem:[%s125_s0] sm:$0xf]  ;;  %82 = vmatprep.mubr.msk.bf16.mxu0 %vm91_vm1, %v90_v0  ;;  %vm23_vm2 = vcmask 64512  }
   0x2   :  { %v17_v2 = vld [vmem:[%s127_s2] sm:$0xff]  ;;  %v29_v3 = vsel %vm27_vm0, %v16_v1, 0  ;;  %89 = vset.pattern.permute.xlu0 %v92_v4 }
   0x3   :  { %81 = vmatpush3.bf16.msra.mxu0 %v29_v3  ;;  %v15_v5 = vld [vmem:[%s126_s1] sm:$0xf]  ;;  %20 = vperm.xlu0 %89, %v17_v2  }
   0x6   :  { %83 = vmatmul.mubr.msk.bf16.vlgmr.msra.gmra.mxu0 %vm23_vm2, %v15_v5 }
  0x7e   :  { %v21_v6 = vpop.permute.xlu0 %20 }
  0xc6   :  { %v65_v7 = vpop.f32.mrf.mxu0 }
  0xc7   :  { %v66_v8 = vadd.f32 %v65_v7, %v21_v6 }
  0xc8   :  { %v84_v9 = vpop.f32.mrf.mxu0 }
  0xc9   :  { %v71_v10 = vpack.c.bf16 %v66_v8, %v66_v8 }
  0xca   :  { %v68_v11 = vpop.f32.mrf.mxu0 }
  0xcb   :  { %72 = vst [vmem:[%s128_s3] sm:$0xf] %v71_v10 }
  0xcc   :  { %v85_v12 = vpop.f32.mrf.mxu0 }

// kernel: segmentation_model_forward.14
= control target key start
LH: loop header
LB: loop body
LE: loop exit
PB: predicated region body
PF: predicated region fallthrough
CT: control target
= control target key end

     0   :  { %vm95_vm0 = vcmask 1043456   ;;  %v274_v1 = vmov 0   ;;  %vm91_vm1 = vcmask 588800   ;;  %v175_v16 = vlaneseq  ;;  %s360_s0 = inlined_call_operand.vmem [shape: bf16[72,256], index: 0, kind: input, shape index: {}]   ;;  %s361_s2 = inlined_call_operand.vmem [shape: f32[16,1], index: 2, kind: input, shape index: {}]   ;;  %s362_s1 = inlined_call_operand.vmem [shape: bf16[16,72], index: 1, kind: input, shape index: {}]   ;;  %s363_s3 = inlined_call_operand.vmem [shape: bf16[16,256], index: 3, kind: output, shape index: {0}]   ;;  %s364_s4 = inlined_call_operand.vmem [shape: f32[1,16,1], index: 4, kind: output, shape index: {1}]   ;;  %s365_s5 = inlined_call_operand.vmem [shape: f32[1,16,1], index: 5, kind: output, shape index: {2}]  }
   0x1   :  { %v28_v0 = vld [vmem:[%s360_s0 + $0x40] sm:$0xff]  ;;  %134 = vmatprep.mubr.bf16.mxu0 %v274_v1  ;;  %258 = vset.pattern.permute.xlu0 %v274_v1  ;;  %v261_v4 = vld [vmem:[%s360_s0 + $0x34] ss:$8 sps:$4 sm:$0xff]   ;;  %v263_v6 = vld [vmem:[%s360_s0 + $0x30] ss:$8 sps:$4 sm:$0xff]   ;;  %v275_v23 = vmov 0.0  }
   0x2   :  { %v248_v2 = vcombine.high %v28_v0, %v28_v0  ;;  %v247_v3 = vcombine.low %v28_v0, %v28_v0  ;;  %v264_v7 = vld [vmem:[%s360_s0 + $0x24] ss:$8 sps:$4 sm:$0xff]   ;;  %v266_v9 = vld [vmem:[%s360_s0 + $0x20] ss:$8 sps:$4 sm:$0xff]   ;;  %v267_v11 = vld [vmem:[%s360_s0 + $0x14] ss:$8 sps:$4 sm:$0xff]  }
   0x3   :  { %v29_v8 = vld [vmem:[%s361_s2] sm:$0xff]  ;;  %v30_v10 = vld [vmem:[%s361_s2 + $0x8] sm:$0xff]  ;;  %v269_v12 = vld [vmem:[%s360_s0 + $0x10] ss:$8 sps:$4 sm:$0xff]   ;;  %v176_v17 = vand.u32 127, %v175_v16  ;;  %vm197_vm3 = vcmask 7168  }
   0x4   :  { %249 = vmatprep.subr.msk.bf16.mxu0 %vm95_vm0, %v248_v2  ;;  %v97_v5 = vsel %vm95_vm0, %v247_v3, 0  ;;  %33 = vperm.xlu0 %258, %v29_v8   ;;  %v270_v13 = vld [vmem:[%s360_s0 + $0x4] ss:$8 sps:$4 sm:$0xff]   ;;  %v272_v14 = vld [vmem:[%s360_s0] ss:$8 sps:$4 sm:$0xff]  }
   0x5   :  { %109 = vmatpush1.bf16.msra.mxu0 %v97_v5  ;;  %v273_v15 = vld [vmem:[%s362_s1] sm:$0xff]   ;;  %v177_v18 = vadd.s32 128, %v176_v17 }
   0x6   :  { %110 = vmatprep.subr.bf16.mxu0 %v261_v4 }
   0x7   :  { %vm182_vm2 = vcmp.lt.s32.totalorder %v177_v18, 200 }
   0x8   :  { %38 = vperm.xlu0 %258, %v30_v10   ;;  %v251_v24 = vsel %vm182_vm2, 1.0, %v275_v23 }
   0x9   :  { %111 = vmatpush1.bf16.msra.mxu0 %v263_v6 }
   0xa   :  { %112 = vmatprep.subr.bf16.mxu0 %v264_v7 }
   0xd   :  { %113 = vmatpush1.bf16.msra.mxu0 %v266_v9 }
   0xe   :  { %114 = vmatprep.subr.bf16.mxu0 %v267_v11 }
  0x11   :  { %115 = vmatpush1.bf16.msra.mxu0 %v269_v12 }
  0x12   :  { %116 = vmatprep.subr.bf16.mxu0 %v270_v13 }
  0x15   :  { %117 = vmatpush1.bf16.msra.mxu0 %v272_v14 }
  0x18   :  { %250 = vmatmul.mubr.msk.bf16.vlgmr.msra.gmra.mxu0 %vm91_vm1, %v273_v15 }
  0x7f   :  { %v34_v19 = vpop.permute.xlu0 %33 }
  0x83   :  { %v39_v29 = vpop.permute.xlu0 %38 }
  0xd8   :  { %v136_v20 = vpop.f32.mrf.mxu0 }
  0xd9   :  { %v137_v21 = vadd.f32 %v136_v20, %v34_v19 }
  0xda   :  { %v138_v22 = vpop.f32.mrf.mxu0 }
  0xdb   :  { %v139_v25 = vadd.f32 %v138_v22, %v34_v19  ;;  %v200_v31 = vmul.f32 %v137_v21, %v137_v21 }
  0xdc   :  { %v140_v26 = vpop.f32.mrf.mxu0 }
  0xdd   :  { %v254_v27 = vpack.c.bf16 %v139_v25, %v137_v21  ;;  %v188_v28 = vmul.f32 %v251_v24, %v139_v25  ;;  %v141_v32 = vadd.f32 %v140_v26, %v39_v29 }
  0xde   :  { %v142_v30 = vpop.f32.mrf.mxu0 }
  0xdf   :  { %224 = vst [vmem:[%s363_s3] sm:$0xff] %v254_v27  ;;  %v143_v33 = vadd.f32 %v142_v30, %v39_v29  ;;  %v191_v34 = vadd.f32 %v188_v28, %v137_v21  ;;  %v201_v35 = vmul.f32 %v188_v28, %v139_v25  ;;  %v202_v41 = vmul.f32 %v141_v32, %v141_v32 }
  0xe1   :  { %v255_v36 = vpack.c.bf16 %v143_v33, %v141_v32  ;;  %192 = vadd.xlane.f32.xlu1 %v191_v34  ;;  %v204_v37 = vadd.f32 %v201_v35, %v200_v31  ;;  %v190_v38 = vmul.f32 %v251_v24, %v143_v33 }
  0xe3   :  { %225 = vst [vmem:[%s363_s3 + $0x8] sm:$0xff] %v255_v36  ;;  %205 = vadd.xlane.f32.xlu0 %v204_v37  ;;  %v194_v39 = vadd.f32 %v190_v38, %v141_v32  ;;  %v203_v40 = vmul.f32 %v190_v38, %v143_v33 }
  0xe5   :  { %195 = vadd.xlane.f32.xlu1 %v194_v39  ;;  %v207_v42 = vadd.f32 %v203_v40, %v202_v41 }
  0xe9   :  { %208 = vadd.xlane.f32.xlu1 %v207_v42 }
 0x16a   :  { %v193_v43 = vpop.xlane.xlu1 %192 }
 0x16b   :  { %198 = vst.msk [vmem:[%s364_s4] sm:$0xff] %vm197_vm3, %v193_v43 }
 0x16c   :  { %v206_v44 = vpop.xlane.xlu0 %205 }
 0x16d   :  { %210 = vst.msk [vmem:[%s365_s5] sm:$0xff] %vm197_vm3, %v206_v44 }
 0x16e   :  { %v196_v45 = vpop.xlane.xlu1 %195 }
 0x16f   :  { %199 = vst.msk [vmem:[%s364_s4 + $0x8] sm:$0xff] %vm197_vm3, %v196_v45 }
 0x172   :  { %v209_v46 = vpop.xlane.xlu1 %208 }
 0x173   :  { %211 = vst.msk [vmem:[%s365_s5 + $0x8] sm:$0xff] %vm197_vm3, %v209_v46 }

// kernel: segmentation_model_forward.15
= control target key start
LH: loop header
LB: loop body
LE: loop exit
PB: predicated region body
PF: predicated region fallthrough
CT: control target
= control target key end

     0   :  { %v161_v0 = vmov 0   ;;  %s246_s4 = inlined_call_operand.vmem [shape: f32[16,1], index: 4, kind: input, shape index: {}]   ;;  %s247_s5 = inlined_call_operand.vmem [shape: f32[16,1], index: 5, kind: input, shape index: {}]   ;;  %s248_s6 = inlined_call_operand.vmem [shape: f32[16,1], index: 6, kind: input, shape index: {}]   ;;  %s249_s7 = inlined_call_operand.vmem [shape: f32[16,1], index: 7, kind: input, shape index: {}]   ;;  %s250_s0 = inlined_call_operand.vmem [shape: bf16[16,128], index: 0, kind: input, shape index: {}]   ;;  %s251_s1 = inlined_call_operand.vmem [shape: bf16[16,128], index: 1, kind: input, shape index: {}]   ;;  %s252_s2 = inlined_call_operand.vmem [shape: bf16[16,128], index: 2, kind: input, shape index: {}]   ;;  %s253_s3 = inlined_call_operand.vmem [shape: bf16[16,128], index: 3, kind: input, shape index: {}]   ;;  %s254_s8 = inlined_call_operand.vmem [shape: bf16[16,128], index: 8, kind: output, shape index: {}]  }
   0x1   :  { %155 = vset.pattern.permute.xlu0 %v161_v0  ;;  %v29_v1 = vld [vmem:[%s246_s4] sm:$0xff]  ;;  %v30_v2 = vld [vmem:[%s246_s4 + $0x8] sm:$0xff]  ;;  %156 = vset.pattern.permute.xlu1 %v161_v0 }
   0x2   :  { %v33_v3 = vld [vmem:[%s247_s5] sm:$0xff]  ;;  %v31_v4 = vmul.f32 0.005, %v29_v1  ;;  %v34_v5 = vld [vmem:[%s247_s5 + $0x8] sm:$0xff]  ;;  %v32_v7 = vmul.f32 0.005, %v30_v2 }
   0x3   :  { %v35_v6 = vmul.f32 0.005, %v33_v3  ;;  %v36_v8 = vmul.f32 0.005, %v34_v5  ;;  %v41_v15 = vld [vmem:[%s248_s6] sm:$0xff]  ;;  %v42_v16 = vld [vmem:[%s248_s6 + $0x8] sm:$0xff] }
   0x4   :  { %v37_v9 = vmul.f32 %v31_v4, %v31_v4  ;;  %v38_v10 = vmul.f32 %v32_v7, %v32_v7  ;;  %v49_v21 = vld [vmem:[%s249_s7] sm:$0xff]  ;;  %v50_v23 = vld [vmem:[%s249_s7 + $0x8] sm:$0xff] }
   0x5   :  { %v134_v27 = vld [vmem:[%s250_s0] sm:$0xff]  }
   0x6   :  { %v39_v11 = vsub.f32 %v35_v6, %v37_v9  ;;  %v40_v12 = vsub.f32 %v36_v8, %v38_v10  ;;  %v138_v28 = vld [vmem:[%s251_s1] sm:$0xff]   ;;  %v135_v30 = vunpack.c.l.bf16 %v134_v27  ;;  %v136_v38 = vunpack.c.h.bf16 %v134_v27 }
   0x7   :  { %v142_v29 = vld [vmem:[%s252_s2] sm:$0xff]   ;;  %v139_v31 = vunpack.c.l.bf16 %v138_v28  ;;  %v140_v39 = vunpack.c.h.bf16 %v138_v28 }
   0x8   :  { %v43_v13 = vadd.f32 1e-05, %v39_v11  ;;  %v44_v14 = vadd.f32 1e-05, %v40_v12  ;;  %v143_v33 = vunpack.c.l.bf16 %v142_v29  ;;  %v146_v34 = vld [vmem:[%s253_s3] sm:$0xff]   ;;  %v144_v43 = vunpack.c.h.bf16 %v142_v29 }
   0x9   :  { %v147_v37 = vunpack.c.l.bf16 %v146_v34  ;;  %v148_v49 = vunpack.c.h.bf16 %v146_v34 }
   0xa   :  { %157 = vrsqrt.f32 %v43_v13 }
   0xb   :  { %159 = vrsqrt.f32 %v44_v14 }
  0x17   :  { %v158_v17 = vpop.eup %157 }
  0x18   :  { %v160_v18 = vpop.eup %159  ;;  %v47_v19 = vmul.f32 %v158_v17, %v41_v15 }
  0x19   :  { %v48_v20 = vmul.f32 %v160_v18, %v42_v16 }
  0x1a   :  { %61 = vperm.xlu0 %155, %v47_v19   ;;  %v51_v22 = vmul.f32 %v47_v19, %v31_v4 }
  0x1b   :  { %v52_v24 = vmul.f32 %v48_v20, %v32_v7 }
  0x1c   :  { %v53_v25 = vsub.f32 %v49_v21, %v51_v22 }
  0x1d   :  { %v54_v26 = vsub.f32 %v50_v23, %v52_v24 }
  0x1e   :  { %66 = vperm.xlu0 %155, %v48_v20   ;;  %73 = vperm.xlu1 %156, %v53_v25  }
  0x22   :  { %78 = vperm.xlu1 %156, %v54_v26  }
  0x95   :  { %v62_v32 = vpop.permute.xlu0 %61 }
  0x96   :  { %v69_v35 = vmul.f32 %v135_v30, %v62_v32  ;;  %v87_v36 = vmul.f32 %v139_v31, %v62_v32  ;;  %v97_v40 = vmul.f32 %v143_v33, %v62_v32  ;;  %v107_v46 = vmul.f32 %v147_v37, %v62_v32 }
  0x99   :  { %v67_v41 = vpop.permute.xlu0 %66  ;;  %v74_v42 = vpop.permute.xlu1 %73 }
  0x9a   :  { %v81_v44 = vadd.f32 %v74_v42, %v69_v35  ;;  %v89_v45 = vadd.f32 %v87_v36, %v74_v42  ;;  %v70_v47 = vmul.f32 %v136_v38, %v67_v41  ;;  %v88_v48 = vmul.f32 %v140_v39, %v67_v41 }
  0x9b   :  { %v99_v51 = vadd.f32 %v97_v40, %v74_v42  ;;  %v98_v53 = vmul.f32 %v144_v43, %v67_v41  ;;  %v108_v57 = vmul.f32 %v148_v49, %v67_v41  ;;  %v109_v58 = vadd.f32 %v107_v46, %v74_v42 }
  0x9c   :  { %v91_v50 = vmax.f32 %v81_v44, %v89_v45 }
  0x9d   :  { %v79_v52 = vpop.permute.xlu1 %78 }
  0x9e   :  { %v82_v54 = vadd.f32 %v79_v52, %v70_v47  ;;  %v90_v55 = vadd.f32 %v88_v48, %v79_v52  ;;  %v101_v56 = vmax.f32 %v91_v50, %v99_v51  ;;  %v100_v60 = vadd.f32 %v98_v53, %v79_v52 }
  0x9f   :  { %v110_v63 = vadd.f32 %v108_v57, %v79_v52 }
  0xa0   :  { %v92_v59 = vmax.f32 %v82_v54, %v90_v55  ;;  %v111_v61 = vmax.f32 %v101_v56, %v109_v58 }
  0xa2   :  { %v102_v62 = vmax.f32 %v92_v59, %v100_v60  ;;  %v113_v1 = vmax.f32 %v111_v61, 0.0 }
  0xa4   :  { %v112_v0 = vmax.f32 %v102_v62, %v110_v63 }
  0xa6   :  { %v114_v2 = vmax.f32 %v112_v0, 0.0 }
  0xa8   :  { %v152_v3 = vpack.c.bf16 %v114_v2, %v113_v1 }
  0xaa   :  { %153 = vst [vmem:[%s254_s8] sm:$0xff] %v152_v3  }

// kernel: segmentation_model_forward.18
= control target key start
LH: loop header
LB: loop body
LE: loop exit
PB: predicated region body
PF: predicated region fallthrough
CT: control target
= control target key end

     0   :  { %v127_v0 = vmov 0.0   ;;  %vm128_vm0 = vmmov 0   ;;  %v129_v3 = vmov 0   ;;  %vm42_vm1 = vcmask 130048   ;;  %s165_s0 = inlined_call_operand.vmem [shape: bf16[16,128], index: 0, kind: input, shape index: {}]   ;;  %s166_s1 = inlined_call_operand.vmem [shape: bf16[16,16], index: 1, kind: input, shape index: {}]   ;;  %s167_s2 = inlined_call_operand.vmem [shape: f32[16,1], index: 2, kind: input, shape index: {}]   ;;  %s168_s3 = inlined_call_operand.vmem [shape: bf16[16,128], index: 3, kind: output, shape index: {}]  }
   0x1   :  { %115 = vmatprep.subr.bf16.mxu0 %v127_v0  ;;  %v125_v1 = vld [vmem:[%s165_s0] sm:$0xff]   ;;  %117 = vmatprep.mubr.msk.bf16.mxu0 %vm128_vm0, %v127_v0  ;;  %v20_v5 = vld [vmem:[%s167_s2 + $0x8] sm:$0xff] }
   0x2   :  { %v126_v2 = vld [vmem:[%s166_s1] sm:$0xff]   ;;  %124 = vset.pattern.permute.xlu0 %v129_v3  ;;  %116 = vmatpush3.bf16.msra.mxu0 %v125_v1 }
   0x3   :  { %v19_v4 = vld [vmem:[%s167_s2] sm:$0xff] }
   0x4   :  { %23 = vperm.xlu0 %124, %v19_v4  }
   0x5   :  { %118 = vmatmul.mubr.msk.bf16.vlgmr.msra.gmra.mxu0 %vm42_vm1, %v126_v2 }
   0x8   :  { %28 = vperm.xlu0 %124, %v20_v5  }
  0x7f   :  { %v24_v6 = vpop.permute.xlu0 %23 }
  0x83   :  { %v29_v9 = vpop.permute.xlu0 %28 }
  0xc5   :  { %v80_v7 = vpop.f32.mrf.mxu0 }
  0xc6   :  { %v81_v11 = vadd.f32 %v80_v7, %v24_v6 }
  0xc7   :  { %v119_v8 = vpop.f32.mrf.mxu0 }
  0xc9   :  { %v83_v10 = vpop.f32.mrf.mxu0 }
  0xca   :  { %v84_v12 = vadd.f32 %v83_v10, %v29_v9 }
  0xcb   :  { %v120_v13 = vpop.f32.mrf.mxu0 }
  0xcc   :  { %v111_v14 = vpack.c.bf16 %v84_v12, %v81_v11 }
  0xce   :  { %112 = vst [vmem:[%s168_s3] sm:$0xff] %v111_v14  }

// kernel: segmentation_model_forward.16
= control target key start
LH: loop header
LB: loop body
LE: loop exit
PB: predicated region body
PF: predicated region fallthrough
CT: control target
= control target key end

     0   :  { %v287_v0 = vmov 0   ;;  %vm133_vm0 = vcmask 130048   ;;  %s365_s0 = inlined_call_operand.vmem [shape: bf16[144,128], index: 0, kind: input, shape index: {}]   ;;  %s366_s1 = inlined_call_operand.vmem [shape: bf16[32,144], index: 1, kind: input, shape index: {}]   ;;  %s367_s2 = inlined_call_operand.vmem [shape: f32[32,1], index: 2, kind: input, shape index: {}]   ;;  %s368_s3 = inlined_call_operand.vmem [shape: bf16[32,128], index: 3, kind: output, shape index: {}]  }
   0x1   :  { %140 = vmatprep.subr.bf16.mxu0 %v287_v0  ;;  %251 = vmatprep.subr.bf16.mxu1 %v287_v0  ;;  %v272_v1 = vld [vmem:[%s365_s0 + $0x38] sm:$0xff]   ;;  %v273_v2 = vld [vmem:[%s365_s0 + $0x30] sm:$0xff]   ;;  %v274_v3 = vld [vmem:[%s365_s0 + $0x28] sm:$0xff]  }
   0x2   :  { %271 = vset.pattern.permute.xlu1 %v287_v0  ;;  %270 = vset.pattern.permute.xlu0 %v287_v0  ;;  %v275_v4 = vld [vmem:[%s365_s0 + $0x20] sm:$0xff]   ;;  %v286_v6 = vld [vmem:[%s366_s1 + $0x14] ss:$8 sps:$4 sm:$0xff]   ;;  %v38_v11 = vld [vmem:[%s367_s2 + $0x8] sm:$0xff] }
   0x3   :  { %141 = vmatpush1.bf16.msra.mxu0 %v272_v1  ;;  %260 = vmatpush1.bf16.msra.mxu1 %v272_v1  ;;  %v283_v5 = vld [vmem:[%s366_s1 + $0x4] ss:$8 sps:$4 sm:$0xff]   ;;  %v39_v7 = vld [vmem:[%s367_s2 + $0x10] sm:$0xff]  ;;  %v40_v9 = vld [vmem:[%s367_s2 + $0x18] sm:$0xff] }
   0x4   :  { %142 = vmatprep.subr.bf16.mxu0 %v287_v0  ;;  %252 = vmatprep.subr.bf16.mxu1 %v287_v0  ;;  %v37_v8 = vld [vmem:[%s367_s2] sm:$0xff]  ;;  %v276_v10 = vld [vmem:[%s365_s0 + $0x18] sm:$0xff]   ;;  %v277_v12 = vld [vmem:[%s365_s0 + $0x10] sm:$0xff]  }
   0x5   :  { %230 = vmatprep.mubr.msk.bf16.mxu0 %vm133_vm0, %v283_v5  ;;  %53 = vperm.xlu1 %271, %v39_v7   ;;  %v278_v13 = vld [vmem:[%s365_s0 + $0x8] sm:$0xff]   ;;  %v279_v14 = vld [vmem:[%s365_s0] sm:$0xff]   ;;  %v284_v17 = vld [vmem:[%s366_s1 + $0x10] ss:$8 sps:$4 sm:$0xff]  }
   0x6   :  { %231 = vmatprep.mubr.msk.bf16.mxu1 %vm133_vm0, %v286_v6  ;;  %43 = vperm.xlu0 %270, %v37_v8   ;;  %v280_v15 = vld [vmem:[%s365_s0 + $0x40] sm:$0xff]  }
   0x7   :  { %143 = vmatpush1.bf16.msra.mxu0 %v273_v2  ;;  %261 = vmatpush1.bf16.msra.mxu1 %v273_v2  ;;  %v281_v16 = vld [vmem:[%s366_s1] ss:$8 sps:$4 sm:$0xff]  }
   0x8   :  { %144 = vmatprep.subr.bf16.mxu0 %v287_v0  ;;  %253 = vmatprep.subr.bf16.mxu1 %v287_v0 }
   0x9   :  { %58 = vperm.xlu1 %271, %v40_v9  }
   0xa   :  { %48 = vperm.xlu0 %270, %v38_v11  }
   0xb   :  { %145 = vmatpush1.bf16.msra.mxu0 %v274_v3  ;;  %262 = vmatpush1.bf16.msra.mxu1 %v274_v3 }
   0xc   :  { %146 = vmatprep.subr.bf16.mxu0 %v287_v0  ;;  %254 = vmatprep.subr.bf16.mxu1 %v287_v0 }
   0xf   :  { %147 = vmatpush1.bf16.msra.mxu0 %v275_v4  ;;  %263 = vmatpush1.bf16.msra.mxu1 %v275_v4 }
  0x10   :  { %148 = vmatprep.subr.bf16.mxu0 %v287_v0  ;;  %255 = vmatprep.subr.bf16.mxu1 %v287_v0 }
  0x13   :  { %149 = vmatpush1.bf16.msra.mxu0 %v276_v10  ;;  %264 = vmatpush1.bf16.msra.mxu1 %v276_v10 }
  0x14   :  { %150 = vmatprep.subr.bf16.mxu0 %v287_v0  ;;  %256 = vmatprep.subr.bf16.mxu1 %v287_v0 }
  0x17   :  { %151 = vmatpush1.bf16.msra.mxu0 %v277_v12  ;;  %265 = vmatpush1.bf16.msra.mxu1 %v277_v12 }
  0x18   :  { %152 = vmatprep.subr.bf16.mxu0 %v287_v0  ;;  %257 = vmatprep.subr.bf16.mxu1 %v287_v0 }
  0x1b   :  { %153 = vmatpush1.bf16.msra.mxu0 %v278_v13  ;;  %266 = vmatpush1.bf16.msra.mxu1 %v278_v13 }
  0x1c   :  { %154 = vmatprep.subr.bf16.mxu0 %v287_v0  ;;  %258 = vmatprep.subr.bf16.mxu1 %v287_v0 }
  0x1f   :  { %155 = vmatpush1.bf16.msra.mxu0 %v279_v14  ;;  %267 = vmatpush1.bf16.msra.mxu1 %v279_v14 }
  0x20   :  { %170 = vmatprep.subr.bf16.mxu0 %v287_v0  ;;  %259 = vmatprep.subr.bf16.mxu1 %v287_v0 }
  0x23   :  { %171 = vmatpush2.bf16.msra.mxu0 %v280_v15  ;;  %268 = vmatpush2.bf16.msra.mxu1 %v280_v15 }
  0x26   :  { %173 = vmatmul.mubr.bf16.vlgmr.msra.gmra.mxu0 %v281_v16  ;;  %181 = vmatmul.mubr.bf16.vlgmr.msra.gmra.mxu1 %v284_v17 }
  0x80   :  { %v54_v18 = vpop.permute.xlu1 %53 }
  0x81   :  { %v44_v19 = vpop.permute.xlu0 %43 }
  0x84   :  { %v59_v24 = vpop.permute.xlu1 %58 }
  0x85   :  { %v49_v25 = vpop.permute.xlu0 %48 }
  0xe6   :  { %v174_v20 = vpop.f32.mrf.mxu0  ;;  %v182_v21 = vpop.f32.mrf.mxu1 }
  0xe7   :  { %v175_v26 = vadd.f32 %v174_v20, %v44_v19  ;;  %v183_v27 = vadd.f32 %v182_v21, %v54_v18 }
  0xe8   :  { %v176_v22 = vpop.f32.mrf.mxu0  ;;  %v184_v23 = vpop.f32.mrf.mxu1 }
  0xe9   :  { %v189_v34 = vmax.f32 %v175_v26, 0.0  ;;  %v191_v35 = vmax.f32 %v183_v27, 0.0 }
  0xea   :  { %v177_v28 = vpop.f32.mrf.mxu0  ;;  %v185_v29 = vpop.f32.mrf.mxu1 }
  0xeb   :  { %v178_v30 = vadd.f32 %v177_v28, %v49_v25  ;;  %v186_v31 = vadd.f32 %v185_v29, %v59_v24 }
  0xec   :  { %v179_v32 = vpop.f32.mrf.mxu0  ;;  %v187_v33 = vpop.f32.mrf.mxu1 }
  0xed   :  { %v190_v36 = vmax.f32 %v178_v30, 0.0  ;;  %v192_v37 = vmax.f32 %v186_v31, 0.0 }
  0xef   :  { %v243_v38 = vpack.c.bf16 %v190_v36, %v189_v34  ;;  %v248_v39 = vpack.c.bf16 %v192_v37, %v191_v35 }
  0xf1   :  { %244 = vst [vmem:[%s368_s3] sm:$0xff] %v243_v38   ;;  %250 = vst [vmem:[%s368_s3 + $0x8] sm:$0xff] %v248_v39  }

// kernel: segmentation_model_forward.17
= control target key start
LH: loop header
LB: loop body
LE: loop exit
PB: predicated region body
PF: predicated region fallthrough
CT: control target
= control target key end

     0   :  { %v382_v1 = vmov 0.0   ;;  %vm383_vm0 = vmmov 0   ;;  %v384_v3 = vmov 0   ;;  %vm190_vm1 = vcmask 261120   ;;  %s477_s0 = inlined_call_operand.vmem [shape: bf16[288,128], index: 0, kind: input, shape index: {}]   ;;  %s478_s1 = inlined_call_operand.vmem [shape: bf16[16,288], index: 1, kind: input, shape index: {}]   ;;  %s479_s2 = inlined_call_operand.vmem [shape: f32[16,1], index: 2, kind: input, shape index: {}]   ;;  %s480_s3 = inlined_call_operand.vmem [shape: bf16[16,128], index: 3, kind: output, shape index: {}]  }
   0x1   :  { %v360_v0 = vld [vmem:[%s477_s0 + $0x78] sm:$0xff]   ;;  %348 = vmatprep.subr.bf16.mxu1 %v382_v1  ;;  %352 = vmatprep.mubr.msk.bf16.mxu1 %vm383_vm0, %v382_v1  ;;  %v362_v4 = vld [vmem:[%s477_s0 + $0x70] sm:$0xff]   ;;  %v364_v6 = vld [vmem:[%s477_s0 + $0x68] sm:$0xff]  }
   0x2   :  { %v361_v2 = vld [vmem:[%s477_s0 + $0x38] sm:$0xff]   ;;  %359 = vset.pattern.permute.xlu0 %v384_v3  ;;  %323 = vmatprep.subr.bf16.mxu0 %v360_v0  ;;  %v363_v5 = vld [vmem:[%s477_s0 + $0x30] sm:$0xff]   ;;  %v365_v7 = vld [vmem:[%s477_s0 + $0x28] sm:$0xff]  }
   0x3   :  { %324 = vmatpush3.bf16.msra.mxu0 %v361_v2  ;;  %v366_v8 = vld [vmem:[%s477_s0 + $0x60] sm:$0xff]   ;;  %v368_v10 = vld [vmem:[%s477_s0 + $0x58] sm:$0xff]   ;;  %v374_v11 = vld [vmem:[%s477_s0 + $0x88] sm:$0xff]  }
   0x4   :  { %325 = vmatprep.subr.bf16.mxu0 %v362_v4  ;;  %v367_v9 = vld [vmem:[%s477_s0 + $0x20] sm:$0xff]   ;;  %v369_v12 = vld [vmem:[%s477_s0 + $0x18] sm:$0xff]   ;;  %v370_v13 = vld [vmem:[%s477_s0 + $0x50] sm:$0xff]   ;;  %349 = vmatpush3.bf16.msra.mxu1 %v374_v11 }
   0x5   :  { %350 = vmatprep.subr.bf16.mxu1 %v382_v1  ;;  %v377_v14 = vld [vmem:[%s477_s0 + $0x80] sm:$0xff]   ;;  %v371_v15 = vld [vmem:[%s477_s0 + $0x10] sm:$0xff]   ;;  %v372_v17 = vld [vmem:[%s477_s0 + $0x48] sm:$0xff]  }
   0x6   :  { %v380_v16 = vld [vmem:[%s478_s1 + $0x4] ss:$12 sps:$4 sm:$0xff]   ;;  %v381_v18 = vld [vmem:[%s478_s1 + $0x8] ss:$12 sps:$4 sm:$0xff]   ;;  %v378_v24 = vld [vmem:[%s478_s1] ss:$12 sps:$4 sm:$0xff]  }
   0x7   :  { %326 = vmatpush3.bf16.msra.mxu0 %v363_v5  ;;  %v55_v19 = vld [vmem:[%s479_s2] sm:$0xff]  ;;  %226 = vmatprep.mubr.bf16.mxu0 %v380_v16  ;;  %v56_v20 = vld [vmem:[%s479_s2 + $0x8] sm:$0xff] }
   0x8   :  { %327 = vmatprep.subr.bf16.mxu0 %v364_v6  ;;  %351 = vmatpush3.bf16.msra.mxu1 %v377_v14  ;;  %v373_v21 = vld [vmem:[%s477_s0 + $0x8] sm:$0xff]   ;;  %v375_v22 = vld [vmem:[%s477_s0 + $0x40] sm:$0xff]  }
   0x9   :  { %59 = vperm.xlu0 %359, %v55_v19   ;;  %v376_v23 = vld [vmem:[%s477_s0] sm:$0xff]  }
   0xb   :  { %328 = vmatpush3.bf16.msra.mxu0 %v365_v7  ;;  %353 = vmatmul.mubr.msk.bf16.vlgmr.msra.gmra.mxu1 %vm190_vm1, %v381_v18 }
   0xc   :  { %329 = vmatprep.subr.bf16.mxu0 %v366_v8 }
   0xd   :  { %64 = vperm.xlu0 %359, %v56_v20  }
   0xf   :  { %330 = vmatpush3.bf16.msra.mxu0 %v367_v9 }
  0x10   :  { %331 = vmatprep.subr.bf16.mxu0 %v368_v10 }
  0x13   :  { %332 = vmatpush3.bf16.msra.mxu0 %v369_v12 }
  0x14   :  { %333 = vmatprep.subr.bf16.mxu0 %v370_v13 }
  0x17   :  { %334 = vmatpush3.bf16.msra.mxu0 %v371_v15 }
  0x18   :  { %335 = vmatprep.subr.bf16.mxu0 %v372_v17 }
  0x1b   :  { %336 = vmatpush3.bf16.msra.mxu0 %v373_v21 }
  0x1c   :  { %337 = vmatprep.subr.bf16.mxu0 %v375_v22 }
  0x1f   :  { %338 = vmatpush3.bf16.msra.mxu0 %v376_v23 }
  0x22   :  { %227 = vmatmul.mubr.bf16.vlgmr.msra.gmra.mxu0 %v378_v24 }
  0x84   :  { %v60_v30 = vpop.permute.xlu0 %59 }
  0x88   :  { %v65_v37 = vpop.permute.xlu0 %64 }
  0xcb   :  { %v269_v25 = vpop.f32.mrf.mxu1 }
  0xcd   :  { %v354_v26 = vpop.f32.mrf.mxu1 }
  0xcf   :  { %v272_v27 = vpop.f32.mrf.mxu1 }
  0xd1   :  { %v355_v28 = vpop.f32.mrf.mxu1 }
  0xe2   :  { %v339_v29 = vpop.f32.mrf.mxu0 }
  0xe4   :  { %v340_v31 = vpop.f32.mrf.mxu0 }
  0xe5   :  { %v341_v32 = vadd.f32 %v340_v31, %v339_v29 }
  0xe6   :  { %v342_v33 = vpop.f32.mrf.mxu0 }
  0xe7   :  { %v229_v34 = vadd.f32 %v341_v32, %v60_v30 }
  0xe8   :  { %v343_v35 = vpop.f32.mrf.mxu0 }
  0xe9   :  { %v344_v36 = vadd.f32 %v343_v35, %v342_v33  ;;  %v270_v38 = vadd.f32 %v269_v25, %v229_v34 }
  0xeb   :  { %v232_v39 = vadd.f32 %v344_v36, %v65_v37  ;;  %v276_v41 = vmax.f32 %v270_v38, 0.0 }
  0xed   :  { %v273_v40 = vadd.f32 %v272_v27, %v232_v39 }
  0xef   :  { %v277_v42 = vmax.f32 %v273_v40, 0.0 }
  0xf1   :  { %v321_v43 = vpack.c.bf16 %v277_v42, %v276_v41 }
  0xf3   :  { %322 = vst [vmem:[%s480_s3] sm:$0xff] %v321_v43  }

// kernel: segmentation_model_forward.19
= control target key start
LH: loop header
LB: loop body
LE: loop exit
PB: predicated region body
PF: predicated region fallthrough
CT: control target
= control target key end

     0   :  { %v346_v0 = vmov 0   ;;  %vm122_vm0 = vcmask 130048   ;;  %vm278_vm1 = vcmask 7168   ;;  %s478_s2 = inlined_call_operand.vmem [shape: bf16[144,128], index: 2, kind: input, shape index: {}]   ;;  %s479_s0 = inlined_call_operand.vmem [shape: bf16[144,128], index: 0, kind: input, shape index: {}]   ;;  %s480_s3 = inlined_call_operand.vmem [shape: bf16[8,144], index: 3, kind: input, shape index: {}]   ;;  %s481_s1 = inlined_call_operand.vmem [shape: bf16[8,144], index: 1, kind: input, shape index: {}]   ;;  %s482_s4 = inlined_call_operand.vmem [shape: f32[8,1], index: 4, kind: input, shape index: {}]   ;;  %s483_s5 = inlined_call_operand.vmem [shape: bf16[8,128], index: 5, kind: output, shape index: {0}]   ;;  %s484_s6 = inlined_call_operand.vmem [shape: f32[1,8,1], index: 6, kind: output, shape index: {1}]   ;;  %s485_s7 = inlined_call_operand.vmem [shape: f32[1,8,1], index: 7, kind: output, shape index: {2}]  }
   0x1   :  { %126 = vmatprep.subr.bf16.mxu0 %v346_v0  ;;  %229 = vmatprep.subr.bf16.mxu1 %v346_v0  ;;  %v324_v1 = vld [vmem:[%s478_s2 + $0x38] sm:$0xff]   ;;  %v326_v3 = vld [vmem:[%s478_s2 + $0x30] sm:$0xff]   ;;  %v328_v5 = vld [vmem:[%s478_s2 + $0x28] sm:$0xff]  }
   0x2   :  { %v325_v2 = vld [vmem:[%s479_s0 + $0x38] sm:$0xff]   ;;  %323 = vset.pattern.permute.xlu0 %v346_v0  ;;  %127 = vmatpush1.bf16.msra.mxu0 %v324_v1  ;;  %v327_v4 = vld [vmem:[%s479_s0 + $0x30] sm:$0xff]   ;;  %v329_v6 = vld [vmem:[%s479_s0 + $0x28] sm:$0xff]  }
   0x3   :  { %230 = vmatpush1.bf16.msra.mxu1 %v325_v2  ;;  %128 = vmatprep.subr.bf16.mxu0 %v346_v0  ;;  %v330_v7 = vld [vmem:[%s478_s2 + $0x20] sm:$0xff]   ;;  %v332_v9 = vld [vmem:[%s478_s2 + $0x18] sm:$0xff]   ;;  %v334_v11 = vld [vmem:[%s478_s2 + $0x10] sm:$0xff]  }
   0x4   :  { %231 = vmatprep.subr.bf16.mxu1 %v346_v0  ;;  %v331_v8 = vld [vmem:[%s479_s0 + $0x20] sm:$0xff]   ;;  %v333_v10 = vld [vmem:[%s479_s0 + $0x18] sm:$0xff]   ;;  %v335_v15 = vld [vmem:[%s479_s0 + $0x10] sm:$0xff]  }
   0x5   :  { %v43_v12 = vld [vmem:[%s480_s3] sm:$0xff]  ;;  %v336_v18 = vld [vmem:[%s478_s2 + $0x8] sm:$0xff]  }
   0x6   :  { %129 = vmatpush1.bf16.msra.mxu0 %v326_v3  ;;  %v24_v13 = vld [vmem:[%s481_s1] sm:$0xff]  ;;  %v299_v16 = vcombine.high %v43_v12, %v43_v12  ;;  %v337_v19 = vld [vmem:[%s479_s0 + $0x8] sm:$0xff]   ;;  %v298_v24 = vcombine.low %v43_v12, %v43_v12 }
   0x7   :  { %232 = vmatpush1.bf16.msra.mxu1 %v327_v4  ;;  %130 = vmatprep.subr.bf16.mxu0 %v346_v0  ;;  %v269_v14 = vld [vmem:[%s482_s4] sm:$0xff]  ;;  %v311_v17 = vcombine.high %v24_v13, %v24_v13  ;;  %v310_v25 = vcombine.low %v24_v13, %v24_v13 }
   0x8   :  { %233 = vmatprep.subr.bf16.mxu1 %v346_v0  ;;  %272 = vperm.xlu0 %323, %v269_v14   ;;  %v338_v20 = vld [vmem:[%s478_s2] sm:$0xff]  }
   0x9   :  { %309 = vmatprep.mubr.msk.bf16.mxu0 %vm122_vm0, %v299_v16  ;;  %321 = vmatprep.mubr.msk.bf16.mxu1 %vm122_vm0, %v311_v17  ;;  %v339_v21 = vld [vmem:[%s479_s0] sm:$0xff]  }
   0xa   :  { %131 = vmatpush1.bf16.msra.mxu0 %v328_v5  ;;  %v340_v22 = vld [vmem:[%s478_s2 + $0x40] sm:$0xff]  }
   0xb   :  { %234 = vmatpush1.bf16.msra.mxu1 %v329_v6  ;;  %132 = vmatprep.subr.bf16.mxu0 %v346_v0  ;;  %v341_v23 = vld [vmem:[%s479_s0 + $0x40] sm:$0xff]  }
   0xc   :  { %235 = vmatprep.subr.bf16.mxu1 %v346_v0 }
   0xe   :  { %133 = vmatpush1.bf16.msra.mxu0 %v330_v7 }
   0xf   :  { %236 = vmatpush1.bf16.msra.mxu1 %v331_v8  ;;  %134 = vmatprep.subr.bf16.mxu0 %v346_v0 }
  0x10   :  { %237 = vmatprep.subr.bf16.mxu1 %v346_v0 }
  0x12   :  { %135 = vmatpush1.bf16.msra.mxu0 %v332_v9 }
  0x13   :  { %238 = vmatpush1.bf16.msra.mxu1 %v333_v10  ;;  %136 = vmatprep.subr.bf16.mxu0 %v346_v0 }
  0x14   :  { %239 = vmatprep.subr.bf16.mxu1 %v346_v0 }
  0x16   :  { %137 = vmatpush1.bf16.msra.mxu0 %v334_v11 }
  0x17   :  { %240 = vmatpush1.bf16.msra.mxu1 %v335_v15  ;;  %138 = vmatprep.subr.bf16.mxu0 %v346_v0 }
  0x18   :  { %241 = vmatprep.subr.bf16.mxu1 %v346_v0 }
  0x1a   :  { %139 = vmatpush1.bf16.msra.mxu0 %v336_v18 }
  0x1b   :  { %242 = vmatpush1.bf16.msra.mxu1 %v337_v19  ;;  %140 = vmatprep.subr.bf16.mxu0 %v346_v0 }
  0x1c   :  { %243 = vmatprep.subr.bf16.mxu1 %v346_v0 }
  0x1e   :  { %141 = vmatpush1.bf16.msra.mxu0 %v338_v20 }
  0x1f   :  { %244 = vmatpush1.bf16.msra.mxu1 %v339_v21  ;;  %156 = vmatprep.subr.bf16.mxu0 %v346_v0 }
  0x20   :  { %259 = vmatprep.subr.bf16.mxu1 %v346_v0 }
  0x22   :  { %157 = vmatpush2.bf16.msra.mxu0 %v340_v22 }
  0x23   :  { %260 = vmatpush2.bf16.msra.mxu1 %v341_v23 }
  0x25   :  { %159 = vmatmul.mubr.bf16.vlgmr.msra.gmra.mxu0 %v298_v24 }
  0x26   :  { %262 = vmatmul.mubr.bf16.vlgmr.msra.gmra.mxu1 %v310_v25 }
  0x83   :  { %v273_v28 = vpop.permute.xlu0 %272 }
  0xe5   :  { %v160_v26 = vpop.f32.mrf.mxu0 }
  0xe6   :  { %v263_v27 = vpop.f32.mrf.mxu1 }
  0xe7   :  { %v264_v29 = vadd.f32 %v263_v27, %v160_v26  ;;  %v162_v30 = vpop.f32.mrf.mxu0 }
  0xe8   :  { %v265_v31 = vpop.f32.mrf.mxu1 }
  0xe9   :  { %v275_v32 = vadd.f32 %v273_v28, %v264_v29  ;;  %v163_v33 = vpop.f32.mrf.mxu0 }
  0xea   :  { %v266_v34 = vpop.f32.mrf.mxu1 }
  0xeb   :  { %v284_v35 = vpack.c.bf16 %v275_v32, %v275_v32  ;;  %276 = vadd.xlane.f32.xlu0 %v275_v32  ;;  %v164_v36 = vpop.f32.mrf.mxu0  ;;  %v280_v37 = vmul.f32 %v275_v32, %v275_v32 }
  0xec   :  { %v267_v38 = vpop.f32.mrf.mxu1 }
  0xed   :  { %285 = vst [vmem:[%s483_s5] sm:$0xf] %v284_v35  ;;  %281 = vadd.xlane.f32.xlu1 %v280_v37 }
 0x174   :  { %v277_v39 = vpop.xlane.xlu0 %276 }
 0x175   :  { %279 = vst.msk [vmem:[%s484_s6] sm:$0xff] %vm278_vm1, %v277_v39 }
 0x176   :  { %v282_v40 = vpop.xlane.xlu1 %281 }
 0x177   :  { %283 = vst.msk [vmem:[%s485_s7] sm:$0xff] %vm278_vm1, %v282_v40 }

// kernel: segmentation_model_forward.20
= control target key start
LH: loop header
LB: loop body
LE: loop exit
PB: predicated region body
PF: predicated region fallthrough
CT: control target
= control target key end

     0   :  { %v58_v0 = vmov 0   ;;  %s107_s1 = inlined_call_operand.vmem [shape: f32[8,1], index: 1, kind: input, shape index: {}]   ;;  %s108_s2 = inlined_call_operand.vmem [shape: f32[8,1], index: 2, kind: input, shape index: {}]   ;;  %s109_s3 = inlined_call_operand.vmem [shape: f32[8,1], index: 3, kind: input, shape index: {}]   ;;  %s110_s4 = inlined_call_operand.vmem [shape: f32[8,1], index: 4, kind: input, shape index: {}]   ;;  %s111_s0 = inlined_call_operand.vmem [shape: bf16[8,128], index: 0, kind: input, shape index: {}]   ;;  %s112_s5 = inlined_call_operand.vmem [shape: bf16[8,128], index: 5, kind: output, shape index: {}]  }
   0x1   :  { %55 = vset.pattern.permute.xlu0 %v58_v0  ;;  %v20_v1 = vld [vmem:[%s107_s1] sm:$0xff] }
   0x2   :  { %v22_v2 = vld [vmem:[%s108_s2] sm:$0xff]  ;;  %v21_v3 = vmul.f32 0.0078125, %v20_v1 }
   0x3   :  { %v23_v4 = vmul.f32 0.0078125, %v22_v2  ;;  %v26_v8 = vld [vmem:[%s109_s3] sm:$0xff] }
   0x4   :  { %v24_v5 = vmul.f32 %v21_v3, %v21_v3  ;;  %v30_v11 = vld [vmem:[%s110_s4] sm:$0xff] }
   0x5   :  { %v33_v14 = vld [vmem:[%s111_s0] sm:$0xf] }
   0x6   :  { %v25_v6 = vsub.f32 %v23_v4, %v24_v5  ;;  %v34_v15 = vunpack.c.l.bf16 %v33_v14 }
   0x8   :  { %v27_v7 = vadd.f32 1e-05, %v25_v6 }
   0xa   :  { %56 = vrsqrt.f32 %v27_v7 }
  0x17   :  { %v57_v9 = vpop.eup %56 }
  0x18   :  { %v29_v10 = vmul.f32 %v57_v9, %v26_v8 }
  0x1a   :  { %37 = vperm.xlu0 %55, %v29_v10   ;;  %v31_v12 = vmul.f32 %v29_v10, %v21_v3 }
  0x1c   :  { %v32_v13 = vsub.f32 %v30_v11, %v31_v12 }
  0x1e   :  { %43 = vperm.xlu0 %55, %v32_v13  }
  0x95   :  { %v38_v16 = vpop.permute.xlu0 %37 }
  0x96   :  { %v40_v17 = vmul.f32 %v38_v16, %v34_v15 }
  0x99   :  { %v44_v18 = vpop.permute.xlu0 %43 }
  0x9a   :  { %v46_v19 = vadd.f32 %v44_v18, %v40_v17 }
  0x9c   :  { %v47_v20 = vmax.f32 %v46_v19, 0.0 }
  0x9e   :  { %v48_v21 = vpack.c.bf16 %v47_v20, %v47_v20 }
  0xa0   :  { %49 = vst [vmem:[%s112_s5] sm:$0xf] %v48_v21 }

// kernel: segmentation_model_forward.22
= control target key start
LH: loop header
LB: loop body
LE: loop exit
PB: predicated region body
PF: predicated region fallthrough
CT: control target
= control target key end

     0   :  { %v1155_v1 = vmov 0   ;;  %vm387_vm0 = vcmask 1043456   ;;  %vm383_vm1 = vcmask 588800   ;;  %s1517_s2 = inlined_call_operand.vmem [shape: bf16[200,512], index: 2, kind: input, shape index: {}]   ;;  %s1518_s3 = inlined_call_operand.vmem [shape: bf16[4,200], index: 3, kind: input, shape index: {}]   ;;  %s1519_s0 = inlined_call_operand.vmem [shape: bf16[200,512], index: 0, kind: input, shape index: {}]   ;;  %s1520_s1 = inlined_call_operand.vmem [shape: bf16[4,200], index: 1, kind: input, shape index: {}]   ;;  %s1521_s4 = inlined_call_operand.vmem [shape: f32[4,1], index: 4, kind: input, shape index: {}]   ;;  %s1522_s5 = inlined_call_operand.vmem [shape: bf16[4,512], index: 5, kind: output, shape index: {}]  }
   0x1   :  { %v1003_v0 = vld [vmem:[%s1517_s2 + $0xe4] ss:$16 sps:$4 sm:$0xff]   ;;  %1002 = vset.pattern.permute.xlu0 %v1155_v1  ;;  %v1005_v2 = vld [vmem:[%s1517_s2 + $0xec] ss:$16 sps:$4 sm:$0xff]   ;;  %v1007_v3 = vld [vmem:[%s1517_s2 + $0xe0] ss:$16 sps:$4 sm:$0xff]  }
   0x2   :  { %400 = vmatprep.subr.bf16.mxu0 %v1003_v0  ;;  %v1008_v4 = vld [vmem:[%s1517_s2 + $0xe8] ss:$16 sps:$4 sm:$0xff]   ;;  %441 = vmatprep.subr.bf16.mxu1 %v1005_v2  ;;  %v1009_v5 = vld [vmem:[%s1517_s2 + $0xc4] ss:$16 sps:$4 sm:$0xff]   ;;  %v1011_v6 = vld [vmem:[%s1517_s2 + $0xcc] ss:$16 sps:$4 sm:$0xff]  }
   0x3   :  { %401 = vmatpush1.bf16.msra.mxu0 %v1007_v3  ;;  %442 = vmatpush1.bf16.msra.mxu1 %v1008_v4  ;;  %v1013_v7 = vld [vmem:[%s1517_s2 + $0xc0] ss:$16 sps:$4 sm:$0xff]   ;;  %v1014_v8 = vld [vmem:[%s1517_s2 + $0xc8] ss:$16 sps:$4 sm:$0xff]   ;;  %v1015_v9 = vld [vmem:[%s1517_s2 + $0xa4] ss:$16 sps:$4 sm:$0xff]  }
   0x4   :  { %402 = vmatprep.subr.bf16.mxu0 %v1009_v5  ;;  %443 = vmatprep.subr.bf16.mxu1 %v1011_v6  ;;  %v1017_v10 = vld [vmem:[%s1517_s2 + $0xac] ss:$16 sps:$4 sm:$0xff]   ;;  %v1019_v11 = vld [vmem:[%s1517_s2 + $0xa0] ss:$16 sps:$4 sm:$0xff]   ;;  %v1020_v12 = vld [vmem:[%s1517_s2 + $0xa8] ss:$16 sps:$4 sm:$0xff]  }
   0x5   :  { %v1021_v13 = vld [vmem:[%s1517_s2 + $0x84] ss:$16 sps:$4 sm:$0xff]   ;;  %v1023_v14 = vld [vmem:[%s1517_s2 + $0x8c] ss:$16 sps:$4 sm:$0xff]   ;;  %v1025_v15 = vld [vmem:[%s1517_s2 + $0x80] ss:$16 sps:$4 sm:$0xff]  }
   0x6   :  { %v1026_v16 = vld [vmem:[%s1517_s2 + $0x88] ss:$16 sps:$4 sm:$0xff]   ;;  %v1027_v17 = vld [vmem:[%s1517_s2 + $0x64] ss:$16 sps:$4 sm:$0xff]   ;;  %v1029_v18 = vld [vmem:[%s1517_s2 + $0x6c] ss:$16 sps:$4 sm:$0xff]  }
   0x7   :  { %403 = vmatpush1.bf16.msra.mxu0 %v1013_v7  ;;  %444 = vmatpush1.bf16.msra.mxu1 %v1014_v8  ;;  %v1031_v19 = vld [vmem:[%s1517_s2 + $0x60] ss:$16 sps:$4 sm:$0xff]   ;;  %v1032_v20 = vld [vmem:[%s1517_s2 + $0x68] ss:$16 sps:$4 sm:$0xff]   ;;  %v1033_v21 = vld [vmem:[%s1517_s2 + $0x44] ss:$16 sps:$4 sm:$0xff]  }
   0x8   :  { %404 = vmatprep.subr.bf16.mxu0 %v1015_v9  ;;  %445 = vmatprep.subr.bf16.mxu1 %v1017_v10  ;;  %v1035_v22 = vld [vmem:[%s1517_s2 + $0x4c] ss:$16 sps:$4 sm:$0xff]   ;;  %v1037_v23 = vld [vmem:[%s1517_s2 + $0x40] ss:$16 sps:$4 sm:$0xff]   ;;  %v1038_v24 = vld [vmem:[%s1517_s2 + $0x48] ss:$16 sps:$4 sm:$0xff]  }
   0x9   :  { %v1039_v25 = vld [vmem:[%s1517_s2 + $0x24] ss:$16 sps:$4 sm:$0xff]   ;;  %v1041_v26 = vld [vmem:[%s1517_s2 + $0x2c] ss:$16 sps:$4 sm:$0xff]   ;;  %v1043_v27 = vld [vmem:[%s1517_s2 + $0x20] ss:$16 sps:$4 sm:$0xff]  }
   0xa   :  { %v1044_v28 = vld [vmem:[%s1517_s2 + $0x28] ss:$16 sps:$4 sm:$0xff]   ;;  %v1045_v29 = vld [vmem:[%s1517_s2 + $0x4] ss:$16 sps:$4 sm:$0xff]   ;;  %v1047_v30 = vld [vmem:[%s1517_s2 + $0xc] ss:$16 sps:$4 sm:$0xff]  }
   0xb   :  { %405 = vmatpush1.bf16.msra.mxu0 %v1019_v11  ;;  %446 = vmatpush1.bf16.msra.mxu1 %v1020_v12  ;;  %v121_v31 = vld [vmem:[%s1517_s2 + $0x180] sm:$0xff]  ;;  %v122_v32 = vld [vmem:[%s1517_s2 + $0x188] sm:$0xff] }
   0xc   :  { %406 = vmatprep.subr.bf16.mxu0 %v1021_v13  ;;  %447 = vmatprep.subr.bf16.mxu1 %v1023_v14  ;;  %v1049_v33 = vld [vmem:[%s1517_s2] ss:$16 sps:$4 sm:$0xff]   ;;  %v1050_v34 = vld [vmem:[%s1517_s2 + $0x8] ss:$16 sps:$4 sm:$0xff]   ;;  %v933_v35 = vcombine.low %v121_v31, %v121_v31  ;;  %v935_v36 = vcombine.low %v122_v32, %v122_v32  ;;  %v934_v37 = vcombine.high %v121_v31, %v121_v31  ;;  %v1055_v41 = vld [vmem:[%s1517_s2 + $0x164] ss:$16 sps:$4 sm:$0xff]  }
   0xd   :  { %v936_v38 = vcombine.high %v122_v32, %v122_v32  ;;  %v1057_v42 = vld [vmem:[%s1517_s2 + $0x16c] ss:$16 sps:$4 sm:$0xff]   ;;  %v884_v43 = vld.sshfl [vmem:[%s1518_s3] sm:$0x33 pattern:$0x76325410] }
   0xe   :  { %v389_v39 = vsel %vm387_vm0, %v933_v35, 0  ;;  %v395_v40 = vsel %vm387_vm0, %v935_v36, 0  ;;  %v131_v44 = vcombine.high %v884_v43, %v884_v43  ;;  %v1059_v45 = vld [vmem:[%s1517_s2 + $0x160] ss:$16 sps:$4 sm:$0xff]   ;;  %v1060_v46 = vld [vmem:[%s1517_s2 + $0x168] ss:$16 sps:$4 sm:$0xff]  }
   0xf   :  { %407 = vmatpush1.bf16.msra.mxu0 %v1025_v15  ;;  %448 = vmatpush1.bf16.msra.mxu1 %v1026_v16  ;;  %v1061_v47 = vld [vmem:[%s1517_s2 + $0x144] ss:$16 sps:$4 sm:$0xff]   ;;  %v1063_v48 = vld [vmem:[%s1517_s2 + $0x14c] ss:$16 sps:$4 sm:$0xff]   ;;  %v1065_v49 = vld [vmem:[%s1517_s2 + $0x140] ss:$16 sps:$4 sm:$0xff]  }
  0x10   :  { %408 = vmatprep.subr.bf16.mxu0 %v1027_v17  ;;  %449 = vmatprep.subr.bf16.mxu1 %v1029_v18  ;;  %v1066_v50 = vld [vmem:[%s1517_s2 + $0x148] ss:$16 sps:$4 sm:$0xff]   ;;  %v1067_v51 = vld [vmem:[%s1517_s2 + $0x124] ss:$16 sps:$4 sm:$0xff]   ;;  %v1069_v52 = vld [vmem:[%s1517_s2 + $0x12c] ss:$16 sps:$4 sm:$0xff]  }
  0x11   :  { %938 = vmatprep.mubr.msk.bf16.mxu0 %vm383_vm1, %v131_v44  ;;  %940 = vmatprep.mubr.msk.bf16.mxu1 %vm383_vm1, %v131_v44  ;;  %v1071_v53 = vld [vmem:[%s1517_s2 + $0x120] ss:$16 sps:$4 sm:$0xff]   ;;  %v1072_v54 = vld [vmem:[%s1517_s2 + $0x128] ss:$16 sps:$4 sm:$0xff]   ;;  %v1073_v55 = vld [vmem:[%s1517_s2 + $0x104] ss:$16 sps:$4 sm:$0xff]  }
  0x12   :  { %v1075_v56 = vld [vmem:[%s1517_s2 + $0x10c] ss:$16 sps:$4 sm:$0xff]   ;;  %v1077_v57 = vld [vmem:[%s1517_s2 + $0x100] ss:$16 sps:$4 sm:$0xff]   ;;  %v1078_v58 = vld [vmem:[%s1517_s2 + $0x108] ss:$16 sps:$4 sm:$0xff]  }
  0x13   :  { %409 = vmatpush1.bf16.msra.mxu0 %v1031_v19  ;;  %450 = vmatpush1.bf16.msra.mxu1 %v1032_v20  ;;  %v1081_v59 = vld [vmem:[%s1519_s0 + $0xe4] ss:$16 sps:$4 sm:$0xff]   ;;  %v1084_v60 = vld [vmem:[%s1519_s0 + $0xec] ss:$16 sps:$4 sm:$0xff]   ;;  %v1079_v61 = vld [vmem:[%s1519_s0 + $0xe0] ss:$16 sps:$4 sm:$0xff]  }
  0x14   :  { %410 = vmatprep.subr.bf16.mxu0 %v1033_v21  ;;  %451 = vmatprep.subr.bf16.mxu1 %v1035_v22  ;;  %v1082_v62 = vld [vmem:[%s1519_s0 + $0xe8] ss:$16 sps:$4 sm:$0xff]   ;;  %v1087_v63 = vld [vmem:[%s1519_s0 + $0xc4] ss:$16 sps:$4 sm:$0xff]   ;;  %v1090_v0 = vld [vmem:[%s1519_s0 + $0xcc] ss:$16 sps:$4 sm:$0xff]  }
  0x15   :  { %v1085_v1 = vld [vmem:[%s1519_s0 + $0xc0] ss:$16 sps:$4 sm:$0xff]   ;;  %v1088_v2 = vld [vmem:[%s1519_s0 + $0xc8] ss:$16 sps:$4 sm:$0xff]   ;;  %v1093_v3 = vld [vmem:[%s1519_s0 + $0xa4] ss:$16 sps:$4 sm:$0xff]  }
  0x16   :  { %v1096_v4 = vld [vmem:[%s1519_s0 + $0xac] ss:$16 sps:$4 sm:$0xff]   ;;  %v1091_v5 = vld [vmem:[%s1519_s0 + $0xa0] ss:$16 sps:$4 sm:$0xff]   ;;  %v1094_v6 = vld [vmem:[%s1519_s0 + $0xa8] ss:$16 sps:$4 sm:$0xff]  }
  0x17   :  { %411 = vmatpush1.bf16.msra.mxu0 %v1037_v23  ;;  %452 = vmatpush1.bf16.msra.mxu1 %v1038_v24  ;;  %v1099_v7 = vld [vmem:[%s1519_s0 + $0x84] ss:$16 sps:$4 sm:$0xff]   ;;  %v1102_v8 = vld [vmem:[%s1519_s0 + $0x8c] ss:$16 sps:$4 sm:$0xff]   ;;  %v1097_v9 = vld [vmem:[%s1519_s0 + $0x80] ss:$16 sps:$4 sm:$0xff]  }
  0x18   :  { %412 = vmatprep.subr.bf16.mxu0 %v1039_v25  ;;  %453 = vmatprep.subr.bf16.mxu1 %v1041_v26  ;;  %v1100_v10 = vld [vmem:[%s1519_s0 + $0x88] ss:$16 sps:$4 sm:$0xff]   ;;  %v1105_v11 = vld [vmem:[%s1519_s0 + $0x64] ss:$16 sps:$4 sm:$0xff]   ;;  %v1108_v12 = vld [vmem:[%s1519_s0 + $0x6c] ss:$16 sps:$4 sm:$0xff]  }
  0x19   :  { %v1403_v13 = vld.sshfl [vmem:[%s1520_s1] sm:$0x33 pattern:$0x76325410]  ;;  %v1106_v17 = vld [vmem:[%s1519_s0 + $0x68] ss:$16 sps:$4 sm:$0xff]  }
  0x1a   :  { %v839_v14 = vld [vmem:[%s1521_s4] sm:$0xf]  ;;  %v490_v15 = vcombine.high %v1403_v13, %v1403_v13  ;;  %v1111_v18 = vld [vmem:[%s1519_s0 + $0x44] ss:$16 sps:$4 sm:$0xff]   ;;  %v1114_v19 = vld [vmem:[%s1519_s0 + $0x4c] ss:$16 sps:$4 sm:$0xff]  }
  0x1b   :  { %413 = vmatpush1.bf16.msra.mxu0 %v1043_v27  ;;  %454 = vmatpush1.bf16.msra.mxu1 %v1044_v28  ;;  %v1103_v16 = vld [vmem:[%s1519_s0 + $0x60] ss:$16 sps:$4 sm:$0xff]   ;;  %v1112_v21 = vld [vmem:[%s1519_s0 + $0x48] ss:$16 sps:$4 sm:$0xff]   ;;  %v1117_v22 = vld [vmem:[%s1519_s0 + $0x24] ss:$16 sps:$4 sm:$0xff]  }
  0x1c   :  { %414 = vmatprep.subr.bf16.mxu0 %v1045_v29  ;;  %455 = vmatprep.subr.bf16.mxu1 %v1047_v30  ;;  %v1109_v20 = vld [vmem:[%s1519_s0 + $0x40] ss:$16 sps:$4 sm:$0xff]   ;;  %v1120_v23 = vld [vmem:[%s1519_s0 + $0x2c] ss:$16 sps:$4 sm:$0xff]   ;;  %v1118_v25 = vld [vmem:[%s1519_s0 + $0x28] ss:$16 sps:$4 sm:$0xff]  }
  0x1d   :  { %842 = vperm.xlu0 %1002, %v839_v14   ;;  %v1115_v24 = vld [vmem:[%s1519_s0 + $0x20] ss:$16 sps:$4 sm:$0xff]   ;;  %v1123_v26 = vld [vmem:[%s1519_s0 + $0x4] ss:$16 sps:$4 sm:$0xff]   ;;  %v1126_v27 = vld [vmem:[%s1519_s0 + $0xc] ss:$16 sps:$4 sm:$0xff]  }
  0x1e   :  { %v70_v28 = vld [vmem:[%s1519_s0 + $0x180] sm:$0xff]  ;;  %v71_v29 = vld [vmem:[%s1519_s0 + $0x188] sm:$0xff] }
  0x1f   :  { %415 = vmatpush1.bf16.msra.mxu0 %v1049_v33  ;;  %456 = vmatpush1.bf16.msra.mxu1 %v1050_v34  ;;  %v1121_v30 = vld [vmem:[%s1519_s0] ss:$16 sps:$4 sm:$0xff]   ;;  %v1124_v31 = vld [vmem:[%s1519_s0 + $0x8] ss:$16 sps:$4 sm:$0xff]   ;;  %v991_v32 = vcombine.high %v70_v28, %v70_v28  ;;  %v993_v33 = vcombine.high %v71_v29, %v71_v29  ;;  %v990_v34 = vcombine.low %v70_v28, %v70_v28 }
  0x20   :  { %937 = vmatprep.subr.msk.bf16.mxu0 %vm387_vm0, %v934_v37  ;;  %939 = vmatprep.subr.msk.bf16.mxu1 %vm387_vm0, %v936_v38  ;;  %v992_v35 = vcombine.low %v71_v29, %v71_v29  ;;  %v1133_v38 = vld [vmem:[%s1519_s0 + $0x164] ss:$16 sps:$4 sm:$0xff]   ;;  %v1137_v44 = vld [vmem:[%s1519_s0 + $0x140] ss:$16 sps:$4 sm:$0xff]  }
  0x21   :  { %v746_v36 = vsel %vm387_vm0, %v990_v34, 0 }
  0x22   :  { %v752_v37 = vsel %vm387_vm0, %v992_v35, 0 }
  0x23   :  { %423 = vmatpush2.bf16.msra.mxu0 %v389_v39  ;;  %464 = vmatpush2.bf16.msra.mxu1 %v395_v40  ;;  %v1136_v39 = vld [vmem:[%s1519_s0 + $0x16c] ss:$16 sps:$4 sm:$0xff]   ;;  %v1131_v40 = vld [vmem:[%s1519_s0 + $0x160] ss:$16 sps:$4 sm:$0xff]  }
  0x24   :  { %424 = vmatprep.subr.bf16.mxu0 %v1055_v41  ;;  %465 = vmatprep.subr.bf16.mxu1 %v1057_v42  ;;  %v1134_v41 = vld [vmem:[%s1519_s0 + $0x168] ss:$16 sps:$4 sm:$0xff]   ;;  %v1139_v42 = vld [vmem:[%s1519_s0 + $0x144] ss:$16 sps:$4 sm:$0xff]  }
  0x27   :  { %425 = vmatpush2.bf16.msra.mxu0 %v1059_v45  ;;  %466 = vmatpush2.bf16.msra.mxu1 %v1060_v46  ;;  %v1140_v45 = vld [vmem:[%s1519_s0 + $0x148] ss:$16 sps:$4 sm:$0xff]   ;;  %v1145_v46 = vld [vmem:[%s1519_s0 + $0x124] ss:$16 sps:$4 sm:$0xff]  }
  0x28   :  { %426 = vmatprep.subr.bf16.mxu0 %v1061_v47  ;;  %467 = vmatprep.subr.bf16.mxu1 %v1063_v48  ;;  %v1148_v47 = vld [vmem:[%s1519_s0 + $0x12c] ss:$16 sps:$4 sm:$0xff]   ;;  %v1143_v48 = vld [vmem:[%s1519_s0 + $0x120] ss:$16 sps:$4 sm:$0xff]  }
  0x2b   :  { %427 = vmatpush2.bf16.msra.mxu0 %v1065_v49  ;;  %468 = vmatpush2.bf16.msra.mxu1 %v1066_v50  ;;  %v1146_v49 = vld [vmem:[%s1519_s0 + $0x128] ss:$16 sps:$4 sm:$0xff]   ;;  %v1151_v50 = vld [vmem:[%s1519_s0 + $0x104] ss:$16 sps:$4 sm:$0xff]  }
  0x2c   :  { %428 = vmatprep.subr.bf16.mxu0 %v1067_v51  ;;  %469 = vmatprep.subr.bf16.mxu1 %v1069_v52  ;;  %v1154_v51 = vld [vmem:[%s1519_s0 + $0x10c] ss:$16 sps:$4 sm:$0xff]   ;;  %v1149_v52 = vld [vmem:[%s1519_s0 + $0x100] ss:$16 sps:$4 sm:$0xff]  }
  0x2f   :  { %429 = vmatpush2.bf16.msra.mxu0 %v1071_v53  ;;  %470 = vmatpush2.bf16.msra.mxu1 %v1072_v54  ;;  %v1152_v53 = vld [vmem:[%s1519_s0 + $0x108] ss:$16 sps:$4 sm:$0xff]  }
  0x30   :  { %430 = vmatprep.subr.bf16.mxu0 %v1073_v55  ;;  %471 = vmatprep.subr.bf16.mxu1 %v1075_v56 }
  0x33   :  { %431 = vmatpush2.bf16.msra.mxu0 %v1077_v57  ;;  %472 = vmatpush2.bf16.msra.mxu1 %v1078_v58 }
  0x34   :  { %757 = vmatprep.subr.bf16.mxu0 %v1081_v59  ;;  %798 = vmatprep.subr.bf16.mxu1 %v1084_v60 }
  0x36   :  { %433 = vmatmul.mubr.bf16.vlgmr.msra.gmra.mxu0 %v884_v43  ;;  %474 = vmatmul.mubr.bf16.vlgmr.msra.gmra.mxu1 %v884_v43  ;;  %v1142_v43 = vld [vmem:[%s1519_s0 + $0x14c] ss:$16 sps:$4 sm:$0xff]  }
  0x37   :  { %758 = vmatpush1.bf16.msra.mxu0 %v1079_v61  ;;  %799 = vmatpush1.bf16.msra.mxu1 %v1082_v62  ;;  %v1156_v62 = vmov 1983009808  }
  0x38   :  { %759 = vmatprep.subr.bf16.mxu0 %v1087_v63  ;;  %800 = vmatprep.subr.bf16.mxu1 %v1090_v0  ;;  %v864_v63 = vunpack.c.l.s4 %v1156_v62  ;;  %v866_v0 = vlaneseq }
  0x39   :  { %995 = vmatprep.mubr.msk.bf16.mxu0 %vm383_vm1, %v490_v15  ;;  %997 = vmatprep.mubr.msk.bf16.mxu1 %vm383_vm1, %v490_v15 }
  0x3b   :  { %760 = vmatpush1.bf16.msra.mxu0 %v1085_v1  ;;  %801 = vmatpush1.bf16.msra.mxu1 %v1088_v2 }
  0x3c   :  { %761 = vmatprep.subr.bf16.mxu0 %v1093_v3  ;;  %802 = vmatprep.subr.bf16.mxu1 %v1096_v4 }
  0x3f   :  { %762 = vmatpush1.bf16.msra.mxu0 %v1091_v5  ;;  %803 = vmatpush1.bf16.msra.mxu1 %v1094_v6 }
  0x40   :  { %763 = vmatprep.subr.bf16.mxu0 %v1099_v7  ;;  %804 = vmatprep.subr.bf16.mxu1 %v1102_v8  ;;  %v865_v7 = vunpack.c.0.s8 %v864_v63  ;;  %v867_v8 = vshrl.u32 %v866_v0, 7 }
  0x43   :  { %764 = vmatpush1.bf16.msra.mxu0 %v1097_v9  ;;  %805 = vmatpush1.bf16.msra.mxu1 %v1100_v10 }
  0x44   :  { %765 = vmatprep.subr.bf16.mxu0 %v1105_v11  ;;  %806 = vmatprep.subr.bf16.mxu1 %v1108_v12 }
  0x47   :  { %766 = vmatpush1.bf16.msra.mxu0 %v1103_v16  ;;  %807 = vmatpush1.bf16.msra.mxu1 %v1106_v17 }
  0x48   :  { %767 = vmatprep.subr.bf16.mxu0 %v1111_v18  ;;  %808 = vmatprep.subr.bf16.mxu1 %v1114_v19  ;;  %v868_v18 = vsub.s32 %v865_v7, %v867_v8 }
  0x4b   :  { %768 = vmatpush1.bf16.msra.mxu0 %v1109_v20  ;;  %809 = vmatpush1.bf16.msra.mxu1 %v1112_v21 }
  0x4c   :  { %769 = vmatprep.subr.bf16.mxu0 %v1117_v22  ;;  %810 = vmatprep.subr.bf16.mxu1 %v1120_v23 }
  0x4f   :  { %770 = vmatpush1.bf16.msra.mxu0 %v1115_v24  ;;  %811 = vmatpush1.bf16.msra.mxu1 %v1118_v25 }
  0x50   :  { %771 = vmatprep.subr.bf16.mxu0 %v1123_v26  ;;  %812 = vmatprep.subr.bf16.mxu1 %v1126_v27 }
  0x53   :  { %772 = vmatpush1.bf16.msra.mxu0 %v1121_v30  ;;  %813 = vmatpush1.bf16.msra.mxu1 %v1124_v31 }
  0x54   :  { %994 = vmatprep.subr.msk.bf16.mxu0 %vm387_vm0, %v991_v32  ;;  %996 = vmatprep.subr.msk.bf16.mxu1 %vm387_vm0, %v993_v33 }
  0x57   :  { %780 = vmatpush2.bf16.msra.mxu0 %v746_v36  ;;  %821 = vmatpush2.bf16.msra.mxu1 %v752_v37 }
  0x58   :  { %781 = vmatprep.subr.bf16.mxu0 %v1133_v38  ;;  %822 = vmatprep.subr.bf16.mxu1 %v1136_v39 }
  0x5b   :  { %782 = vmatpush2.bf16.msra.mxu0 %v1131_v40  ;;  %823 = vmatpush2.bf16.msra.mxu1 %v1134_v41 }
  0x5c   :  { %783 = vmatprep.subr.bf16.mxu0 %v1139_v42  ;;  %824 = vmatprep.subr.bf16.mxu1 %v1142_v43 }
  0x5f   :  { %784 = vmatpush2.bf16.msra.mxu0 %v1137_v44  ;;  %825 = vmatpush2.bf16.msra.mxu1 %v1140_v45 }
  0x60   :  { %785 = vmatprep.subr.bf16.mxu0 %v1145_v46  ;;  %826 = vmatprep.subr.bf16.mxu1 %v1148_v47 }
  0x63   :  { %786 = vmatpush2.bf16.msra.mxu0 %v1143_v48  ;;  %827 = vmatpush2.bf16.msra.mxu1 %v1146_v49 }
  0x64   :  { %787 = vmatprep.subr.bf16.mxu0 %v1151_v50  ;;  %828 = vmatprep.subr.bf16.mxu1 %v1154_v51 }
  0x67   :  { %788 = vmatpush2.bf16.msra.mxu0 %v1149_v52  ;;  %829 = vmatpush2.bf16.msra.mxu1 %v1152_v53 }
  0x6a   :  { %790 = vmatmul.mubr.bf16.vlgmr.msra.gmra.mxu0 %v1403_v13  ;;  %831 = vmatmul.mubr.bf16.vlgmr.msra.gmra.mxu1 %v1403_v13 }
  0x98   :  { %v843_v1 = vpop.permute.xlu0 %842 }
  0xf6   :  { %v434_v54 = vpop.f32.mrf.mxu0  ;;  %v475_v55 = vpop.f32.mrf.mxu1 }
  0xf8   :  { %v436_v56 = vpop.f32.mrf.mxu0  ;;  %v477_v57 = vpop.f32.mrf.mxu1 }
  0xfa   :  { %v438_v58 = vpop.f32.mrf.mxu0  ;;  %v479_v59 = vpop.f32.mrf.mxu1 }
  0xfc   :  { %v439_v60 = vpop.f32.mrf.mxu0  ;;  %v480_v61 = vpop.f32.mrf.mxu1 }
 0x12a   :  { %v791_v2 = vpop.f32.mrf.mxu0  ;;  %v832_v3 = vpop.f32.mrf.mxu1 }
 0x12b   :  { %v792_v4 = vadd.f32 %v791_v2, %v434_v54  ;;  %v833_v5 = vadd.f32 %v832_v3, %v475_v55 }
 0x12c   :  { %v793_v6 = vpop.f32.mrf.mxu0  ;;  %v834_v9 = vpop.f32.mrf.mxu1 }
 0x12d   :  { %v845_v10 = vadd.f32 %v843_v1, %v792_v4  ;;  %v847_v11 = vadd.f32 %v843_v1, %v833_v5  ;;  %v794_v12 = vadd.f32 %v793_v6, %v436_v56  ;;  %v835_v13 = vadd.f32 %v834_v9, %v477_v57 }
 0x12e   :  { %v795_v14 = vpop.f32.mrf.mxu0  ;;  %v836_v15 = vpop.f32.mrf.mxu1 }
 0x12f   :  { %v846_v16 = vadd.f32 %v843_v1, %v794_v12  ;;  %v848_v17 = vadd.f32 %v843_v1, %v835_v13  ;;  %v849_v21 = vmax.f32 %v845_v10, 0.0  ;;  %v851_v22 = vmax.f32 %v847_v11, 0.0 }
 0x130   :  { %v796_v19 = vpop.f32.mrf.mxu0  ;;  %v837_v20 = vpop.f32.mrf.mxu1 }
 0x131   :  { %v850_v23 = vmax.f32 %v846_v16, 0.0  ;;  %v852_v24 = vmax.f32 %v848_v17, 0.0 }
 0x133   :  { %v998_v25 = vpack.c.bf16 %v850_v23, %v849_v21  ;;  %v999_v26 = vpack.c.bf16 %v852_v24, %v851_v22 }
 0x135   :  { %v869_v27 = vrot.slane %v998_v25, %v868_v18  ;;  %v876_v28 = vrot.slane %v999_v26, %v868_v18 }
 0x137   :  { %v877_v29 = vcombine.low %v869_v27, %v876_v28 }
 0x139   :  { %879 = vst [vmem:[%s1522_s5] sm:$0xff] %v877_v29 }

// kernel: segmentation_model_forward.23
= control target key start
LH: loop header
LB: loop body
LE: loop exit
PB: predicated region body
PF: predicated region fallthrough
CT: control target
= control target key end

     0   :  { %v28_v0 = vlaneseq  ;;  %v255_v2 = vmov 1983009808   ;;  %v256_v4 = vmov 0   ;;  %vm45_vm0 = vcmask 1041408   ;;  %s300_s0 = inlined_call_operand.vmem [shape: bf16[4,512], index: 0, kind: input, shape index: {}]   ;;  %s301_s2 = inlined_call_operand.vmem [shape: f32[3,1], index: 2, kind: input, shape index: {}]   ;;  %s302_s1 = inlined_call_operand.vmem [shape: bf16[3,4], index: 1, kind: input, shape index: {}]   ;;  %s303_s3 = inlined_call_operand.vmem [shape: f32[3,512], index: 3, kind: output, shape index: {}]  }
   0x1   :  { %v16_v1 = vld [vmem:[%s300_s0] sm:$0xff]  ;;  %v26_v3 = vunpack.c.l.s4 %v255_v2  ;;  %90 = vmatprep.mubr.bf16.mxu0 %v256_v4  ;;  %131 = vmatprep.mubr.bf16.mxu1 %v256_v4  ;;  %vm41_vm1 = vcmask 31744   ;;  %vm140_vm2 = vcmask 1042432  }
   0x2   :  { %v17_v5 = vld [vmem:[%s301_s2] sm:$0x7]  ;;  %v29_v6 = vshrl.u32 %v28_v0, 7  ;;  %237 = vset.pattern.permute.xlu0 %v256_v4  ;;  %v24_v8 = vcombine.high %v16_v1, %v16_v1 }
   0x3   :  { %v27_v7 = vunpack.c.0.s8 %v26_v3  ;;  %20 = vperm.xlu0 %237, %v17_v5   ;;  %v15_v16 = vld [vmem:[%s302_s1] sm:$0x3] }
   0x5   :  { %v30_v9 = vsub.s32 %v27_v7, %v29_v6 }
   0x7   :  { %v31_v10 = vrot.slane %v16_v1, %v30_v9  ;;  %v38_v11 = vrot.slane %v24_v8, %v30_v9 }
   0x9   :  { %v39_v12 = vcombine.high %v31_v10, %v31_v10  ;;  %v40_v13 = vcombine.high %v38_v11, %v38_v11  ;;  %v47_v14 = vsel %vm45_vm0, %v31_v10, 0  ;;  %v53_v15 = vsel %vm45_vm0, %v38_v11, 0 }
   0xb   :  { %231 = vmatprep.subr.msk.bf16.mxu0 %vm45_vm0, %v39_v12  ;;  %233 = vmatprep.subr.msk.bf16.mxu1 %vm45_vm0, %v40_v13 }
   0xc   :  { %73 = vmatpush1.bf16.msra.mxu0 %v47_v14  ;;  %114 = vmatpush1.bf16.msra.mxu1 %v53_v15 }
   0xf   :  { %232 = vmatmul.mubr.msk.bf16.vlgmr.msra.gmra.mxu0 %vm41_vm1, %v15_v16  ;;  %234 = vmatmul.mubr.msk.bf16.vlgmr.msra.gmra.mxu1 %vm41_vm1, %v15_v16 }
  0x7e   :  { %v21_v17 = vpop.permute.xlu0 %20 }
  0xcf   :  { %v92_v18 = vpop.f32.mrf.mxu0  ;;  %v133_v19 = vpop.f32.mrf.mxu1 }
  0xd0   :  { %v93_v20 = vadd.f32 %v92_v18, %v21_v17  ;;  %v134_v21 = vadd.f32 %v133_v19, %v21_v17 }
  0xd1   :  { %v94_v22 = vpop.f32.mrf.mxu0  ;;  %v135_v23 = vpop.f32.mrf.mxu1 }
  0xd2   :  { %v141_v24 = vsel %vm140_vm2, %v93_v20, -inf  ;;  %v155_v25 = vsel %vm140_vm2, %v134_v21, -inf  ;;  %v95_v26 = vadd.f32 %v94_v22, %v21_v17  ;;  %v136_v27 = vadd.f32 %v135_v23, %v21_v17 }
  0xd3   :  { %v142_v28 = vrot.slane %v141_v24, 4  ;;  %v156_v29 = vrot.slane %v155_v25, 4  ;;  %v96_v30 = vpop.f32.mrf.mxu0  ;;  %v137_v31 = vpop.f32.mrf.mxu1 }
  0xd4   :  { %v148_v32 = vsel %vm140_vm2, %v95_v26, -inf  ;;  %v162_v33 = vsel %vm140_vm2, %v136_v27, -inf }
  0xd5   :  { %v143_v34 = vmax.f32 %v141_v24, %v142_v28  ;;  %v157_v35 = vmax.f32 %v155_v25, %v156_v29  ;;  %v149_v36 = vrot.slane %v148_v32, 4  ;;  %v163_v37 = vrot.slane %v162_v33, 4  ;;  %v97_v38 = vpop.f32.mrf.mxu0  ;;  %v138_v39 = vpop.f32.mrf.mxu1 }
  0xd7   :  { %v144_v40 = vrot.slane %v143_v34, 2  ;;  %v158_v41 = vrot.slane %v157_v35, 2  ;;  %v150_v42 = vmax.f32 %v148_v32, %v149_v36  ;;  %v164_v43 = vmax.f32 %v162_v33, %v163_v37 }
  0xd9   :  { %v145_v44 = vmax.f32 %v143_v34, %v144_v40  ;;  %v159_v45 = vmax.f32 %v157_v35, %v158_v41  ;;  %v151_v46 = vrot.slane %v150_v42, 2  ;;  %v165_v47 = vrot.slane %v164_v43, 2 }
  0xdb   :  { %v146_v48 = vrot.slane %v145_v44, 1  ;;  %v160_v49 = vrot.slane %v159_v45, 1  ;;  %v152_v50 = vmax.f32 %v150_v42, %v151_v46  ;;  %v166_v51 = vmax.f32 %v164_v43, %v165_v47 }
  0xdd   :  { %v147_v52 = vmax.f32 %v145_v44, %v146_v48  ;;  %v161_v53 = vmax.f32 %v159_v45, %v160_v49  ;;  %v153_v54 = vrot.slane %v152_v50, 1  ;;  %v167_v55 = vrot.slane %v166_v51, 1 }
  0xdf   :  { %v169_v56 = vsub.f32 %v93_v20, %v147_v52  ;;  %v171_v57 = vsub.f32 %v134_v21, %v161_v53  ;;  %v154_v58 = vmax.f32 %v152_v50, %v153_v54  ;;  %v168_v59 = vmax.f32 %v166_v51, %v167_v55 }
  0xe1   :  { %v173_v60 = vmul.f32 1.442695, %v169_v56  ;;  %v177_v61 = vmul.f32 1.442695, %v171_v57  ;;  %v170_v62 = vsub.f32 %v95_v26, %v154_v58  ;;  %v172_v63 = vsub.f32 %v136_v27, %v168_v59 }
  0xe3   :  { %239 = vpow2.f32 %v173_v60  ;;  %v175_v0 = vmul.f32 1.442695, %v170_v62  ;;  %v179_v1 = vmul.f32 1.442695, %v172_v63 }
  0xe4   :  { %241 = vpow2.f32 %v177_v61 }
  0xe5   :  { %243 = vpow2.f32 %v175_v0 }
  0xe6   :  { %245 = vpow2.f32 %v179_v1 }
  0xf0   :  { %v240_v2 = vpop.eup %239 }
  0xf1   :  { %v242_v3 = vpop.eup %241  ;;  %v181_v4 = vsel %vm140_vm2, %v240_v2, 0.0 }
  0xf2   :  { %v244_v5 = vpop.eup %243  ;;  %v182_v6 = vrot.slane %v181_v4, 4  ;;  %v195_v7 = vsel %vm140_vm2, %v242_v3, 0.0 }
  0xf3   :  { %v246_v8 = vpop.eup %245  ;;  %v196_v9 = vrot.slane %v195_v7, 4  ;;  %v188_v10 = vsel %vm140_vm2, %v244_v5, 0.0 }
  0xf4   :  { %v183_v11 = vadd.f32 %v182_v6, %v181_v4  ;;  %v189_v12 = vrot.slane %v188_v10, 4  ;;  %v202_v13 = vsel %vm140_vm2, %v246_v8, 0.0 }
  0xf5   :  { %v197_v14 = vadd.f32 %v196_v9, %v195_v7  ;;  %v203_v15 = vrot.slane %v202_v13, 4 }
  0xf6   :  { %v184_v16 = vrot.slane %v183_v11, 2  ;;  %v190_v17 = vadd.f32 %v189_v12, %v188_v10 }
  0xf7   :  { %v198_v18 = vrot.slane %v197_v14, 2  ;;  %v204_v19 = vadd.f32 %v203_v15, %v202_v13 }
  0xf8   :  { %v185_v20 = vadd.f32 %v184_v16, %v183_v11  ;;  %v191_v21 = vrot.slane %v190_v17, 2 }
  0xf9   :  { %v199_v22 = vadd.f32 %v198_v18, %v197_v14  ;;  %v205_v23 = vrot.slane %v204_v19, 2 }
  0xfa   :  { %v186_v24 = vrot.slane %v185_v20, 1  ;;  %v192_v25 = vadd.f32 %v191_v21, %v190_v17 }
  0xfb   :  { %v200_v26 = vrot.slane %v199_v22, 1  ;;  %v206_v27 = vadd.f32 %v205_v23, %v204_v19 }
  0xfc   :  { %v187_v28 = vadd.f32 %v186_v24, %v185_v20  ;;  %v193_v29 = vrot.slane %v192_v25, 1 }
  0xfd   :  { %v201_v30 = vadd.f32 %v200_v26, %v199_v22  ;;  %v207_v31 = vrot.slane %v206_v27, 1 }
  0xfe   :  { %247 = vrcp.f32 %v187_v28  ;;  %v194_v32 = vadd.f32 %v193_v29, %v192_v25 }
  0xff   :  { %249 = vrcp.f32 %v201_v30  ;;  %v208_v33 = vadd.f32 %v207_v31, %v206_v27 }
 0x100   :  { %251 = vrcp.f32 %v194_v32 }
 0x101   :  { %253 = vrcp.f32 %v208_v33 }
 0x10b   :  { %v248_v34 = vpop.eup %247 }
 0x10c   :  { %v250_v35 = vpop.eup %249  ;;  %v213_v38 = vmul.f32 %v248_v34, %v240_v2 }
 0x10d   :  { %v252_v36 = vpop.eup %251  ;;  %v215_v40 = vmul.f32 %v250_v35, %v242_v3 }
 0x10e   :  { %v254_v37 = vpop.eup %253  ;;  %v214_v39 = vmul.f32 %v252_v36, %v244_v5 }
 0x10f   :  { %v216_v41 = vmul.f32 %v254_v37, %v246_v8 }
 0x110   :  { %v221_v42 = vcombine.low %v213_v38, %v214_v39 }
 0x111   :  { %v222_v43 = vcombine.low %v215_v40, %v216_v41 }
 0x112   :  { %225 = vst [vmem:[%s303_s3] sm:$0x77] %v221_v42 }
 0x113   :  { %226 = vst [vmem:[%s303_s3 + $0x8] sm:$0x77] %v222_v43 }

</bundles_post_ra>
